<compile_context>
chip_gen: v7x
topology: tpu7x:2x2x1
jax: 0.10.0
libtpu: 0.0.40
codegen_flags: <defaults>
</compile_context>

<pallas_src>
import functools
import math

import jax
import jax.numpy as jnp
from jax import lax
from jax.experimental import pallas as pl
from jax.experimental.pallas import tpu as pltpu


# ------------------------------ fused kernel --------------------------------

def _model_kernel(
    # inputs
    x_ref,                                   # (B, T, F)          f32
    c1w_ref, bn1s_ref, bn1h_ref,             # (K, F, C1) bf16, (1, C1) f32 x2
    c2w_ref, bn2s_ref, bn2h_ref,             # (K, C1, C2) bf16, (1, C2) f32 x2
    wxf0_ref, wxb0_ref, whh0_ref, b0_ref,    # LSTM layer 0 (bf16 x3, f32 bias)
    wxf1_ref, wxb1_ref, whh1_ref, b1_ref,    # LSTM layer 1
    inw_ref, inb_ref,                        # (E, 3E) bf16, (1, 3E) f32
    outw_ref, outb_ref,                      # (E, E) bf16, (1, E) f32
    fc1w_ref, fc1b_ref,                      # (E, 64) bf16, (1, 64) f32
    fc2w_ref, fc2b_ref,                      # (64, n_cls) bf16, (1, n_cls) f32
    # output
    o_ref,                                   # (B, n_cls) f32
    *, num_heads,
):
    f32, bf16 = jnp.float32, jnp.bfloat16
    B, T, F = x_ref.shape
    K, _, C1 = c1w_ref.shape
    C2 = c2w_ref.shape[2]
    P = K // 2
    T2, T4 = T // 2, T // 4
    E = C2                                   # embed dim = 2 * LSTM hidden = 128
    H = E // 2                               # LSTM hidden per direction
    HD = E // num_heads                      # attention head dim

    def mm(a, b):                            # bf16 MXU matmul, f32 accumulation
        return jnp.dot(a.astype(bf16), b.astype(bf16),
                       preferred_element_type=f32)

    def mm_t(a, b):                          # a @ b.T (attention scores)
        return lax.dot_general(a.astype(bf16), b.astype(bf16),
                               (((1,), (1,)), ((), ())),
                               preferred_element_type=f32)

    # -------- Stage 1: CNN (conv + BN + ReLU + maxpool) x2, batched over B ---
    seg1, seg2 = T + 2 * P, T2 + 2 * P

    # Padded register slab: per batch [P zero rows | T data rows | P zero rows].
    zpad1 = jnp.zeros((P, F), f32)
    pieces = []
    for b in range(B):
        pieces += [zpad1, x_ref[b], zpad1]
    xpad = jnp.concatenate(pieces, axis=0)                    # (B*seg1, F)

    # Conv1 as K shifted matmuls over the whole slab; output row for (b, t)
    # lives at m = b*seg1 + t (inter-batch boundary rows are never read).
    M1 = B * seg1 - 2 * P
    acc1 = mm(xpad[0:M1], c1w_ref[0])
    for k in range(1, K):
        acc1 = acc1 + mm(xpad[k:k + M1], c1w_ref[k])
    y1 = jnp.maximum(acc1 * bn1s_ref[...] + bn1h_ref[...], 0.0)   # (M1, C1)

    # MaxPool1d(2) + padded conv2 slab, all in registers.
    zpad2 = jnp.zeros((P, C1), f32)
    pieces = []
    for b in range(B):
        pooled = [jnp.maximum(y1[b * seg1 + 2 * j: b * seg1 + 2 * j + 1, :],
                              y1[b * seg1 + 2 * j + 1: b * seg1 + 2 * j + 2, :])
                  for j in range(T2)]
        pieces += [zpad2, jnp.concatenate(pooled, axis=0), zpad2]
    pad2 = jnp.concatenate(pieces, axis=0)                    # (B*seg2, C1)

    M2 = B * seg2 - 2 * P
    acc2 = mm(pad2[0:M2], c2w_ref[0])
    for k in range(1, K):
        acc2 = acc2 + mm(pad2[k:k + M2], c2w_ref[k])
    y2 = jnp.maximum(acc2 * bn2s_ref[...] + bn2h_ref[...], 0.0)   # (M2, C2)

    # MaxPool1d(2) -> time-major sequence (row = t*B + b), kept in registers.
    x_seq = jnp.concatenate(
        [jnp.maximum(y2[b * seg2 + 2 * t: b * seg2 + 2 * t + 1, :],
                     y2[b * seg2 + 2 * t + 1: b * seg2 + 2 * t + 2, :])
         for t in range(T4) for b in range(B)], axis=0)       # (T4*B, E)

    # -------- Stage 2: 2-layer bidirectional LSTM (fwd + bwd fused) ----------
    layers = ((wxf0_ref, wxb0_ref, whh0_ref, b0_ref),
              (wxf1_ref, wxb1_ref, whh1_ref, b1_ref))
    for li, (wxf_ref, wxb_ref, whh_ref, bias_ref) in enumerate(layers):
        # Input projections hoisted out of the recurrence (one matmul each).
        xgf = mm(x_seq, wxf_ref[...]) + bias_ref[...]         # (T4*B, 4E) fwd (+all biases)
        xgb = mm(x_seq, wxb_ref[...])                         # (T4*B, 4E) bwd
        h = jnp.zeros((B, E), f32)                            # [h_fwd | h_bwd]
        c = jnp.zeros((B, E), f32)
        hs = []
        for s in range(T4):                                   # fully unrolled recurrence
            r = T4 - 1 - s
            xg = xgf[s * B:(s + 1) * B, :] + xgb[r * B:(r + 1) * B, :]
            gates = xg + mm(h, whh_ref[...])                  # (B, 4E)
            i_g = jax.nn.sigmoid(gates[:, 0 * E:1 * E])       # [i_f | i_b] (128 lanes)
            f_g = jax.nn.sigmoid(gates[:, 1 * E:2 * E])
            g_g = jnp.tanh(gates[:, 2 * E:3 * E])
            o_g = jax.nn.sigmoid(gates[:, 3 * E:4 * E])
            c = f_g * c + i_g * g_g
            h = o_g * jnp.tanh(c)
            hs.append(h)                                      # stays in registers
        if li + 1 < len(layers):
            # next layer's projection wants a time-major sequence (row = t*B + b)
            x_seq = jnp.concatenate(
                [jnp.concatenate([hs[t][:, 0:H], hs[T4 - 1 - t][:, H:E]], axis=1)
                 for t in range(T4)], axis=0)
        else:
            # attention wants a batch-major sequence (row = b*T4 + t)
            x_seq = jnp.concatenate(
                [jnp.concatenate([hs[t][b:b + 1, 0:H],
                                  hs[T4 - 1 - t][b:b + 1, H:E]], axis=1)
                 for b in range(B) for t in range(T4)], axis=0)

    # -------- Stage 3: MultiheadAttention (mean-pool commuted) + classifier --
    qkv = mm(x_seq, inw_ref[...]) + inb_ref[...]              # (B*T4, 3E), one matmul
    scale = 1.0 / math.sqrt(HD)
    pooled_rows = []
    for b in range(B):
        base = b * T4
        qb = qkv[base:base + T4, 0:E] * scale
        kb = qkv[base:base + T4, E:2 * E]
        vb = qkv[base:base + T4, 2 * E:3 * E]
        head_outs = []
        for n in range(num_heads):
            lo = n * HD
            sc = mm_t(qb[:, lo:lo + HD], kb[:, lo:lo + HD])   # (T4, T4)
            sc = sc - jnp.max(sc, axis=-1, keepdims=True)
            p = jnp.exp(sc)
            p = p / jnp.sum(p, axis=-1, keepdims=True)
            # mean over time is linear -> commute it ahead of P@V and out_proj
            pmean = jnp.mean(p, axis=0, keepdims=True)        # (1, T4)
            head_outs.append(mm(pmean, vb[:, lo:lo + HD]))    # (1, HD)
        pooled_rows.append(jnp.concatenate(head_outs, axis=1))   # (1, E)
    pooled = jnp.concatenate(pooled_rows, axis=0)             # (B, E)
    attn = mm(pooled, outw_ref[...]) + outb_ref[...]          # single out_proj for all B

    hidden = jnp.maximum(mm(attn, fc1w_ref[...]) + fc1b_ref[...], 0.0)
    # TODO(synk): Dropout(0.5) treated as eval-mode identity (inference path).
    o_ref[...] = mm(hidden, fc2w_ref[...]) + fc2b_ref[...]


# --------------------------- parameter preparation --------------------------

def fold_conv_bn(conv_b, gamma, beta, mean, var, eps=1e-5):
    """Eval-mode BatchNorm folded into per-channel scale/shift after the conv."""
    scale = gamma / jnp.sqrt(var + eps)
    shift = (conv_b - mean) * scale + beta
    return scale, shift


def _pack_lstm_layer(layer):
    """Pack one bidirectional LSTM layer for the fused kernel.

    Gate-column layout: 8 blocks of H = [i_f, i_b, f_f, f_b, g_f, g_b, o_f, o_b]
    so every gate nonlinearity acts on a full 128-lane [fwd | bwd] slab that
    matches the (B, 2H) recurrent state layout.  W_hh is packed block-diagonal
    (rows 0:H act on h_fwd, rows H:2H act on h_bwd).
    """
    H = layer["fwd"]["w_hh"].shape[1]
    D = layer["fwd"]["w_ih"].shape[1]
    wxf = jnp.zeros((D, 8 * H), jnp.float32)
    wxb = jnp.zeros((D, 8 * H), jnp.float32)
    whh = jnp.zeros((2 * H, 8 * H), jnp.float32)
    bias = jnp.zeros((1, 8 * H), jnp.float32)
    for di, dname in enumerate(("fwd", "bwd")):
        d = layer[dname]
        b_all = d["b_ih"] + d["b_hh"]
        for gi in range(4):                                   # PyTorch order i, f, g, o
            col = (2 * gi + di) * H
            w_ih_g = d["w_ih"][gi * H:(gi + 1) * H, :].T      # (D, H)
            w_hh_g = d["w_hh"][gi * H:(gi + 1) * H, :].T      # (H, H)
            if di == 0:
                wxf = wxf.at[:, col:col + H].set(w_ih_g)
            else:
                wxb = wxb.at[:, col:col + H].set(w_ih_g)
            whh = whh.at[di * H:(di + 1) * H, col:col + H].set(w_hh_g)
            bias = bias.at[0, col:col + H].set(b_all[gi * H:(gi + 1) * H])
    return wxf, wxb, whh, bias


def pack_params(p):
    """One-time prep: fold BN, transpose weights, pack LSTM gates, cast to bf16."""
    f32, bf16 = jnp.float32, jnp.bfloat16
    s1, sh1 = fold_conv_bn(p["conv1_b"], **p["bn1"])
    s2, sh2 = fold_conv_bn(p["conv2_b"], **p["bn2"])
    packed = {
        "c1w": jnp.transpose(p["conv1_w"], (2, 1, 0)).astype(bf16),   # (K, Cin, Cout)
        "bn1_scale": s1.reshape(1, -1).astype(f32),
        "bn1_shift": sh1.reshape(1, -1).astype(f32),
        "c2w": jnp.transpose(p["conv2_w"], (2, 1, 0)).astype(bf16),
        "bn2_scale": s2.reshape(1, -1).astype(f32),
        "bn2_shift": sh2.reshape(1, -1).astype(f32),
        "in_proj_w": p["in_proj_w"].T.astype(bf16),
        "in_proj_b": p["in_proj_b"].reshape(1, -1).astype(f32),
        "out_proj_w": p["out_proj_w"].T.astype(bf16),
        "out_proj_b": p["out_proj_b"].reshape(1, -1).astype(f32),
        "fc1_w": p["fc1_w"].T.astype(bf16),
        "fc1_b": p["fc1_b"].reshape(1, -1).astype(f32),
        "fc2_w": p["fc2_w"].T.astype(bf16),
        "fc2_b": p["fc2_b"].reshape(1, -1).astype(f32),
    }
    for li, layer in enumerate(p["lstm"]):
        wxf, wxb, whh, b = _pack_lstm_layer(layer)
        packed[f"lstm{li}_wxf"] = wxf.astype(bf16)
        packed[f"lstm{li}_wxb"] = wxb.astype(bf16)
        packed[f"lstm{li}_whh"] = whh.astype(bf16)
        packed[f"lstm{li}_b"] = b.astype(f32)
    return packed


def _u(key, shape, lo, hi):
    return jax.random.uniform(key, shape, jnp.float32, lo, hi)


def init_params(key):
    ks = iter(jax.random.split(key, 64))
    p = {}
    # CNN block 1: Conv1d(17, 64, 5, padding=2) + BN(64)
    p["conv1_w"] = _u(next(ks), (64, 17, 5), -0.1, 0.1)
    p["conv1_b"] = _u(next(ks), (64,), -0.1, 0.1)
    p["bn1"] = dict(gamma=_u(next(ks), (64,), 0.8, 1.2),
                    beta=_u(next(ks), (64,), -0.1, 0.1),
                    mean=_u(next(ks), (64,), -0.1, 0.1),
                    var=_u(next(ks), (64,), 0.5, 1.5))
    # CNN block 2: Conv1d(64, 128, 5, padding=2) + BN(128)
    p["conv2_w"] = _u(next(ks), (128, 64, 5), -0.06, 0.06)
    p["conv2_b"] = _u(next(ks), (128,), -0.06, 0.06)
    p["bn2"] = dict(gamma=_u(next(ks), (128,), 0.8, 1.2),
                    beta=_u(next(ks), (128,), -0.1, 0.1),
                    mean=_u(next(ks), (128,), -0.1, 0.1),
                    var=_u(next(ks), (128,), 0.5, 1.5))
    # LSTM: 2 layers, bidirectional, input 128, hidden 64.
    H = 64
    lim = 1.0 / math.sqrt(H)
    lstm = []
    for _layer in range(2):
        D = 128  # layer0: CNN channels; layer1: 2*H
        dirs = {}
        for dname in ("fwd", "bwd"):
            dirs[dname] = dict(
                w_ih=_u(next(ks), (4 * H, D), -lim, lim),
                w_hh=_u(next(ks), (4 * H, H), -lim, lim),
                b_ih=_u(next(ks), (4 * H,), -lim, lim),
                b_hh=_u(next(ks), (4 * H,), -lim, lim))
        lstm.append(dirs)
    p["lstm"] = lstm
    # MultiheadAttention(embed_dim=128, num_heads=4)
    E = 128
    lim_e = 1.0 / math.sqrt(E)
    p["in_proj_w"] = _u(next(ks), (3 * E, E), -lim_e, lim_e)
    p["in_proj_b"] = _u(next(ks), (3 * E,), -lim_e, lim_e)
    p["out_proj_w"] = _u(next(ks), (E, E), -lim_e, lim_e)
    p["out_proj_b"] = _u(next(ks), (E,), -lim_e, lim_e)
    # Classifier: Linear(128, 64) -> ReLU -> Dropout -> Linear(64, 4)
    p["fc1_w"] = _u(next(ks), (64, 128), -lim_e, lim_e)
    p["fc1_b"] = _u(next(ks), (64,), -lim_e, lim_e)
    p["fc2_w"] = _u(next(ks), (4, 64), -1.0 / 8.0, 1.0 / 8.0)
    p["fc2_b"] = _u(next(ks), (4,), -1.0 / 8.0, 1.0 / 8.0)
    return p


# ---------------------------------- forward ---------------------------------

def forward(packed, x_enc, x_mark_enc=None, x_dec=None, x_mark_dec=None, mask=None):
    x = x_enc.astype(jnp.float32)
    B, T, _F = x.shape
    assert T % 4 == 0, "two MaxPool1d(2) stages require T divisible by 4"
    n_cls = packed["fc2_w"].shape[1]

    kernel = functools.partial(_model_kernel, num_heads=4)
    # Single fused invocation: all arrays are whole-array VMEM blocks (<1.5 MB),
    # everything inside is register-resident.
    return pl.pallas_call(
        kernel,
        out_shape=jax.ShapeDtypeStruct((B, n_cls), jnp.float32),
    )(x,
      packed["c1w"], packed["bn1_scale"], packed["bn1_shift"],
      packed["c2w"], packed["bn2_scale"], packed["bn2_shift"],
      packed["lstm0_wxf"], packed["lstm0_wxb"], packed["lstm0_whh"], packed["lstm0_b"],
      packed["lstm1_wxf"], packed["lstm1_wxb"], packed["lstm1_whh"], packed["lstm1_b"],
      packed["in_proj_w"], packed["in_proj_b"],
      packed["out_proj_w"], packed["out_proj_b"],
      packed["fc1_w"], packed["fc1_b"],
      packed["fc2_w"], packed["fc2_b"])


if __name__ == "__main__":
    key = jax.random.PRNGKey(0)
    pkey, xkey = jax.random.split(key)
    params = init_params(pkey)
    packed = pack_params(params)          # one-time weight packing (not in hot path)

    B, T, F = 2, 16, 17                   # Conv1d expects 17 input features
    x_enc = jax.random.normal(xkey, (B, T, F), jnp.float32)

    out = jax.jit(forward)(packed, x_enc)
    jax.block_until_ready(out)
    assert out.shape == (B, 4) and out.dtype == jnp.float32
    assert bool(jnp.all(jnp.isfinite(out)))
    print("KERNEL_OK")
</pallas_src>

<mosaic_0001>
module attributes {stable_mosaic.version = 11 : i64} {
  func.func @_model_kernel(%arg0: memref<2x16x17xf32, #tpu.memory_space<vmem>>, %arg1: memref<5x17x64xbf16, #tpu.memory_space<vmem>>, %arg2: memref<1x64xf32, #tpu.memory_space<vmem>>, %arg3: memref<1x64xf32, #tpu.memory_space<vmem>>, %arg4: memref<5x64x128xbf16, #tpu.memory_space<vmem>>, %arg5: memref<1x128xf32, #tpu.memory_space<vmem>>, %arg6: memref<1x128xf32, #tpu.memory_space<vmem>>, %arg7: memref<128x512xbf16, #tpu.memory_space<vmem>>, %arg8: memref<128x512xbf16, #tpu.memory_space<vmem>>, %arg9: memref<128x512xbf16, #tpu.memory_space<vmem>>, %arg10: memref<1x512xf32, #tpu.memory_space<vmem>>, %arg11: memref<128x512xbf16, #tpu.memory_space<vmem>>, %arg12: memref<128x512xbf16, #tpu.memory_space<vmem>>, %arg13: memref<128x512xbf16, #tpu.memory_space<vmem>>, %arg14: memref<1x512xf32, #tpu.memory_space<vmem>>, %arg15: memref<128x384xbf16, #tpu.memory_space<vmem>>, %arg16: memref<1x384xf32, #tpu.memory_space<vmem>>, %arg17: memref<128x128xbf16, #tpu.memory_space<vmem>>, %arg18: memref<1x128xf32, #tpu.memory_space<vmem>>, %arg19: memref<128x64xbf16, #tpu.memory_space<vmem>>, %arg20: memref<1x64xf32, #tpu.memory_space<vmem>>, %arg21: memref<64x4xbf16, #tpu.memory_space<vmem>>, %arg22: memref<1x4xf32, #tpu.memory_space<vmem>>, %arg23: memref<2x4xf32, #tpu.memory_space<vmem>>) attributes {dimension_semantics = [], scalar_prefetch = 0 : i64, scratch_operands = 0 : i64, tpu.core_type = #tpu.core_type<tc>} {
    %cst = arith.constant 0.000000e+00 : f32
    %0 = vector.broadcast %cst : f32 to vector<2x17xf32>
    %c0 = arith.constant 0 : index
    %c0_0 = arith.constant 0 : index
    %c0_1 = arith.constant 0 : index
    %1 = vector.load %arg0[%c0, %c0_0, %c0_1] : memref<2x16x17xf32, #tpu.memory_space<vmem>>, vector<1x16x17xf32>
    %2 = vector.shape_cast %1 : vector<1x16x17xf32> to vector<16x17xf32>
    %c1 = arith.constant 1 : index
    %c0_2 = arith.constant 0 : index
    %c0_3 = arith.constant 0 : index
    %3 = vector.load %arg0[%c1, %c0_2, %c0_3] : memref<2x16x17xf32, #tpu.memory_space<vmem>>, vector<1x16x17xf32>
    %4 = vector.shape_cast %3 : vector<1x16x17xf32> to vector<16x17xf32>
    %5 = tpu.concatenate %0, %2, %0, %0, %4, %0 in 0 : vector<2x17xf32>, vector<16x17xf32>, vector<2x17xf32>, vector<2x17xf32>, vector<16x17xf32>, vector<2x17xf32> -> vector<40x17xf32>
    %6 = vector.extract_strided_slice %5 {offsets = [0, 0], sizes = [36, 17], strides = [1, 1]} : vector<40x17xf32> to vector<36x17xf32>
    %c0_4 = arith.constant 0 : index
    %c0_5 = arith.constant 0 : index
    %c0_6 = arith.constant 0 : index
    %7 = vector.load %arg1[%c0_4, %c0_5, %c0_6] : memref<5x17x64xbf16, #tpu.memory_space<vmem>>, vector<1x17x64xbf16>
    %8 = vector.shape_cast %7 : vector<1x17x64xbf16> to vector<17x64xbf16>
    %9 = arith.truncf %6 : vector<36x17xf32> to vector<36x17xbf16>
    %cst_7 = arith.constant dense<0.000000e+00> : vector<36x64xf32>
    %10 = tpu.matmul %9, %8, %cst_7 {dimension_numbers = #tpu.dot_dimension_numbers<[1], [0], [0], [1], [0, 0, 1, 1], [], []>} : vector<36x17xbf16>, vector<17x64xbf16>, vector<36x64xf32> -> vector<36x64xf32>
    %11 = vector.extract_strided_slice %5 {offsets = [1, 0], sizes = [36, 17], strides = [1, 1]} : vector<40x17xf32> to vector<36x17xf32>
    %c1_8 = arith.constant 1 : index
    %c0_9 = arith.constant 0 : index
    %c0_10 = arith.constant 0 : index
    %12 = vector.load %arg1[%c1_8, %c0_9, %c0_10] : memref<5x17x64xbf16, #tpu.memory_space<vmem>>, vector<1x17x64xbf16>
    %13 = vector.shape_cast %12 : vector<1x17x64xbf16> to vector<17x64xbf16>
    %14 = arith.truncf %11 : vector<36x17xf32> to vector<36x17xbf16>
    %cst_11 = arith.constant dense<0.000000e+00> : vector<36x64xf32>
    %15 = tpu.matmul %14, %13, %cst_11 {dimension_numbers = #tpu.dot_dimension_numbers<[1], [0], [0], [1], [0, 0, 1, 1], [], []>} : vector<36x17xbf16>, vector<17x64xbf16>, vector<36x64xf32> -> vector<36x64xf32>
    %16 = arith.addf %10, %15 : vector<36x64xf32>
    %17 = vector.extract_strided_slice %5 {offsets = [2, 0], sizes = [36, 17], strides = [1, 1]} : vector<40x17xf32> to vector<36x17xf32>
    %c2 = arith.constant 2 : index
    %c0_12 = arith.constant 0 : index
    %c0_13 = arith.constant 0 : index
    %18 = vector.load %arg1[%c2, %c0_12, %c0_13] : memref<5x17x64xbf16, #tpu.memory_space<vmem>>, vector<1x17x64xbf16>
    %19 = vector.shape_cast %18 : vector<1x17x64xbf16> to vector<17x64xbf16>
    %20 = arith.truncf %17 : vector<36x17xf32> to vector<36x17xbf16>
    %cst_14 = arith.constant dense<0.000000e+00> : vector<36x64xf32>
    %21 = tpu.matmul %20, %19, %cst_14 {dimension_numbers = #tpu.dot_dimension_numbers<[1], [0], [0], [1], [0, 0, 1, 1], [], []>} : vector<36x17xbf16>, vector<17x64xbf16>, vector<36x64xf32> -> vector<36x64xf32>
    %22 = arith.addf %16, %21 : vector<36x64xf32>
    %23 = vector.extract_strided_slice %5 {offsets = [3, 0], sizes = [36, 17], strides = [1, 1]} : vector<40x17xf32> to vector<36x17xf32>
    %c3 = arith.constant 3 : index
    %c0_15 = arith.constant 0 : index
    %c0_16 = arith.constant 0 : index
    %24 = vector.load %arg1[%c3, %c0_15, %c0_16] : memref<5x17x64xbf16, #tpu.memory_space<vmem>>, vector<1x17x64xbf16>
    %25 = vector.shape_cast %24 : vector<1x17x64xbf16> to vector<17x64xbf16>
    %26 = arith.truncf %23 : vector<36x17xf32> to vector<36x17xbf16>
    %cst_17 = arith.constant dense<0.000000e+00> : vector<36x64xf32>
    %27 = tpu.matmul %26, %25, %cst_17 {dimension_numbers = #tpu.dot_dimension_numbers<[1], [0], [0], [1], [0, 0, 1, 1], [], []>} : vector<36x17xbf16>, vector<17x64xbf16>, vector<36x64xf32> -> vector<36x64xf32>
    %28 = arith.addf %22, %27 : vector<36x64xf32>
    %29 = vector.extract_strided_slice %5 {offsets = [4, 0], sizes = [36, 17], strides = [1, 1]} : vector<40x17xf32> to vector<36x17xf32>
    %c4 = arith.constant 4 : index
    %c0_18 = arith.constant 0 : index
    %c0_19 = arith.constant 0 : index
    %30 = vector.load %arg1[%c4, %c0_18, %c0_19] : memref<5x17x64xbf16, #tpu.memory_space<vmem>>, vector<1x17x64xbf16>
    %31 = vector.shape_cast %30 : vector<1x17x64xbf16> to vector<17x64xbf16>
    %32 = arith.truncf %29 : vector<36x17xf32> to vector<36x17xbf16>
    %cst_20 = arith.constant dense<0.000000e+00> : vector<36x64xf32>
    %33 = tpu.matmul %32, %31, %cst_20 {dimension_numbers = #tpu.dot_dimension_numbers<[1], [0], [0], [1], [0, 0, 1, 1], [], []>} : vector<36x17xbf16>, vector<17x64xbf16>, vector<36x64xf32> -> vector<36x64xf32>
    %34 = arith.addf %28, %33 : vector<36x64xf32>
    %c0_21 = arith.constant 0 : index
    %c0_22 = arith.constant 0 : index
    %35 = vector.load %arg2[%c0_21, %c0_22] : memref<1x64xf32, #tpu.memory_space<vmem>>, vector<1x64xf32>
    %36 = vector.broadcast %35 : vector<1x64xf32> to vector<36x64xf32>
    %37 = arith.mulf %34, %36 : vector<36x64xf32>
    %c0_23 = arith.constant 0 : index
    %c0_24 = arith.constant 0 : index
    %38 = vector.load %arg3[%c0_23, %c0_24] : memref<1x64xf32, #tpu.memory_space<vmem>>, vector<1x64xf32>
    %39 = vector.broadcast %38 : vector<1x64xf32> to vector<36x64xf32>
    %40 = arith.addf %37, %39 : vector<36x64xf32>
    %cst_25 = arith.constant 0.000000e+00 : f32
    %41 = vector.broadcast %cst_25 : f32 to vector<36x64xf32>
    %42 = arith.maximumf %40, %41 : vector<36x64xf32>
    %cst_26 = arith.constant 0.000000e+00 : f32
    %43 = vector.broadcast %cst_26 : f32 to vector<2x64xf32>
    %44 = vector.extract_strided_slice %42 {offsets = [0, 0], sizes = [1, 64], strides = [1, 1]} : vector<36x64xf32> to vector<1x64xf32>
    %45 = vector.extract_strided_slice %42 {offsets = [1, 0], sizes = [1, 64], strides = [1, 1]} : vector<36x64xf32> to vector<1x64xf32>
    %46 = arith.maximumf %44, %45 : vector<1x64xf32>
    %47 = vector.extract_strided_slice %42 {offsets = [2, 0], sizes = [1, 64], strides = [1, 1]} : vector<36x64xf32> to vector<1x64xf32>
    %48 = vector.extract_strided_slice %42 {offsets = [3, 0], sizes = [1, 64], strides = [1, 1]} : vector<36x64xf32> to vector<1x64xf32>
    %49 = arith.maximumf %47, %48 : vector<1x64xf32>
    %50 = vector.extract_strided_slice %42 {offsets = [4, 0], sizes = [1, 64], strides = [1, 1]} : vector<36x64xf32> to vector<1x64xf32>
    %51 = vector.extract_strided_slice %42 {offsets = [5, 0], sizes = [1, 64], strides = [1, 1]} : vector<36x64xf32> to vector<1x64xf32>
    %52 = arith.maximumf %50, %51 : vector<1x64xf32>
    %53 = vector.extract_strided_slice %42 {offsets = [6, 0], sizes = [1, 64], strides = [1, 1]} : vector<36x64xf32> to vector<1x64xf32>
    %54 = vector.extract_strided_slice %42 {offsets = [7, 0], sizes = [1, 64], strides = [1, 1]} : vector<36x64xf32> to vector<1x64xf32>
    %55 = arith.maximumf %53, %54 : vector<1x64xf32>
    %56 = vector.extract_strided_slice %42 {offsets = [8, 0], sizes = [1, 64], strides = [1, 1]} : vector<36x64xf32> to vector<1x64xf32>
    %57 = vector.extract_strided_slice %42 {offsets = [9, 0], sizes = [1, 64], strides = [1, 1]} : vector<36x64xf32> to vector<1x64xf32>
    %58 = arith.maximumf %56, %57 : vector<1x64xf32>
    %59 = vector.extract_strided_slice %42 {offsets = [10, 0], sizes = [1, 64], strides = [1, 1]} : vector<36x64xf32> to vector<1x64xf32>
    %60 = vector.extract_strided_slice %42 {offsets = [11, 0], sizes = [1, 64], strides = [1, 1]} : vector<36x64xf32> to vector<1x64xf32>
    %61 = arith.maximumf %59, %60 : vector<1x64xf32>
    %62 = vector.extract_strided_slice %42 {offsets = [12, 0], sizes = [1, 64], strides = [1, 1]} : vector<36x64xf32> to vector<1x64xf32>
    %63 = vector.extract_strided_slice %42 {offsets = [13, 0], sizes = [1, 64], strides = [1, 1]} : vector<36x64xf32> to vector<1x64xf32>
    %64 = arith.maximumf %62, %63 : vector<1x64xf32>
    %65 = vector.extract_strided_slice %42 {offsets = [14, 0], sizes = [1, 64], strides = [1, 1]} : vector<36x64xf32> to vector<1x64xf32>
    %66 = vector.extract_strided_slice %42 {offsets = [15, 0], sizes = [1, 64], strides = [1, 1]} : vector<36x64xf32> to vector<1x64xf32>
    %67 = arith.maximumf %65, %66 : vector<1x64xf32>
    %68 = tpu.concatenate %46, %49, %52, %55, %58, %61, %64, %67 in 0 : vector<1x64xf32>, vector<1x64xf32>, vector<1x64xf32>, vector<1x64xf32>, vector<1x64xf32>, vector<1x64xf32>, vector<1x64xf32>, vector<1x64xf32> -> vector<8x64xf32>
    %69 = vector.extract_strided_slice %42 {offsets = [20, 0], sizes = [1, 64], strides = [1, 1]} : vector<36x64xf32> to vector<1x64xf32>
    %70 = vector.extract_strided_slice %42 {offsets = [21, 0], sizes = [1, 64], strides = [1, 1]} : vector<36x64xf32> to vector<1x64xf32>
    %71 = arith.maximumf %69, %70 : vector<1x64xf32>
    %72 = vector.extract_strided_slice %42 {offsets = [22, 0], sizes = [1, 64], strides = [1, 1]} : vector<36x64xf32> to vector<1x64xf32>
    %73 = vector.extract_strided_slice %42 {offsets = [23, 0], sizes = [1, 64], strides = [1, 1]} : vector<36x64xf32> to vector<1x64xf32>
    %74 = arith.maximumf %72, %73 : vector<1x64xf32>
    %75 = vector.extract_strided_slice %42 {offsets = [24, 0], sizes = [1, 64], strides = [1, 1]} : vector<36x64xf32> to vector<1x64xf32>
    %76 = vector.extract_strided_slice %42 {offsets = [25, 0], sizes = [1, 64], strides = [1, 1]} : vector<36x64xf32> to vector<1x64xf32>
    %77 = arith.maximumf %75, %76 : vector<1x64xf32>
    %78 = vector.extract_strided_slice %42 {offsets = [26, 0], sizes = [1, 64], strides = [1, 1]} : vector<36x64xf32> to vector<1x64xf32>
    %79 = vector.extract_strided_slice %42 {offsets = [27, 0], sizes = [1, 64], strides = [1, 1]} : vector<36x64xf32> to vector<1x64xf32>
    %80 = arith.maximumf %78, %79 : vector<1x64xf32>
    %81 = vector.extract_strided_slice %42 {offsets = [28, 0], sizes = [1, 64], strides = [1, 1]} : vector<36x64xf32> to vector<1x64xf32>
    %82 = vector.extract_strided_slice %42 {offsets = [29, 0], sizes = [1, 64], strides = [1, 1]} : vector<36x64xf32> to vector<1x64xf32>
    %83 = arith.maximumf %81, %82 : vector<1x64xf32>
    %84 = vector.extract_strided_slice %42 {offsets = [30, 0], sizes = [1, 64], strides = [1, 1]} : vector<36x64xf32> to vector<1x64xf32>
    %85 = vector.extract_strided_slice %42 {offsets = [31, 0], sizes = [1, 64], strides = [1, 1]} : vector<36x64xf32> to vector<1x64xf32>
    %86 = arith.maximumf %84, %85 : vector<1x64xf32>
    %87 = vector.extract_strided_slice %42 {offsets = [32, 0], sizes = [1, 64], strides = [1, 1]} : vector<36x64xf32> to vector<1x64xf32>
    %88 = vector.extract_strided_slice %42 {offsets = [33, 0], sizes = [1, 64], strides = [1, 1]} : vector<36x64xf32> to vector<1x64xf32>
    %89 = arith.maximumf %87, %88 : vector<1x64xf32>
    %90 = vector.extract_strided_slice %42 {offsets = [34, 0], sizes = [1, 64], strides = [1, 1]} : vector<36x64xf32> to vector<1x64xf32>
    %91 = vector.extract_strided_slice %42 {offsets = [35, 0], sizes = [1, 64], strides = [1, 1]} : vector<36x64xf32> to vector<1x64xf32>
    %92 = arith.maximumf %90, %91 : vector<1x64xf32>
    %93 = tpu.concatenate %71, %74, %77, %80, %83, %86, %89, %92 in 0 : vector<1x64xf32>, vector<1x64xf32>, vector<1x64xf32>, vector<1x64xf32>, vector<1x64xf32>, vector<1x64xf32>, vector<1x64xf32>, vector<1x64xf32> -> vector<8x64xf32>
    %94 = tpu.concatenate %43, %68, %43, %43, %93, %43 in 0 : vector<2x64xf32>, vector<8x64xf32>, vector<2x64xf32>, vector<2x64xf32>, vector<8x64xf32>, vector<2x64xf32> -> vector<24x64xf32>
    %95 = vector.extract_strided_slice %94 {offsets = [0, 0], sizes = [20, 64], strides = [1, 1]} : vector<24x64xf32> to vector<20x64xf32>
    %c0_27 = arith.constant 0 : index
    %c0_28 = arith.constant 0 : index
    %c0_29 = arith.constant 0 : index
    %96 = vector.load %arg4[%c0_27, %c0_28, %c0_29] : memref<5x64x128xbf16, #tpu.memory_space<vmem>>, vector<1x64x128xbf16>
    %97 = vector.shape_cast %96 : vector<1x64x128xbf16> to vector<64x128xbf16>
    %98 = arith.truncf %95 : vector<20x64xf32> to vector<20x64xbf16>
    %cst_30 = arith.constant dense<0.000000e+00> : vector<20x128xf32>
    %99 = tpu.matmul %98, %97, %cst_30 {dimension_numbers = #tpu.dot_dimension_numbers<[1], [0], [0], [1], [0, 0, 1, 1], [], []>} : vector<20x64xbf16>, vector<64x128xbf16>, vector<20x128xf32> -> vector<20x128xf32>
    %100 = vector.extract_strided_slice %94 {offsets = [1, 0], sizes = [20, 64], strides = [1, 1]} : vector<24x64xf32> to vector<20x64xf32>
    %c1_31 = arith.constant 1 : index
    %c0_32 = arith.constant 0 : index
    %c0_33 = arith.constant 0 : index
    %101 = vector.load %arg4[%c1_31, %c0_32, %c0_33] : memref<5x64x128xbf16, #tpu.memory_space<vmem>>, vector<1x64x128xbf16>
    %102 = vector.shape_cast %101 : vector<1x64x128xbf16> to vector<64x128xbf16>
    %103 = arith.truncf %100 : vector<20x64xf32> to vector<20x64xbf16>
    %cst_34 = arith.constant dense<0.000000e+00> : vector<20x128xf32>
    %104 = tpu.matmul %103, %102, %cst_34 {dimension_numbers = #tpu.dot_dimension_numbers<[1], [0], [0], [1], [0, 0, 1, 1], [], []>} : vector<20x64xbf16>, vector<64x128xbf16>, vector<20x128xf32> -> vector<20x128xf32>
    %105 = arith.addf %99, %104 : vector<20x128xf32>
    %106 = vector.extract_strided_slice %94 {offsets = [2, 0], sizes = [20, 64], strides = [1, 1]} : vector<24x64xf32> to vector<20x64xf32>
    %c2_35 = arith.constant 2 : index
    %c0_36 = arith.constant 0 : index
    %c0_37 = arith.constant 0 : index
    %107 = vector.load %arg4[%c2_35, %c0_36, %c0_37] : memref<5x64x128xbf16, #tpu.memory_space<vmem>>, vector<1x64x128xbf16>
    %108 = vector.shape_cast %107 : vector<1x64x128xbf16> to vector<64x128xbf16>
    %109 = arith.truncf %106 : vector<20x64xf32> to vector<20x64xbf16>
    %cst_38 = arith.constant dense<0.000000e+00> : vector<20x128xf32>
    %110 = tpu.matmul %109, %108, %cst_38 {dimension_numbers = #tpu.dot_dimension_numbers<[1], [0], [0], [1], [0, 0, 1, 1], [], []>} : vector<20x64xbf16>, vector<64x128xbf16>, vector<20x128xf32> -> vector<20x128xf32>
    %111 = arith.addf %105, %110 : vector<20x128xf32>
    %112 = vector.extract_strided_slice %94 {offsets = [3, 0], sizes = [20, 64], strides = [1, 1]} : vector<24x64xf32> to vector<20x64xf32>
    %c3_39 = arith.constant 3 : index
    %c0_40 = arith.constant 0 : index
    %c0_41 = arith.constant 0 : index
    %113 = vector.load %arg4[%c3_39, %c0_40, %c0_41] : memref<5x64x128xbf16, #tpu.memory_space<vmem>>, vector<1x64x128xbf16>
    %114 = vector.shape_cast %113 : vector<1x64x128xbf16> to vector<64x128xbf16>
    %115 = arith.truncf %112 : vector<20x64xf32> to vector<20x64xbf16>
    %cst_42 = arith.constant dense<0.000000e+00> : vector<20x128xf32>
    %116 = tpu.matmul %115, %114, %cst_42 {dimension_numbers = #tpu.dot_dimension_numbers<[1], [0], [0], [1], [0, 0, 1, 1], [], []>} : vector<20x64xbf16>, vector<64x128xbf16>, vector<20x128xf32> -> vector<20x128xf32>
    %117 = arith.addf %111, %116 : vector<20x128xf32>
    %118 = vector.extract_strided_slice %94 {offsets = [4, 0], sizes = [20, 64], strides = [1, 1]} : vector<24x64xf32> to vector<20x64xf32>
    %c4_43 = arith.constant 4 : index
    %c0_44 = arith.constant 0 : index
    %c0_45 = arith.constant 0 : index
    %119 = vector.load %arg4[%c4_43, %c0_44, %c0_45] : memref<5x64x128xbf16, #tpu.memory_space<vmem>>, vector<1x64x128xbf16>
    %120 = vector.shape_cast %119 : vector<1x64x128xbf16> to vector<64x128xbf16>
    %121 = arith.truncf %118 : vector<20x64xf32> to vector<20x64xbf16>
    %cst_46 = arith.constant dense<0.000000e+00> : vector<20x128xf32>
    %122 = tpu.matmul %121, %120, %cst_46 {dimension_numbers = #tpu.dot_dimension_numbers<[1], [0], [0], [1], [0, 0, 1, 1], [], []>} : vector<20x64xbf16>, vector<64x128xbf16>, vector<20x128xf32> -> vector<20x128xf32>
    %123 = arith.addf %117, %122 : vector<20x128xf32>
    %c0_47 = arith.constant 0 : index
    %c0_48 = arith.constant 0 : index
    %124 = vector.load %arg5[%c0_47, %c0_48] : memref<1x128xf32, #tpu.memory_space<vmem>>, vector<1x128xf32>
    %125 = vector.broadcast %124 : vector<1x128xf32> to vector<20x128xf32>
    %126 = arith.mulf %123, %125 : vector<20x128xf32>
    %c0_49 = arith.constant 0 : index
    %c0_50 = arith.constant 0 : index
    %127 = vector.load %arg6[%c0_49, %c0_50] : memref<1x128xf32, #tpu.memory_space<vmem>>, vector<1x128xf32>
    %128 = vector.broadcast %127 : vector<1x128xf32> to vector<20x128xf32>
    %129 = arith.addf %126, %128 : vector<20x128xf32>
    %cst_51 = arith.constant 0.000000e+00 : f32
    %130 = vector.broadcast %cst_51 : f32 to vector<20x128xf32>
    %131 = arith.maximumf %129, %130 : vector<20x128xf32>
    %132 = vector.extract_strided_slice %131 {offsets = [0, 0], sizes = [1, 128], strides = [1, 1]} : vector<20x128xf32> to vector<1x128xf32>
    %133 = vector.extract_strided_slice %131 {offsets = [1, 0], sizes = [1, 128], strides = [1, 1]} : vector<20x128xf32> to vector<1x128xf32>
    %134 = arith.maximumf %132, %133 : vector<1x128xf32>
    %135 = vector.extract_strided_slice %131 {offsets = [12, 0], sizes = [1, 128], strides = [1, 1]} : vector<20x128xf32> to vector<1x128xf32>
    %136 = vector.extract_strided_slice %131 {offsets = [13, 0], sizes = [1, 128], strides = [1, 1]} : vector<20x128xf32> to vector<1x128xf32>
    %137 = arith.maximumf %135, %136 : vector<1x128xf32>
    %138 = vector.extract_strided_slice %131 {offsets = [2, 0], sizes = [1, 128], strides = [1, 1]} : vector<20x128xf32> to vector<1x128xf32>
    %139 = vector.extract_strided_slice %131 {offsets = [3, 0], sizes = [1, 128], strides = [1, 1]} : vector<20x128xf32> to vector<1x128xf32>
    %140 = arith.maximumf %138, %139 : vector<1x128xf32>
    %141 = vector.extract_strided_slice %131 {offsets = [14, 0], sizes = [1, 128], strides = [1, 1]} : vector<20x128xf32> to vector<1x128xf32>
    %142 = vector.extract_strided_slice %131 {offsets = [15, 0], sizes = [1, 128], strides = [1, 1]} : vector<20x128xf32> to vector<1x128xf32>
    %143 = arith.maximumf %141, %142 : vector<1x128xf32>
    %144 = vector.extract_strided_slice %131 {offsets = [4, 0], sizes = [1, 128], strides = [1, 1]} : vector<20x128xf32> to vector<1x128xf32>
    %145 = vector.extract_strided_slice %131 {offsets = [5, 0], sizes = [1, 128], strides = [1, 1]} : vector<20x128xf32> to vector<1x128xf32>
    %146 = arith.maximumf %144, %145 : vector<1x128xf32>
    %147 = vector.extract_strided_slice %131 {offsets = [16, 0], sizes = [1, 128], strides = [1, 1]} : vector<20x128xf32> to vector<1x128xf32>
    %148 = vector.extract_strided_slice %131 {offsets = [17, 0], sizes = [1, 128], strides = [1, 1]} : vector<20x128xf32> to vector<1x128xf32>
    %149 = arith.maximumf %147, %148 : vector<1x128xf32>
    %150 = vector.extract_strided_slice %131 {offsets = [6, 0], sizes = [1, 128], strides = [1, 1]} : vector<20x128xf32> to vector<1x128xf32>
    %151 = vector.extract_strided_slice %131 {offsets = [7, 0], sizes = [1, 128], strides = [1, 1]} : vector<20x128xf32> to vector<1x128xf32>
    %152 = arith.maximumf %150, %151 : vector<1x128xf32>
    %153 = vector.extract_strided_slice %131 {offsets = [18, 0], sizes = [1, 128], strides = [1, 1]} : vector<20x128xf32> to vector<1x128xf32>
    %154 = vector.extract_strided_slice %131 {offsets = [19, 0], sizes = [1, 128], strides = [1, 1]} : vector<20x128xf32> to vector<1x128xf32>
    %155 = arith.maximumf %153, %154 : vector<1x128xf32>
    %156 = tpu.concatenate %134, %137, %140, %143, %146, %149, %152, %155 in 0 : vector<1x128xf32>, vector<1x128xf32>, vector<1x128xf32>, vector<1x128xf32>, vector<1x128xf32>, vector<1x128xf32>, vector<1x128xf32>, vector<1x128xf32> -> vector<8x128xf32>
    %c0_52 = arith.constant 0 : index
    %c0_53 = arith.constant 0 : index
    %157 = vector.load %arg7[%c0_52, %c0_53] : memref<128x512xbf16, #tpu.memory_space<vmem>>, vector<128x512xbf16>
    %158 = arith.truncf %156 : vector<8x128xf32> to vector<8x128xbf16>
    %cst_54 = arith.constant dense<0.000000e+00> : vector<8x512xf32>
    %159 = tpu.matmul %158, %157, %cst_54 {dimension_numbers = #tpu.dot_dimension_numbers<[1], [0], [0], [1], [0, 0, 1, 1], [], []>} : vector<8x128xbf16>, vector<128x512xbf16>, vector<8x512xf32> -> vector<8x512xf32>
    %c0_55 = arith.constant 0 : index
    %c0_56 = arith.constant 0 : index
    %160 = vector.load %arg10[%c0_55, %c0_56] : memref<1x512xf32, #tpu.memory_space<vmem>>, vector<1x512xf32>
    %161 = vector.broadcast %160 : vector<1x512xf32> to vector<8x512xf32>
    %162 = arith.addf %159, %161 : vector<8x512xf32>
    %c0_57 = arith.constant 0 : index
    %c0_58 = arith.constant 0 : index
    %163 = vector.load %arg8[%c0_57, %c0_58] : memref<128x512xbf16, #tpu.memory_space<vmem>>, vector<128x512xbf16>
    %164 = arith.truncf %156 : vector<8x128xf32> to vector<8x128xbf16>
    %cst_59 = arith.constant dense<0.000000e+00> : vector<8x512xf32>
    %165 = tpu.matmul %164, %163, %cst_59 {dimension_numbers = #tpu.dot_dimension_numbers<[1], [0], [0], [1], [0, 0, 1, 1], [], []>} : vector<8x128xbf16>, vector<128x512xbf16>, vector<8x512xf32> -> vector<8x512xf32>
    %cst_60 = arith.constant 0.000000e+00 : f32
    %166 = vector.broadcast %cst_60 : f32 to vector<2x128xf32>
    %cst_61 = arith.constant 0.000000e+00 : f32
    %167 = vector.broadcast %cst_61 : f32 to vector<2x128xf32>
    %168 = vector.extract_strided_slice %162 {offsets = [0, 0], sizes = [2, 512], strides = [1, 1]} : vector<8x512xf32> to vector<2x512xf32>
    %169 = vector.extract_strided_slice %165 {offsets = [6, 0], sizes = [2, 512], strides = [1, 1]} : vector<8x512xf32> to vector<2x512xf32>
    %170 = arith.addf %168, %169 : vector<2x512xf32>
    %c0_62 = arith.constant 0 : index
    %c0_63 = arith.constant 0 : index
    %171 = vector.load %arg9[%c0_62, %c0_63] : memref<128x512xbf16, #tpu.memory_space<vmem>>, vector<128x512xbf16>
    %172 = arith.truncf %166 : vector<2x128xf32> to vector<2x128xbf16>
    %cst_64 = arith.constant dense<0.000000e+00> : vector<2x512xf32>
    %173 = tpu.matmul %172, %171, %cst_64 {dimension_numbers = #tpu.dot_dimension_numbers<[1], [0], [0], [1], [0, 0, 1, 1], [], []>} : vector<2x128xbf16>, vector<128x512xbf16>, vector<2x512xf32> -> vector<2x512xf32>
    %174 = arith.addf %170, %173 : vector<2x512xf32>
    %175 = vector.extract_strided_slice %174 {offsets = [0, 0], sizes = [2, 128], strides = [1, 1]} : vector<2x512xf32> to vector<2x128xf32>
    %176 = arith.negf %175 : vector<2x128xf32>
    %177 = math.exp %176 : vector<2x128xf32>
    %cst_65 = arith.constant 1.000000e+00 : f32
    %178 = vector.broadcast %cst_65 : f32 to vector<2x128xf32>
    %179 = arith.addf %178, %177 : vector<2x128xf32>
    %180 = arith.divf %178, %179 : vector<2x128xf32>
    %181 = vector.extract_strided_slice %174 {offsets = [0, 128], sizes = [2, 128], strides = [1, 1]} : vector<2x512xf32> to vector<2x128xf32>
    %182 = arith.negf %181 : vector<2x128xf32>
    %183 = math.exp %182 : vector<2x128xf32>
    %cst_66 = arith.constant 1.000000e+00 : f32
    %184 = vector.broadcast %cst_66 : f32 to vector<2x128xf32>
    %185 = arith.addf %184, %183 : vector<2x128xf32>
    %186 = arith.divf %184, %185 : vector<2x128xf32>
    %187 = vector.extract_strided_slice %174 {offsets = [0, 256], sizes = [2, 128], strides = [1, 1]} : vector<2x512xf32> to vector<2x128xf32>
    %188 = math.tanh %187 : vector<2x128xf32>
    %189 = vector.extract_strided_slice %174 {offsets = [0, 384], sizes = [2, 128], strides = [1, 1]} : vector<2x512xf32> to vector<2x128xf32>
    %190 = arith.negf %189 : vector<2x128xf32>
    %191 = math.exp %190 : vector<2x128xf32>
    %cst_67 = arith.constant 1.000000e+00 : f32
    %192 = vector.broadcast %cst_67 : f32 to vector<2x128xf32>
    %193 = arith.addf %192, %191 : vector<2x128xf32>
    %194 = arith.divf %192, %193 : vector<2x128xf32>
    %195 = arith.mulf %186, %167 : vector<2x128xf32>
    %196 = arith.mulf %180, %188 : vector<2x128xf32>
    %197 = arith.addf %195, %196 : vector<2x128xf32>
    %198 = math.tanh %197 : vector<2x128xf32>
    %199 = arith.mulf %194, %198 : vector<2x128xf32>
    %200 = vector.extract_strided_slice %162 {offsets = [2, 0], sizes = [2, 512], strides = [1, 1]} : vector<8x512xf32> to vector<2x512xf32>
    %201 = vector.extract_strided_slice %165 {offsets = [4, 0], sizes = [2, 512], strides = [1, 1]} : vector<8x512xf32> to vector<2x512xf32>
    %202 = arith.addf %200, %201 : vector<2x512xf32>
    %c0_68 = arith.constant 0 : index
    %c0_69 = arith.constant 0 : index
    %203 = vector.load %arg9[%c0_68, %c0_69] : memref<128x512xbf16, #tpu.memory_space<vmem>>, vector<128x512xbf16>
    %204 = arith.truncf %199 : vector<2x128xf32> to vector<2x128xbf16>
    %cst_70 = arith.constant dense<0.000000e+00> : vector<2x512xf32>
    %205 = tpu.matmul %204, %203, %cst_70 {dimension_numbers = #tpu.dot_dimension_numbers<[1], [0], [0], [1], [0, 0, 1, 1], [], []>} : vector<2x128xbf16>, vector<128x512xbf16>, vector<2x512xf32> -> vector<2x512xf32>
    %206 = arith.addf %202, %205 : vector<2x512xf32>
    %207 = vector.extract_strided_slice %206 {offsets = [0, 0], sizes = [2, 128], strides = [1, 1]} : vector<2x512xf32> to vector<2x128xf32>
    %208 = arith.negf %207 : vector<2x128xf32>
    %209 = math.exp %208 : vector<2x128xf32>
    %cst_71 = arith.constant 1.000000e+00 : f32
    %210 = vector.broadcast %cst_71 : f32 to vector<2x128xf32>
    %211 = arith.addf %210, %209 : vector<2x128xf32>
    %212 = arith.divf %210, %211 : vector<2x128xf32>
    %213 = vector.extract_strided_slice %206 {offsets = [0, 128], sizes = [2, 128], strides = [1, 1]} : vector<2x512xf32> to vector<2x128xf32>
    %214 = arith.negf %213 : vector<2x128xf32>
    %215 = math.exp %214 : vector<2x128xf32>
    %cst_72 = arith.constant 1.000000e+00 : f32
    %216 = vector.broadcast %cst_72 : f32 to vector<2x128xf32>
    %217 = arith.addf %216, %215 : vector<2x128xf32>
    %218 = arith.divf %216, %217 : vector<2x128xf32>
    %219 = vector.extract_strided_slice %206 {offsets = [0, 256], sizes = [2, 128], strides = [1, 1]} : vector<2x512xf32> to vector<2x128xf32>
    %220 = math.tanh %219 : vector<2x128xf32>
    %221 = vector.extract_strided_slice %206 {offsets = [0, 384], sizes = [2, 128], strides = [1, 1]} : vector<2x512xf32> to vector<2x128xf32>
    %222 = arith.negf %221 : vector<2x128xf32>
    %223 = math.exp %222 : vector<2x128xf32>
    %cst_73 = arith.constant 1.000000e+00 : f32
    %224 = vector.broadcast %cst_73 : f32 to vector<2x128xf32>
    %225 = arith.addf %224, %223 : vector<2x128xf32>
    %226 = arith.divf %224, %225 : vector<2x128xf32>
    %227 = arith.mulf %218, %197 : vector<2x128xf32>
    %228 = arith.mulf %212, %220 : vector<2x128xf32>
    %229 = arith.addf %227, %228 : vector<2x128xf32>
    %230 = math.tanh %229 : vector<2x128xf32>
    %231 = arith.mulf %226, %230 : vector<2x128xf32>
    %232 = vector.extract_strided_slice %162 {offsets = [4, 0], sizes = [2, 512], strides = [1, 1]} : vector<8x512xf32> to vector<2x512xf32>
    %233 = vector.extract_strided_slice %165 {offsets = [2, 0], sizes = [2, 512], strides = [1, 1]} : vector<8x512xf32> to vector<2x512xf32>
    %234 = arith.addf %232, %233 : vector<2x512xf32>
    %c0_74 = arith.constant 0 : index
    %c0_75 = arith.constant 0 : index
    %235 = vector.load %arg9[%c0_74, %c0_75] : memref<128x512xbf16, #tpu.memory_space<vmem>>, vector<128x512xbf16>
    %236 = arith.truncf %231 : vector<2x128xf32> to vector<2x128xbf16>
    %cst_76 = arith.constant dense<0.000000e+00> : vector<2x512xf32>
    %237 = tpu.matmul %236, %235, %cst_76 {dimension_numbers = #tpu.dot_dimension_numbers<[1], [0], [0], [1], [0, 0, 1, 1], [], []>} : vector<2x128xbf16>, vector<128x512xbf16>, vector<2x512xf32> -> vector<2x512xf32>
    %238 = arith.addf %234, %237 : vector<2x512xf32>
    %239 = vector.extract_strided_slice %238 {offsets = [0, 0], sizes = [2, 128], strides = [1, 1]} : vector<2x512xf32> to vector<2x128xf32>
    %240 = arith.negf %239 : vector<2x128xf32>
    %241 = math.exp %240 : vector<2x128xf32>
    %cst_77 = arith.constant 1.000000e+00 : f32
    %242 = vector.broadcast %cst_77 : f32 to vector<2x128xf32>
    %243 = arith.addf %242, %241 : vector<2x128xf32>
    %244 = arith.divf %242, %243 : vector<2x128xf32>
    %245 = vector.extract_strided_slice %238 {offsets = [0, 128], sizes = [2, 128], strides = [1, 1]} : vector<2x512xf32> to vector<2x128xf32>
    %246 = arith.negf %245 : vector<2x128xf32>
    %247 = math.exp %246 : vector<2x128xf32>
    %cst_78 = arith.constant 1.000000e+00 : f32
    %248 = vector.broadcast %cst_78 : f32 to vector<2x128xf32>
    %249 = arith.addf %248, %247 : vector<2x128xf32>
    %250 = arith.divf %248, %249 : vector<2x128xf32>
    %251 = vector.extract_strided_slice %238 {offsets = [0, 256], sizes = [2, 128], strides = [1, 1]} : vector<2x512xf32> to vector<2x128xf32>
    %252 = math.tanh %251 : vector<2x128xf32>
    %253 = vector.extract_strided_slice %238 {offsets = [0, 384], sizes = [2, 128], strides = [1, 1]} : vector<2x512xf32> to vector<2x128xf32>
    %254 = arith.negf %253 : vector<2x128xf32>
    %255 = math.exp %254 : vector<2x128xf32>
    %cst_79 = arith.constant 1.000000e+00 : f32
    %256 = vector.broadcast %cst_79 : f32 to vector<2x128xf32>
    %257 = arith.addf %256, %255 : vector<2x128xf32>
    %258 = arith.divf %256, %257 : vector<2x128xf32>
    %259 = arith.mulf %250, %229 : vector<2x128xf32>
    %260 = arith.mulf %244, %252 : vector<2x128xf32>
    %261 = arith.addf %259, %260 : vector<2x128xf32>
    %262 = math.tanh %261 : vector<2x128xf32>
    %263 = arith.mulf %258, %262 : vector<2x128xf32>
    %264 = vector.extract_strided_slice %162 {offsets = [6, 0], sizes = [2, 512], strides = [1, 1]} : vector<8x512xf32> to vector<2x512xf32>
    %265 = vector.extract_strided_slice %165 {offsets = [0, 0], sizes = [2, 512], strides = [1, 1]} : vector<8x512xf32> to vector<2x512xf32>
    %266 = arith.addf %264, %265 : vector<2x512xf32>
    %c0_80 = arith.constant 0 : index
    %c0_81 = arith.constant 0 : index
    %267 = vector.load %arg9[%c0_80, %c0_81] : memref<128x512xbf16, #tpu.memory_space<vmem>>, vector<128x512xbf16>
    %268 = arith.truncf %263 : vector<2x128xf32> to vector<2x128xbf16>
    %cst_82 = arith.constant dense<0.000000e+00> : vector<2x512xf32>
    %269 = tpu.matmul %268, %267, %cst_82 {dimension_numbers = #tpu.dot_dimension_numbers<[1], [0], [0], [1], [0, 0, 1, 1], [], []>} : vector<2x128xbf16>, vector<128x512xbf16>, vector<2x512xf32> -> vector<2x512xf32>
    %270 = arith.addf %266, %269 : vector<2x512xf32>
    %271 = vector.extract_strided_slice %270 {offsets = [0, 0], sizes = [2, 128], strides = [1, 1]} : vector<2x512xf32> to vector<2x128xf32>
    %272 = arith.negf %271 : vector<2x128xf32>
    %273 = math.exp %272 : vector<2x128xf32>
    %cst_83 = arith.constant 1.000000e+00 : f32
    %274 = vector.broadcast %cst_83 : f32 to vector<2x128xf32>
    %275 = arith.addf %274, %273 : vector<2x128xf32>
    %276 = arith.divf %274, %275 : vector<2x128xf32>
    %277 = vector.extract_strided_slice %270 {offsets = [0, 128], sizes = [2, 128], strides = [1, 1]} : vector<2x512xf32> to vector<2x128xf32>
    %278 = arith.negf %277 : vector<2x128xf32>
    %279 = math.exp %278 : vector<2x128xf32>
    %cst_84 = arith.constant 1.000000e+00 : f32
    %280 = vector.broadcast %cst_84 : f32 to vector<2x128xf32>
    %281 = arith.addf %280, %279 : vector<2x128xf32>
    %282 = arith.divf %280, %281 : vector<2x128xf32>
    %283 = vector.extract_strided_slice %270 {offsets = [0, 256], sizes = [2, 128], strides = [1, 1]} : vector<2x512xf32> to vector<2x128xf32>
    %284 = math.tanh %283 : vector<2x128xf32>
    %285 = vector.extract_strided_slice %270 {offsets = [0, 384], sizes = [2, 128], strides = [1, 1]} : vector<2x512xf32> to vector<2x128xf32>
    %286 = arith.negf %285 : vector<2x128xf32>
    %287 = math.exp %286 : vector<2x128xf32>
    %cst_85 = arith.constant 1.000000e+00 : f32
    %288 = vector.broadcast %cst_85 : f32 to vector<2x128xf32>
    %289 = arith.addf %288, %287 : vector<2x128xf32>
    %290 = arith.divf %288, %289 : vector<2x128xf32>
    %291 = arith.mulf %282, %261 : vector<2x128xf32>
    %292 = arith.mulf %276, %284 : vector<2x128xf32>
    %293 = arith.addf %291, %292 : vector<2x128xf32>
    %294 = math.tanh %293 : vector<2x128xf32>
    %295 = arith.mulf %290, %294 : vector<2x128xf32>
    %296 = vector.extract_strided_slice %199 {offsets = [0, 0], sizes = [2, 64], strides = [1, 1]} : vector<2x128xf32> to vector<2x64xf32>
    %297 = vector.extract_strided_slice %295 {offsets = [0, 64], sizes = [2, 64], strides = [1, 1]} : vector<2x128xf32> to vector<2x64xf32>
    %298 = tpu.concatenate %296, %297 in 1 : vector<2x64xf32>, vector<2x64xf32> -> vector<2x128xf32>
    %299 = vector.extract_strided_slice %231 {offsets = [0, 0], sizes = [2, 64], strides = [1, 1]} : vector<2x128xf32> to vector<2x64xf32>
    %300 = vector.extract_strided_slice %263 {offsets = [0, 64], sizes = [2, 64], strides = [1, 1]} : vector<2x128xf32> to vector<2x64xf32>
    %301 = tpu.concatenate %299, %300 in 1 : vector<2x64xf32>, vector<2x64xf32> -> vector<2x128xf32>
    %302 = vector.extract_strided_slice %263 {offsets = [0, 0], sizes = [2, 64], strides = [1, 1]} : vector<2x128xf32> to vector<2x64xf32>
    %303 = vector.extract_strided_slice %231 {offsets = [0, 64], sizes = [2, 64], strides = [1, 1]} : vector<2x128xf32> to vector<2x64xf32>
    %304 = tpu.concatenate %302, %303 in 1 : vector<2x64xf32>, vector<2x64xf32> -> vector<2x128xf32>
    %305 = vector.extract_strided_slice %295 {offsets = [0, 0], sizes = [2, 64], strides = [1, 1]} : vector<2x128xf32> to vector<2x64xf32>
    %306 = vector.extract_strided_slice %199 {offsets = [0, 64], sizes = [2, 64], strides = [1, 1]} : vector<2x128xf32> to vector<2x64xf32>
    %307 = tpu.concatenate %305, %306 in 1 : vector<2x64xf32>, vector<2x64xf32> -> vector<2x128xf32>
    %308 = tpu.concatenate %298, %301, %304, %307 in 0 : vector<2x128xf32>, vector<2x128xf32>, vector<2x128xf32>, vector<2x128xf32> -> vector<8x128xf32>
    %c0_86 = arith.constant 0 : index
    %c0_87 = arith.constant 0 : index
    %309 = vector.load %arg11[%c0_86, %c0_87] : memref<128x512xbf16, #tpu.memory_space<vmem>>, vector<128x512xbf16>
    %310 = arith.truncf %308 : vector<8x128xf32> to vector<8x128xbf16>
    %cst_88 = arith.constant dense<0.000000e+00> : vector<8x512xf32>
    %311 = tpu.matmul %310, %309, %cst_88 {dimension_numbers = #tpu.dot_dimension_numbers<[1], [0], [0], [1], [0, 0, 1, 1], [], []>} : vector<8x128xbf16>, vector<128x512xbf16>, vector<8x512xf32> -> vector<8x512xf32>
    %c0_89 = arith.constant 0 : index
    %c0_90 = arith.constant 0 : index
    %312 = vector.load %arg14[%c0_89, %c0_90] : memref<1x512xf32, #tpu.memory_space<vmem>>, vector<1x512xf32>
    %313 = vector.broadcast %312 : vector<1x512xf32> to vector<8x512xf32>
    %314 = arith.addf %311, %313 : vector<8x512xf32>
    %c0_91 = arith.constant 0 : index
    %c0_92 = arith.constant 0 : index
    %315 = vector.load %arg12[%c0_91, %c0_92] : memref<128x512xbf16, #tpu.memory_space<vmem>>, vector<128x512xbf16>
    %316 = arith.truncf %308 : vector<8x128xf32> to vector<8x128xbf16>
    %cst_93 = arith.constant dense<0.000000e+00> : vector<8x512xf32>
    %317 = tpu.matmul %316, %315, %cst_93 {dimension_numbers = #tpu.dot_dimension_numbers<[1], [0], [0], [1], [0, 0, 1, 1], [], []>} : vector<8x128xbf16>, vector<128x512xbf16>, vector<8x512xf32> -> vector<8x512xf32>
    %cst_94 = arith.constant 0.000000e+00 : f32
    %318 = vector.broadcast %cst_94 : f32 to vector<2x128xf32>
    %cst_95 = arith.constant 0.000000e+00 : f32
    %319 = vector.broadcast %cst_95 : f32 to vector<2x128xf32>
    %320 = vector.extract_strided_slice %314 {offsets = [0, 0], sizes = [2, 512], strides = [1, 1]} : vector<8x512xf32> to vector<2x512xf32>
    %321 = vector.extract_strided_slice %317 {offsets = [6, 0], sizes = [2, 512], strides = [1, 1]} : vector<8x512xf32> to vector<2x512xf32>
    %322 = arith.addf %320, %321 : vector<2x512xf32>
    %c0_96 = arith.constant 0 : index
    %c0_97 = arith.constant 0 : index
    %323 = vector.load %arg13[%c0_96, %c0_97] : memref<128x512xbf16, #tpu.memory_space<vmem>>, vector<128x512xbf16>
    %324 = arith.truncf %318 : vector<2x128xf32> to vector<2x128xbf16>
    %cst_98 = arith.constant dense<0.000000e+00> : vector<2x512xf32>
    %325 = tpu.matmul %324, %323, %cst_98 {dimension_numbers = #tpu.dot_dimension_numbers<[1], [0], [0], [1], [0, 0, 1, 1], [], []>} : vector<2x128xbf16>, vector<128x512xbf16>, vector<2x512xf32> -> vector<2x512xf32>
    %326 = arith.addf %322, %325 : vector<2x512xf32>
    %327 = vector.extract_strided_slice %326 {offsets = [0, 0], sizes = [2, 128], strides = [1, 1]} : vector<2x512xf32> to vector<2x128xf32>
    %328 = arith.negf %327 : vector<2x128xf32>
    %329 = math.exp %328 : vector<2x128xf32>
    %cst_99 = arith.constant 1.000000e+00 : f32
    %330 = vector.broadcast %cst_99 : f32 to vector<2x128xf32>
    %331 = arith.addf %330, %329 : vector<2x128xf32>
    %332 = arith.divf %330, %331 : vector<2x128xf32>
    %333 = vector.extract_strided_slice %326 {offsets = [0, 128], sizes = [2, 128], strides = [1, 1]} : vector<2x512xf32> to vector<2x128xf32>
    %334 = arith.negf %333 : vector<2x128xf32>
    %335 = math.exp %334 : vector<2x128xf32>
    %cst_100 = arith.constant 1.000000e+00 : f32
    %336 = vector.broadcast %cst_100 : f32 to vector<2x128xf32>
    %337 = arith.addf %336, %335 : vector<2x128xf32>
    %338 = arith.divf %336, %337 : vector<2x128xf32>
    %339 = vector.extract_strided_slice %326 {offsets = [0, 256], sizes = [2, 128], strides = [1, 1]} : vector<2x512xf32> to vector<2x128xf32>
    %340 = math.tanh %339 : vector<2x128xf32>
    %341 = vector.extract_strided_slice %326 {offsets = [0, 384], sizes = [2, 128], strides = [1, 1]} : vector<2x512xf32> to vector<2x128xf32>
    %342 = arith.negf %341 : vector<2x128xf32>
    %343 = math.exp %342 : vector<2x128xf32>
    %cst_101 = arith.constant 1.000000e+00 : f32
    %344 = vector.broadcast %cst_101 : f32 to vector<2x128xf32>
    %345 = arith.addf %344, %343 : vector<2x128xf32>
    %346 = arith.divf %344, %345 : vector<2x128xf32>
    %347 = arith.mulf %338, %319 : vector<2x128xf32>
    %348 = arith.mulf %332, %340 : vector<2x128xf32>
    %349 = arith.addf %347, %348 : vector<2x128xf32>
    %350 = math.tanh %349 : vector<2x128xf32>
    %351 = arith.mulf %346, %350 : vector<2x128xf32>
    %352 = vector.extract_strided_slice %314 {offsets = [2, 0], sizes = [2, 512], strides = [1, 1]} : vector<8x512xf32> to vector<2x512xf32>
    %353 = vector.extract_strided_slice %317 {offsets = [4, 0], sizes = [2, 512], strides = [1, 1]} : vector<8x512xf32> to vector<2x512xf32>
    %354 = arith.addf %352, %353 : vector<2x512xf32>
    %c0_102 = arith.constant 0 : index
    %c0_103 = arith.constant 0 : index
    %355 = vector.load %arg13[%c0_102, %c0_103] : memref<128x512xbf16, #tpu.memory_space<vmem>>, vector<128x512xbf16>
    %356 = arith.truncf %351 : vector<2x128xf32> to vector<2x128xbf16>
    %cst_104 = arith.constant dense<0.000000e+00> : vector<2x512xf32>
    %357 = tpu.matmul %356, %355, %cst_104 {dimension_numbers = #tpu.dot_dimension_numbers<[1], [0], [0], [1], [0, 0, 1, 1], [], []>} : vector<2x128xbf16>, vector<128x512xbf16>, vector<2x512xf32> -> vector<2x512xf32>
    %358 = arith.addf %354, %357 : vector<2x512xf32>
    %359 = vector.extract_strided_slice %358 {offsets = [0, 0], sizes = [2, 128], strides = [1, 1]} : vector<2x512xf32> to vector<2x128xf32>
    %360 = arith.negf %359 : vector<2x128xf32>
    %361 = math.exp %360 : vector<2x128xf32>
    %cst_105 = arith.constant 1.000000e+00 : f32
    %362 = vector.broadcast %cst_105 : f32 to vector<2x128xf32>
    %363 = arith.addf %362, %361 : vector<2x128xf32>
    %364 = arith.divf %362, %363 : vector<2x128xf32>
    %365 = vector.extract_strided_slice %358 {offsets = [0, 128], sizes = [2, 128], strides = [1, 1]} : vector<2x512xf32> to vector<2x128xf32>
    %366 = arith.negf %365 : vector<2x128xf32>
    %367 = math.exp %366 : vector<2x128xf32>
    %cst_106 = arith.constant 1.000000e+00 : f32
    %368 = vector.broadcast %cst_106 : f32 to vector<2x128xf32>
    %369 = arith.addf %368, %367 : vector<2x128xf32>
    %370 = arith.divf %368, %369 : vector<2x128xf32>
    %371 = vector.extract_strided_slice %358 {offsets = [0, 256], sizes = [2, 128], strides = [1, 1]} : vector<2x512xf32> to vector<2x128xf32>
    %372 = math.tanh %371 : vector<2x128xf32>
    %373 = vector.extract_strided_slice %358 {offsets = [0, 384], sizes = [2, 128], strides = [1, 1]} : vector<2x512xf32> to vector<2x128xf32>
    %374 = arith.negf %373 : vector<2x128xf32>
    %375 = math.exp %374 : vector<2x128xf32>
    %cst_107 = arith.constant 1.000000e+00 : f32
    %376 = vector.broadcast %cst_107 : f32 to vector<2x128xf32>
    %377 = arith.addf %376, %375 : vector<2x128xf32>
    %378 = arith.divf %376, %377 : vector<2x128xf32>
    %379 = arith.mulf %370, %349 : vector<2x128xf32>
    %380 = arith.mulf %364, %372 : vector<2x128xf32>
    %381 = arith.addf %379, %380 : vector<2x128xf32>
    %382 = math.tanh %381 : vector<2x128xf32>
    %383 = arith.mulf %378, %382 : vector<2x128xf32>
    %384 = vector.extract_strided_slice %314 {offsets = [4, 0], sizes = [2, 512], strides = [1, 1]} : vector<8x512xf32> to vector<2x512xf32>
    %385 = vector.extract_strided_slice %317 {offsets = [2, 0], sizes = [2, 512], strides = [1, 1]} : vector<8x512xf32> to vector<2x512xf32>
    %386 = arith.addf %384, %385 : vector<2x512xf32>
    %c0_108 = arith.constant 0 : index
    %c0_109 = arith.constant 0 : index
    %387 = vector.load %arg13[%c0_108, %c0_109] : memref<128x512xbf16, #tpu.memory_space<vmem>>, vector<128x512xbf16>
    %388 = arith.truncf %383 : vector<2x128xf32> to vector<2x128xbf16>
    %cst_110 = arith.constant dense<0.000000e+00> : vector<2x512xf32>
    %389 = tpu.matmul %388, %387, %cst_110 {dimension_numbers = #tpu.dot_dimension_numbers<[1], [0], [0], [1], [0, 0, 1, 1], [], []>} : vector<2x128xbf16>, vector<128x512xbf16>, vector<2x512xf32> -> vector<2x512xf32>
    %390 = arith.addf %386, %389 : vector<2x512xf32>
    %391 = vector.extract_strided_slice %390 {offsets = [0, 0], sizes = [2, 128], strides = [1, 1]} : vector<2x512xf32> to vector<2x128xf32>
    %392 = arith.negf %391 : vector<2x128xf32>
    %393 = math.exp %392 : vector<2x128xf32>
    %cst_111 = arith.constant 1.000000e+00 : f32
    %394 = vector.broadcast %cst_111 : f32 to vector<2x128xf32>
    %395 = arith.addf %394, %393 : vector<2x128xf32>
    %396 = arith.divf %394, %395 : vector<2x128xf32>
    %397 = vector.extract_strided_slice %390 {offsets = [0, 128], sizes = [2, 128], strides = [1, 1]} : vector<2x512xf32> to vector<2x128xf32>
    %398 = arith.negf %397 : vector<2x128xf32>
    %399 = math.exp %398 : vector<2x128xf32>
    %cst_112 = arith.constant 1.000000e+00 : f32
    %400 = vector.broadcast %cst_112 : f32 to vector<2x128xf32>
    %401 = arith.addf %400, %399 : vector<2x128xf32>
    %402 = arith.divf %400, %401 : vector<2x128xf32>
    %403 = vector.extract_strided_slice %390 {offsets = [0, 256], sizes = [2, 128], strides = [1, 1]} : vector<2x512xf32> to vector<2x128xf32>
    %404 = math.tanh %403 : vector<2x128xf32>
    %405 = vector.extract_strided_slice %390 {offsets = [0, 384], sizes = [2, 128], strides = [1, 1]} : vector<2x512xf32> to vector<2x128xf32>
    %406 = arith.negf %405 : vector<2x128xf32>
    %407 = math.exp %406 : vector<2x128xf32>
    %cst_113 = arith.constant 1.000000e+00 : f32
    %408 = vector.broadcast %cst_113 : f32 to vector<2x128xf32>
    %409 = arith.addf %408, %407 : vector<2x128xf32>
    %410 = arith.divf %408, %409 : vector<2x128xf32>
    %411 = arith.mulf %402, %381 : vector<2x128xf32>
    %412 = arith.mulf %396, %404 : vector<2x128xf32>
    %413 = arith.addf %411, %412 : vector<2x128xf32>
    %414 = math.tanh %413 : vector<2x128xf32>
    %415 = arith.mulf %410, %414 : vector<2x128xf32>
    %416 = vector.extract_strided_slice %314 {offsets = [6, 0], sizes = [2, 512], strides = [1, 1]} : vector<8x512xf32> to vector<2x512xf32>
    %417 = vector.extract_strided_slice %317 {offsets = [0, 0], sizes = [2, 512], strides = [1, 1]} : vector<8x512xf32> to vector<2x512xf32>
    %418 = arith.addf %416, %417 : vector<2x512xf32>
    %c0_114 = arith.constant 0 : index
    %c0_115 = arith.constant 0 : index
    %419 = vector.load %arg13[%c0_114, %c0_115] : memref<128x512xbf16, #tpu.memory_space<vmem>>, vector<128x512xbf16>
    %420 = arith.truncf %415 : vector<2x128xf32> to vector<2x128xbf16>
    %cst_116 = arith.constant dense<0.000000e+00> : vector<2x512xf32>
    %421 = tpu.matmul %420, %419, %cst_116 {dimension_numbers = #tpu.dot_dimension_numbers<[1], [0], [0], [1], [0, 0, 1, 1], [], []>} : vector<2x128xbf16>, vector<128x512xbf16>, vector<2x512xf32> -> vector<2x512xf32>
    %422 = arith.addf %418, %421 : vector<2x512xf32>
    %423 = vector.extract_strided_slice %422 {offsets = [0, 0], sizes = [2, 128], strides = [1, 1]} : vector<2x512xf32> to vector<2x128xf32>
    %424 = arith.negf %423 : vector<2x128xf32>
    %425 = math.exp %424 : vector<2x128xf32>
    %cst_117 = arith.constant 1.000000e+00 : f32
    %426 = vector.broadcast %cst_117 : f32 to vector<2x128xf32>
    %427 = arith.addf %426, %425 : vector<2x128xf32>
    %428 = arith.divf %426, %427 : vector<2x128xf32>
    %429 = vector.extract_strided_slice %422 {offsets = [0, 128], sizes = [2, 128], strides = [1, 1]} : vector<2x512xf32> to vector<2x128xf32>
    %430 = arith.negf %429 : vector<2x128xf32>
    %431 = math.exp %430 : vector<2x128xf32>
    %cst_118 = arith.constant 1.000000e+00 : f32
    %432 = vector.broadcast %cst_118 : f32 to vector<2x128xf32>
    %433 = arith.addf %432, %431 : vector<2x128xf32>
    %434 = arith.divf %432, %433 : vector<2x128xf32>
    %435 = vector.extract_strided_slice %422 {offsets = [0, 256], sizes = [2, 128], strides = [1, 1]} : vector<2x512xf32> to vector<2x128xf32>
    %436 = math.tanh %435 : vector<2x128xf32>
    %437 = vector.extract_strided_slice %422 {offsets = [0, 384], sizes = [2, 128], strides = [1, 1]} : vector<2x512xf32> to vector<2x128xf32>
    %438 = arith.negf %437 : vector<2x128xf32>
    %439 = math.exp %438 : vector<2x128xf32>
    %cst_119 = arith.constant 1.000000e+00 : f32
    %440 = vector.broadcast %cst_119 : f32 to vector<2x128xf32>
    %441 = arith.addf %440, %439 : vector<2x128xf32>
    %442 = arith.divf %440, %441 : vector<2x128xf32>
    %443 = arith.mulf %434, %413 : vector<2x128xf32>
    %444 = arith.mulf %428, %436 : vector<2x128xf32>
    %445 = arith.addf %443, %444 : vector<2x128xf32>
    %446 = math.tanh %445 : vector<2x128xf32>
    %447 = arith.mulf %442, %446 : vector<2x128xf32>
    %448 = vector.extract_strided_slice %351 {offsets = [0, 0], sizes = [1, 64], strides = [1, 1]} : vector<2x128xf32> to vector<1x64xf32>
    %449 = vector.extract_strided_slice %447 {offsets = [0, 64], sizes = [1, 64], strides = [1, 1]} : vector<2x128xf32> to vector<1x64xf32>
    %450 = tpu.concatenate %448, %449 in 1 : vector<1x64xf32>, vector<1x64xf32> -> vector<1x128xf32>
    %451 = vector.extract_strided_slice %383 {offsets = [0, 0], sizes = [1, 64], strides = [1, 1]} : vector<2x128xf32> to vector<1x64xf32>
    %452 = vector.extract_strided_slice %415 {offsets = [0, 64], sizes = [1, 64], strides = [1, 1]} : vector<2x128xf32> to vector<1x64xf32>
    %453 = tpu.concatenate %451, %452 in 1 : vector<1x64xf32>, vector<1x64xf32> -> vector<1x128xf32>
    %454 = vector.extract_strided_slice %415 {offsets = [0, 0], sizes = [1, 64], strides = [1, 1]} : vector<2x128xf32> to vector<1x64xf32>
    %455 = vector.extract_strided_slice %383 {offsets = [0, 64], sizes = [1, 64], strides = [1, 1]} : vector<2x128xf32> to vector<1x64xf32>
    %456 = tpu.concatenate %454, %455 in 1 : vector<1x64xf32>, vector<1x64xf32> -> vector<1x128xf32>
    %457 = vector.extract_strided_slice %447 {offsets = [0, 0], sizes = [1, 64], strides = [1, 1]} : vector<2x128xf32> to vector<1x64xf32>
    %458 = vector.extract_strided_slice %351 {offsets = [0, 64], sizes = [1, 64], strides = [1, 1]} : vector<2x128xf32> to vector<1x64xf32>
    %459 = tpu.concatenate %457, %458 in 1 : vector<1x64xf32>, vector<1x64xf32> -> vector<1x128xf32>
    %460 = vector.extract_strided_slice %351 {offsets = [1, 0], sizes = [1, 64], strides = [1, 1]} : vector<2x128xf32> to vector<1x64xf32>
    %461 = vector.extract_strided_slice %447 {offsets = [1, 64], sizes = [1, 64], strides = [1, 1]} : vector<2x128xf32> to vector<1x64xf32>
    %462 = tpu.concatenate %460, %461 in 1 : vector<1x64xf32>, vector<1x64xf32> -> vector<1x128xf32>
    %463 = vector.extract_strided_slice %383 {offsets = [1, 0], sizes = [1, 64], strides = [1, 1]} : vector<2x128xf32> to vector<1x64xf32>
    %464 = vector.extract_strided_slice %415 {offsets = [1, 64], sizes = [1, 64], strides = [1, 1]} : vector<2x128xf32> to vector<1x64xf32>
    %465 = tpu.concatenate %463, %464 in 1 : vector<1x64xf32>, vector<1x64xf32> -> vector<1x128xf32>
    %466 = vector.extract_strided_slice %415 {offsets = [1, 0], sizes = [1, 64], strides = [1, 1]} : vector<2x128xf32> to vector<1x64xf32>
    %467 = vector.extract_strided_slice %383 {offsets = [1, 64], sizes = [1, 64], strides = [1, 1]} : vector<2x128xf32> to vector<1x64xf32>
    %468 = tpu.concatenate %466, %467 in 1 : vector<1x64xf32>, vector<1x64xf32> -> vector<1x128xf32>
    %469 = vector.extract_strided_slice %447 {offsets = [1, 0], sizes = [1, 64], strides = [1, 1]} : vector<2x128xf32> to vector<1x64xf32>
    %470 = vector.extract_strided_slice %351 {offsets = [1, 64], sizes = [1, 64], strides = [1, 1]} : vector<2x128xf32> to vector<1x64xf32>
    %471 = tpu.concatenate %469, %470 in 1 : vector<1x64xf32>, vector<1x64xf32> -> vector<1x128xf32>
    %472 = tpu.concatenate %450, %453, %456, %459, %462, %465, %468, %471 in 0 : vector<1x128xf32>, vector<1x128xf32>, vector<1x128xf32>, vector<1x128xf32>, vector<1x128xf32>, vector<1x128xf32>, vector<1x128xf32>, vector<1x128xf32> -> vector<8x128xf32>
    %c0_120 = arith.constant 0 : index
    %c0_121 = arith.constant 0 : index
    %473 = vector.load %arg15[%c0_120, %c0_121] : memref<128x384xbf16, #tpu.memory_space<vmem>>, vector<128x384xbf16>
    %474 = arith.truncf %472 : vector<8x128xf32> to vector<8x128xbf16>
    %cst_122 = arith.constant dense<0.000000e+00> : vector<8x384xf32>
    %475 = tpu.matmul %474, %473, %cst_122 {dimension_numbers = #tpu.dot_dimension_numbers<[1], [0], [0], [1], [0, 0, 1, 1], [], []>} : vector<8x128xbf16>, vector<128x384xbf16>, vector<8x384xf32> -> vector<8x384xf32>
    %c0_123 = arith.constant 0 : index
    %c0_124 = arith.constant 0 : index
    %476 = vector.load %arg16[%c0_123, %c0_124] : memref<1x384xf32, #tpu.memory_space<vmem>>, vector<1x384xf32>
    %477 = vector.broadcast %476 : vector<1x384xf32> to vector<8x384xf32>
    %478 = arith.addf %475, %477 : vector<8x384xf32>
    %479 = vector.extract_strided_slice %478 {offsets = [0, 0], sizes = [4, 128], strides = [1, 1]} : vector<8x384xf32> to vector<4x128xf32>
    %cst_125 = arith.constant 0.176776692 : f32
    %480 = vector.broadcast %cst_125 : f32 to vector<4x128xf32>
    %481 = arith.mulf %479, %480 : vector<4x128xf32>
    %482 = vector.extract_strided_slice %478 {offsets = [0, 128], sizes = [4, 128], strides = [1, 1]} : vector<8x384xf32> to vector<4x128xf32>
    %483 = vector.extract_strided_slice %478 {offsets = [0, 256], sizes = [4, 128], strides = [1, 1]} : vector<8x384xf32> to vector<4x128xf32>
    %484 = vector.extract_strided_slice %481 {offsets = [0, 0], sizes = [4, 32], strides = [1, 1]} : vector<4x128xf32> to vector<4x32xf32>
    %485 = vector.extract_strided_slice %482 {offsets = [0, 0], sizes = [4, 32], strides = [1, 1]} : vector<4x128xf32> to vector<4x32xf32>
    %486 = arith.truncf %484 : vector<4x32xf32> to vector<4x32xbf16>
    %487 = arith.truncf %485 : vector<4x32xf32> to vector<4x32xbf16>
    %cst_126 = arith.constant dense<0.000000e+00> : vector<4x4xf32>
    %488 = tpu.matmul %486, %487, %cst_126 {dimension_numbers = #tpu.dot_dimension_numbers<[1], [1], [0], [0], [0, 0, 1, 0], [], []>} : vector<4x32xbf16>, vector<4x32xbf16>, vector<4x4xf32> -> vector<4x4xf32>
    %cst_127 = arith.constant dense<0xFF800000> : vector<4xf32>
    %489 = vector.multi_reduction <maximumf>, %488, %cst_127 [1] : vector<4x4xf32> to vector<4xf32>
    %490 = vector.shape_cast %489 : vector<4xf32> to vector<4x1xf32>
    %491 = vector.broadcast %490 : vector<4x1xf32> to vector<4x4xf32>
    %492 = arith.subf %488, %491 : vector<4x4xf32>
    %493 = math.exp %492 : vector<4x4xf32>
    %cst_128 = arith.constant dense<0.000000e+00> : vector<4xf32>
    %494 = vector.multi_reduction <add>, %493, %cst_128 [1] : vector<4x4xf32> to vector<4xf32>
    %495 = vector.shape_cast %494 : vector<4xf32> to vector<4x1xf32>
    %496 = vector.broadcast %495 : vector<4x1xf32> to vector<4x4xf32>
    %497 = arith.divf %493, %496 : vector<4x4xf32>
    %cst_129 = arith.constant dense<0.000000e+00> : vector<4xf32>
    %498 = vector.multi_reduction <add>, %497, %cst_129 [0] : vector<4x4xf32> to vector<4xf32>
    %499 = vector.shape_cast %498 : vector<4xf32> to vector<1x4xf32>
    %cst_130 = arith.constant 4.000000e+00 : f32
    %500 = vector.broadcast %cst_130 : f32 to vector<1x4xf32>
    %501 = arith.divf %499, %500 : vector<1x4xf32>
    %502 = vector.extract_strided_slice %483 {offsets = [0, 0], sizes = [4, 32], strides = [1, 1]} : vector<4x128xf32> to vector<4x32xf32>
    %503 = arith.truncf %501 : vector<1x4xf32> to vector<1x4xbf16>
    %504 = arith.truncf %502 : vector<4x32xf32> to vector<4x32xbf16>
    %cst_131 = arith.constant dense<0.000000e+00> : vector<1x32xf32>
    %505 = tpu.matmul %503, %504, %cst_131 {dimension_numbers = #tpu.dot_dimension_numbers<[1], [0], [0], [1], [0, 0, 1, 1], [], []>} : vector<1x4xbf16>, vector<4x32xbf16>, vector<1x32xf32> -> vector<1x32xf32>
    %506 = vector.extract_strided_slice %481 {offsets = [0, 32], sizes = [4, 32], strides = [1, 1]} : vector<4x128xf32> to vector<4x32xf32>
    %507 = vector.extract_strided_slice %482 {offsets = [0, 32], sizes = [4, 32], strides = [1, 1]} : vector<4x128xf32> to vector<4x32xf32>
    %508 = arith.truncf %506 : vector<4x32xf32> to vector<4x32xbf16>
    %509 = arith.truncf %507 : vector<4x32xf32> to vector<4x32xbf16>
    %cst_132 = arith.constant dense<0.000000e+00> : vector<4x4xf32>
    %510 = tpu.matmul %508, %509, %cst_132 {dimension_numbers = #tpu.dot_dimension_numbers<[1], [1], [0], [0], [0, 0, 1, 0], [], []>} : vector<4x32xbf16>, vector<4x32xbf16>, vector<4x4xf32> -> vector<4x4xf32>
    %cst_133 = arith.constant dense<0xFF800000> : vector<4xf32>
    %511 = vector.multi_reduction <maximumf>, %510, %cst_133 [1] : vector<4x4xf32> to vector<4xf32>
    %512 = vector.shape_cast %511 : vector<4xf32> to vector<4x1xf32>
    %513 = vector.broadcast %512 : vector<4x1xf32> to vector<4x4xf32>
    %514 = arith.subf %510, %513 : vector<4x4xf32>
    %515 = math.exp %514 : vector<4x4xf32>
    %cst_134 = arith.constant dense<0.000000e+00> : vector<4xf32>
    %516 = vector.multi_reduction <add>, %515, %cst_134 [1] : vector<4x4xf32> to vector<4xf32>
    %517 = vector.shape_cast %516 : vector<4xf32> to vector<4x1xf32>
    %518 = vector.broadcast %517 : vector<4x1xf32> to vector<4x4xf32>
    %519 = arith.divf %515, %518 : vector<4x4xf32>
    %cst_135 = arith.constant dense<0.000000e+00> : vector<4xf32>
    %520 = vector.multi_reduction <add>, %519, %cst_135 [0] : vector<4x4xf32> to vector<4xf32>
    %521 = vector.shape_cast %520 : vector<4xf32> to vector<1x4xf32>
    %cst_136 = arith.constant 4.000000e+00 : f32
    %522 = vector.broadcast %cst_136 : f32 to vector<1x4xf32>
    %523 = arith.divf %521, %522 : vector<1x4xf32>
    %524 = vector.extract_strided_slice %483 {offsets = [0, 32], sizes = [4, 32], strides = [1, 1]} : vector<4x128xf32> to vector<4x32xf32>
    %525 = arith.truncf %523 : vector<1x4xf32> to vector<1x4xbf16>
    %526 = arith.truncf %524 : vector<4x32xf32> to vector<4x32xbf16>
    %cst_137 = arith.constant dense<0.000000e+00> : vector<1x32xf32>
    %527 = tpu.matmul %525, %526, %cst_137 {dimension_numbers = #tpu.dot_dimension_numbers<[1], [0], [0], [1], [0, 0, 1, 1], [], []>} : vector<1x4xbf16>, vector<4x32xbf16>, vector<1x32xf32> -> vector<1x32xf32>
    %528 = vector.extract_strided_slice %481 {offsets = [0, 64], sizes = [4, 32], strides = [1, 1]} : vector<4x128xf32> to vector<4x32xf32>
    %529 = vector.extract_strided_slice %482 {offsets = [0, 64], sizes = [4, 32], strides = [1, 1]} : vector<4x128xf32> to vector<4x32xf32>
    %530 = arith.truncf %528 : vector<4x32xf32> to vector<4x32xbf16>
    %531 = arith.truncf %529 : vector<4x32xf32> to vector<4x32xbf16>
    %cst_138 = arith.constant dense<0.000000e+00> : vector<4x4xf32>
    %532 = tpu.matmul %530, %531, %cst_138 {dimension_numbers = #tpu.dot_dimension_numbers<[1], [1], [0], [0], [0, 0, 1, 0], [], []>} : vector<4x32xbf16>, vector<4x32xbf16>, vector<4x4xf32> -> vector<4x4xf32>
    %cst_139 = arith.constant dense<0xFF800000> : vector<4xf32>
    %533 = vector.multi_reduction <maximumf>, %532, %cst_139 [1] : vector<4x4xf32> to vector<4xf32>
    %534 = vector.shape_cast %533 : vector<4xf32> to vector<4x1xf32>
    %535 = vector.broadcast %534 : vector<4x1xf32> to vector<4x4xf32>
    %536 = arith.subf %532, %535 : vector<4x4xf32>
    %537 = math.exp %536 : vector<4x4xf32>
    %cst_140 = arith.constant dense<0.000000e+00> : vector<4xf32>
    %538 = vector.multi_reduction <add>, %537, %cst_140 [1] : vector<4x4xf32> to vector<4xf32>
    %539 = vector.shape_cast %538 : vector<4xf32> to vector<4x1xf32>
    %540 = vector.broadcast %539 : vector<4x1xf32> to vector<4x4xf32>
    %541 = arith.divf %537, %540 : vector<4x4xf32>
    %cst_141 = arith.constant dense<0.000000e+00> : vector<4xf32>
    %542 = vector.multi_reduction <add>, %541, %cst_141 [0] : vector<4x4xf32> to vector<4xf32>
    %543 = vector.shape_cast %542 : vector<4xf32> to vector<1x4xf32>
    %cst_142 = arith.constant 4.000000e+00 : f32
    %544 = vector.broadcast %cst_142 : f32 to vector<1x4xf32>
    %545 = arith.divf %543, %544 : vector<1x4xf32>
    %546 = vector.extract_strided_slice %483 {offsets = [0, 64], sizes = [4, 32], strides = [1, 1]} : vector<4x128xf32> to vector<4x32xf32>
    %547 = arith.truncf %545 : vector<1x4xf32> to vector<1x4xbf16>
    %548 = arith.truncf %546 : vector<4x32xf32> to vector<4x32xbf16>
    %cst_143 = arith.constant dense<0.000000e+00> : vector<1x32xf32>
    %549 = tpu.matmul %547, %548, %cst_143 {dimension_numbers = #tpu.dot_dimension_numbers<[1], [0], [0], [1], [0, 0, 1, 1], [], []>} : vector<1x4xbf16>, vector<4x32xbf16>, vector<1x32xf32> -> vector<1x32xf32>
    %550 = vector.extract_strided_slice %481 {offsets = [0, 96], sizes = [4, 32], strides = [1, 1]} : vector<4x128xf32> to vector<4x32xf32>
    %551 = vector.extract_strided_slice %482 {offsets = [0, 96], sizes = [4, 32], strides = [1, 1]} : vector<4x128xf32> to vector<4x32xf32>
    %552 = arith.truncf %550 : vector<4x32xf32> to vector<4x32xbf16>
    %553 = arith.truncf %551 : vector<4x32xf32> to vector<4x32xbf16>
    %cst_144 = arith.constant dense<0.000000e+00> : vector<4x4xf32>
    %554 = tpu.matmul %552, %553, %cst_144 {dimension_numbers = #tpu.dot_dimension_numbers<[1], [1], [0], [0], [0, 0, 1, 0], [], []>} : vector<4x32xbf16>, vector<4x32xbf16>, vector<4x4xf32> -> vector<4x4xf32>
    %cst_145 = arith.constant dense<0xFF800000> : vector<4xf32>
    %555 = vector.multi_reduction <maximumf>, %554, %cst_145 [1] : vector<4x4xf32> to vector<4xf32>
    %556 = vector.shape_cast %555 : vector<4xf32> to vector<4x1xf32>
    %557 = vector.broadcast %556 : vector<4x1xf32> to vector<4x4xf32>
    %558 = arith.subf %554, %557 : vector<4x4xf32>
    %559 = math.exp %558 : vector<4x4xf32>
    %cst_146 = arith.constant dense<0.000000e+00> : vector<4xf32>
    %560 = vector.multi_reduction <add>, %559, %cst_146 [1] : vector<4x4xf32> to vector<4xf32>
    %561 = vector.shape_cast %560 : vector<4xf32> to vector<4x1xf32>
    %562 = vector.broadcast %561 : vector<4x1xf32> to vector<4x4xf32>
    %563 = arith.divf %559, %562 : vector<4x4xf32>
    %cst_147 = arith.constant dense<0.000000e+00> : vector<4xf32>
    %564 = vector.multi_reduction <add>, %563, %cst_147 [0] : vector<4x4xf32> to vector<4xf32>
    %565 = vector.shape_cast %564 : vector<4xf32> to vector<1x4xf32>
    %cst_148 = arith.constant 4.000000e+00 : f32
    %566 = vector.broadcast %cst_148 : f32 to vector<1x4xf32>
    %567 = arith.divf %565, %566 : vector<1x4xf32>
    %568 = vector.extract_strided_slice %483 {offsets = [0, 96], sizes = [4, 32], strides = [1, 1]} : vector<4x128xf32> to vector<4x32xf32>
    %569 = arith.truncf %567 : vector<1x4xf32> to vector<1x4xbf16>
    %570 = arith.truncf %568 : vector<4x32xf32> to vector<4x32xbf16>
    %cst_149 = arith.constant dense<0.000000e+00> : vector<1x32xf32>
    %571 = tpu.matmul %569, %570, %cst_149 {dimension_numbers = #tpu.dot_dimension_numbers<[1], [0], [0], [1], [0, 0, 1, 1], [], []>} : vector<1x4xbf16>, vector<4x32xbf16>, vector<1x32xf32> -> vector<1x32xf32>
    %572 = tpu.concatenate %505, %527, %549, %571 in 1 : vector<1x32xf32>, vector<1x32xf32>, vector<1x32xf32>, vector<1x32xf32> -> vector<1x128xf32>
    %573 = vector.extract_strided_slice %478 {offsets = [4, 0], sizes = [4, 128], strides = [1, 1]} : vector<8x384xf32> to vector<4x128xf32>
    %cst_150 = arith.constant 0.176776692 : f32
    %574 = vector.broadcast %cst_150 : f32 to vector<4x128xf32>
    %575 = arith.mulf %573, %574 : vector<4x128xf32>
    %576 = vector.extract_strided_slice %478 {offsets = [4, 128], sizes = [4, 128], strides = [1, 1]} : vector<8x384xf32> to vector<4x128xf32>
    %577 = vector.extract_strided_slice %478 {offsets = [4, 256], sizes = [4, 128], strides = [1, 1]} : vector<8x384xf32> to vector<4x128xf32>
    %578 = vector.extract_strided_slice %575 {offsets = [0, 0], sizes = [4, 32], strides = [1, 1]} : vector<4x128xf32> to vector<4x32xf32>
    %579 = vector.extract_strided_slice %576 {offsets = [0, 0], sizes = [4, 32], strides = [1, 1]} : vector<4x128xf32> to vector<4x32xf32>
    %580 = arith.truncf %578 : vector<4x32xf32> to vector<4x32xbf16>
    %581 = arith.truncf %579 : vector<4x32xf32> to vector<4x32xbf16>
    %cst_151 = arith.constant dense<0.000000e+00> : vector<4x4xf32>
    %582 = tpu.matmul %580, %581, %cst_151 {dimension_numbers = #tpu.dot_dimension_numbers<[1], [1], [0], [0], [0, 0, 1, 0], [], []>} : vector<4x32xbf16>, vector<4x32xbf16>, vector<4x4xf32> -> vector<4x4xf32>
    %cst_152 = arith.constant dense<0xFF800000> : vector<4xf32>
    %583 = vector.multi_reduction <maximumf>, %582, %cst_152 [1] : vector<4x4xf32> to vector<4xf32>
    %584 = vector.shape_cast %583 : vector<4xf32> to vector<4x1xf32>
    %585 = vector.broadcast %584 : vector<4x1xf32> to vector<4x4xf32>
    %586 = arith.subf %582, %585 : vector<4x4xf32>
    %587 = math.exp %586 : vector<4x4xf32>
    %cst_153 = arith.constant dense<0.000000e+00> : vector<4xf32>
    %588 = vector.multi_reduction <add>, %587, %cst_153 [1] : vector<4x4xf32> to vector<4xf32>
    %589 = vector.shape_cast %588 : vector<4xf32> to vector<4x1xf32>
    %590 = vector.broadcast %589 : vector<4x1xf32> to vector<4x4xf32>
    %591 = arith.divf %587, %590 : vector<4x4xf32>
    %cst_154 = arith.constant dense<0.000000e+00> : vector<4xf32>
    %592 = vector.multi_reduction <add>, %591, %cst_154 [0] : vector<4x4xf32> to vector<4xf32>
    %593 = vector.shape_cast %592 : vector<4xf32> to vector<1x4xf32>
    %cst_155 = arith.constant 4.000000e+00 : f32
    %594 = vector.broadcast %cst_155 : f32 to vector<1x4xf32>
    %595 = arith.divf %593, %594 : vector<1x4xf32>
    %596 = vector.extract_strided_slice %577 {offsets = [0, 0], sizes = [4, 32], strides = [1, 1]} : vector<4x128xf32> to vector<4x32xf32>
    %597 = arith.truncf %595 : vector<1x4xf32> to vector<1x4xbf16>
    %598 = arith.truncf %596 : vector<4x32xf32> to vector<4x32xbf16>
    %cst_156 = arith.constant dense<0.000000e+00> : vector<1x32xf32>
    %599 = tpu.matmul %597, %598, %cst_156 {dimension_numbers = #tpu.dot_dimension_numbers<[1], [0], [0], [1], [0, 0, 1, 1], [], []>} : vector<1x4xbf16>, vector<4x32xbf16>, vector<1x32xf32> -> vector<1x32xf32>
    %600 = vector.extract_strided_slice %575 {offsets = [0, 32], sizes = [4, 32], strides = [1, 1]} : vector<4x128xf32> to vector<4x32xf32>
    %601 = vector.extract_strided_slice %576 {offsets = [0, 32], sizes = [4, 32], strides = [1, 1]} : vector<4x128xf32> to vector<4x32xf32>
    %602 = arith.truncf %600 : vector<4x32xf32> to vector<4x32xbf16>
    %603 = arith.truncf %601 : vector<4x32xf32> to vector<4x32xbf16>
    %cst_157 = arith.constant dense<0.000000e+00> : vector<4x4xf32>
    %604 = tpu.matmul %602, %603, %cst_157 {dimension_numbers = #tpu.dot_dimension_numbers<[1], [1], [0], [0], [0, 0, 1, 0], [], []>} : vector<4x32xbf16>, vector<4x32xbf16>, vector<4x4xf32> -> vector<4x4xf32>
    %cst_158 = arith.constant dense<0xFF800000> : vector<4xf32>
    %605 = vector.multi_reduction <maximumf>, %604, %cst_158 [1] : vector<4x4xf32> to vector<4xf32>
    %606 = vector.shape_cast %605 : vector<4xf32> to vector<4x1xf32>
    %607 = vector.broadcast %606 : vector<4x1xf32> to vector<4x4xf32>
    %608 = arith.subf %604, %607 : vector<4x4xf32>
    %609 = math.exp %608 : vector<4x4xf32>
    %cst_159 = arith.constant dense<0.000000e+00> : vector<4xf32>
    %610 = vector.multi_reduction <add>, %609, %cst_159 [1] : vector<4x4xf32> to vector<4xf32>
    %611 = vector.shape_cast %610 : vector<4xf32> to vector<4x1xf32>
    %612 = vector.broadcast %611 : vector<4x1xf32> to vector<4x4xf32>
    %613 = arith.divf %609, %612 : vector<4x4xf32>
    %cst_160 = arith.constant dense<0.000000e+00> : vector<4xf32>
    %614 = vector.multi_reduction <add>, %613, %cst_160 [0] : vector<4x4xf32> to vector<4xf32>
    %615 = vector.shape_cast %614 : vector<4xf32> to vector<1x4xf32>
    %cst_161 = arith.constant 4.000000e+00 : f32
    %616 = vector.broadcast %cst_161 : f32 to vector<1x4xf32>
    %617 = arith.divf %615, %616 : vector<1x4xf32>
    %618 = vector.extract_strided_slice %577 {offsets = [0, 32], sizes = [4, 32], strides = [1, 1]} : vector<4x128xf32> to vector<4x32xf32>
    %619 = arith.truncf %617 : vector<1x4xf32> to vector<1x4xbf16>
    %620 = arith.truncf %618 : vector<4x32xf32> to vector<4x32xbf16>
    %cst_162 = arith.constant dense<0.000000e+00> : vector<1x32xf32>
    %621 = tpu.matmul %619, %620, %cst_162 {dimension_numbers = #tpu.dot_dimension_numbers<[1], [0], [0], [1], [0, 0, 1, 1], [], []>} : vector<1x4xbf16>, vector<4x32xbf16>, vector<1x32xf32> -> vector<1x32xf32>
    %622 = vector.extract_strided_slice %575 {offsets = [0, 64], sizes = [4, 32], strides = [1, 1]} : vector<4x128xf32> to vector<4x32xf32>
    %623 = vector.extract_strided_slice %576 {offsets = [0, 64], sizes = [4, 32], strides = [1, 1]} : vector<4x128xf32> to vector<4x32xf32>
    %624 = arith.truncf %622 : vector<4x32xf32> to vector<4x32xbf16>
    %625 = arith.truncf %623 : vector<4x32xf32> to vector<4x32xbf16>
    %cst_163 = arith.constant dense<0.000000e+00> : vector<4x4xf32>
    %626 = tpu.matmul %624, %625, %cst_163 {dimension_numbers = #tpu.dot_dimension_numbers<[1], [1], [0], [0], [0, 0, 1, 0], [], []>} : vector<4x32xbf16>, vector<4x32xbf16>, vector<4x4xf32> -> vector<4x4xf32>
    %cst_164 = arith.constant dense<0xFF800000> : vector<4xf32>
    %627 = vector.multi_reduction <maximumf>, %626, %cst_164 [1] : vector<4x4xf32> to vector<4xf32>
    %628 = vector.shape_cast %627 : vector<4xf32> to vector<4x1xf32>
    %629 = vector.broadcast %628 : vector<4x1xf32> to vector<4x4xf32>
    %630 = arith.subf %626, %629 : vector<4x4xf32>
    %631 = math.exp %630 : vector<4x4xf32>
    %cst_165 = arith.constant dense<0.000000e+00> : vector<4xf32>
    %632 = vector.multi_reduction <add>, %631, %cst_165 [1] : vector<4x4xf32> to vector<4xf32>
    %633 = vector.shape_cast %632 : vector<4xf32> to vector<4x1xf32>
    %634 = vector.broadcast %633 : vector<4x1xf32> to vector<4x4xf32>
    %635 = arith.divf %631, %634 : vector<4x4xf32>
    %cst_166 = arith.constant dense<0.000000e+00> : vector<4xf32>
    %636 = vector.multi_reduction <add>, %635, %cst_166 [0] : vector<4x4xf32> to vector<4xf32>
    %637 = vector.shape_cast %636 : vector<4xf32> to vector<1x4xf32>
    %cst_167 = arith.constant 4.000000e+00 : f32
    %638 = vector.broadcast %cst_167 : f32 to vector<1x4xf32>
    %639 = arith.divf %637, %638 : vector<1x4xf32>
    %640 = vector.extract_strided_slice %577 {offsets = [0, 64], sizes = [4, 32], strides = [1, 1]} : vector<4x128xf32> to vector<4x32xf32>
    %641 = arith.truncf %639 : vector<1x4xf32> to vector<1x4xbf16>
    %642 = arith.truncf %640 : vector<4x32xf32> to vector<4x32xbf16>
    %cst_168 = arith.constant dense<0.000000e+00> : vector<1x32xf32>
    %643 = tpu.matmul %641, %642, %cst_168 {dimension_numbers = #tpu.dot_dimension_numbers<[1], [0], [0], [1], [0, 0, 1, 1], [], []>} : vector<1x4xbf16>, vector<4x32xbf16>, vector<1x32xf32> -> vector<1x32xf32>
    %644 = vector.extract_strided_slice %575 {offsets = [0, 96], sizes = [4, 32], strides = [1, 1]} : vector<4x128xf32> to vector<4x32xf32>
    %645 = vector.extract_strided_slice %576 {offsets = [0, 96], sizes = [4, 32], strides = [1, 1]} : vector<4x128xf32> to vector<4x32xf32>
    %646 = arith.truncf %644 : vector<4x32xf32> to vector<4x32xbf16>
    %647 = arith.truncf %645 : vector<4x32xf32> to vector<4x32xbf16>
    %cst_169 = arith.constant dense<0.000000e+00> : vector<4x4xf32>
    %648 = tpu.matmul %646, %647, %cst_169 {dimension_numbers = #tpu.dot_dimension_numbers<[1], [1], [0], [0], [0, 0, 1, 0], [], []>} : vector<4x32xbf16>, vector<4x32xbf16>, vector<4x4xf32> -> vector<4x4xf32>
    %cst_170 = arith.constant dense<0xFF800000> : vector<4xf32>
    %649 = vector.multi_reduction <maximumf>, %648, %cst_170 [1] : vector<4x4xf32> to vector<4xf32>
    %650 = vector.shape_cast %649 : vector<4xf32> to vector<4x1xf32>
    %651 = vector.broadcast %650 : vector<4x1xf32> to vector<4x4xf32>
    %652 = arith.subf %648, %651 : vector<4x4xf32>
    %653 = math.exp %652 : vector<4x4xf32>
    %cst_171 = arith.constant dense<0.000000e+00> : vector<4xf32>
    %654 = vector.multi_reduction <add>, %653, %cst_171 [1] : vector<4x4xf32> to vector<4xf32>
    %655 = vector.shape_cast %654 : vector<4xf32> to vector<4x1xf32>
    %656 = vector.broadcast %655 : vector<4x1xf32> to vector<4x4xf32>
    %657 = arith.divf %653, %656 : vector<4x4xf32>
    %cst_172 = arith.constant dense<0.000000e+00> : vector<4xf32>
    %658 = vector.multi_reduction <add>, %657, %cst_172 [0] : vector<4x4xf32> to vector<4xf32>
    %659 = vector.shape_cast %658 : vector<4xf32> to vector<1x4xf32>
    %cst_173 = arith.constant 4.000000e+00 : f32
    %660 = vector.broadcast %cst_173 : f32 to vector<1x4xf32>
    %661 = arith.divf %659, %660 : vector<1x4xf32>
    %662 = vector.extract_strided_slice %577 {offsets = [0, 96], sizes = [4, 32], strides = [1, 1]} : vector<4x128xf32> to vector<4x32xf32>
    %663 = arith.truncf %661 : vector<1x4xf32> to vector<1x4xbf16>
    %664 = arith.truncf %662 : vector<4x32xf32> to vector<4x32xbf16>
    %cst_174 = arith.constant dense<0.000000e+00> : vector<1x32xf32>
    %665 = tpu.matmul %663, %664, %cst_174 {dimension_numbers = #tpu.dot_dimension_numbers<[1], [0], [0], [1], [0, 0, 1, 1], [], []>} : vector<1x4xbf16>, vector<4x32xbf16>, vector<1x32xf32> -> vector<1x32xf32>
    %666 = tpu.concatenate %599, %621, %643, %665 in 1 : vector<1x32xf32>, vector<1x32xf32>, vector<1x32xf32>, vector<1x32xf32> -> vector<1x128xf32>
    %667 = tpu.concatenate %572, %666 in 0 : vector<1x128xf32>, vector<1x128xf32> -> vector<2x128xf32>
    %c0_175 = arith.constant 0 : index
    %c0_176 = arith.constant 0 : index
    %668 = vector.load %arg17[%c0_175, %c0_176] : memref<128x128xbf16, #tpu.memory_space<vmem>>, vector<128x128xbf16>
    %669 = arith.truncf %667 : vector<2x128xf32> to vector<2x128xbf16>
    %cst_177 = arith.constant dense<0.000000e+00> : vector<2x128xf32>
    %670 = tpu.matmul %669, %668, %cst_177 {dimension_numbers = #tpu.dot_dimension_numbers<[1], [0], [0], [1], [0, 0, 1, 1], [], []>} : vector<2x128xbf16>, vector<128x128xbf16>, vector<2x128xf32> -> vector<2x128xf32>
    %c0_178 = arith.constant 0 : index
    %c0_179 = arith.constant 0 : index
    %671 = vector.load %arg18[%c0_178, %c0_179] : memref<1x128xf32, #tpu.memory_space<vmem>>, vector<1x128xf32>
    %672 = vector.broadcast %671 : vector<1x128xf32> to vector<2x128xf32>
    %673 = arith.addf %670, %672 : vector<2x128xf32>
    %c0_180 = arith.constant 0 : index
    %c0_181 = arith.constant 0 : index
    %674 = vector.load %arg19[%c0_180, %c0_181] : memref<128x64xbf16, #tpu.memory_space<vmem>>, vector<128x64xbf16>
    %675 = arith.truncf %673 : vector<2x128xf32> to vector<2x128xbf16>
    %cst_182 = arith.constant dense<0.000000e+00> : vector<2x64xf32>
    %676 = tpu.matmul %675, %674, %cst_182 {dimension_numbers = #tpu.dot_dimension_numbers<[1], [0], [0], [1], [0, 0, 1, 1], [], []>} : vector<2x128xbf16>, vector<128x64xbf16>, vector<2x64xf32> -> vector<2x64xf32>
    %c0_183 = arith.constant 0 : index
    %c0_184 = arith.constant 0 : index
    %677 = vector.load %arg20[%c0_183, %c0_184] : memref<1x64xf32, #tpu.memory_space<vmem>>, vector<1x64xf32>
    %678 = vector.broadcast %677 : vector<1x64xf32> to vector<2x64xf32>
    %679 = arith.addf %676, %678 : vector<2x64xf32>
    %cst_185 = arith.constant 0.000000e+00 : f32
    %680 = vector.broadcast %cst_185 : f32 to vector<2x64xf32>
    %681 = arith.maximumf %679, %680 : vector<2x64xf32>
    %c0_186 = arith.constant 0 : index
    %c0_187 = arith.constant 0 : index
    %682 = vector.load %arg21[%c0_186, %c0_187] : memref<64x4xbf16, #tpu.memory_space<vmem>>, vector<64x4xbf16>
    %683 = arith.truncf %681 : vector<2x64xf32> to vector<2x64xbf16>
    %cst_188 = arith.constant dense<0.000000e+00> : vector<2x4xf32>
    %684 = tpu.matmul %683, %682, %cst_188 {dimension_numbers = #tpu.dot_dimension_numbers<[1], [0], [0], [1], [0, 0, 1, 1], [], []>} : vector<2x64xbf16>, vector<64x4xbf16>, vector<2x4xf32> -> vector<2x4xf32>
    %c0_189 = arith.constant 0 : index
    %c0_190 = arith.constant 0 : index
    %685 = vector.load %arg22[%c0_189, %c0_190] : memref<1x4xf32, #tpu.memory_space<vmem>>, vector<1x4xf32>
    %686 = vector.broadcast %685 : vector<1x4xf32> to vector<2x4xf32>
    %687 = arith.addf %684, %686 : vector<2x4xf32>
    %c0_191 = arith.constant 0 : index
    %c0_192 = arith.constant 0 : index
    %688 = vector.load %arg23[%c0_191, %c0_192] : memref<2x4xf32, #tpu.memory_space<vmem>>, vector<2x4xf32>
    tpu.vector_store %arg23[%c0_191, %c0_192], %687 {strides = array<i32>} : memref<2x4xf32, #tpu.memory_space<vmem>>, vector<2x4xf32>,
    return
  }
}

</mosaic_0001>

<bundles_post_ra>
// kernel: forward.1
= control target key start
LH: loop header
LB: loop body
LE: loop exit
PB: predicated region body
PF: predicated region fallthrough
CT: control target
= control target key end

     0   :  { %s8792_s0 = inlined_call_operand.vmem [shape: f32[2,16,17], index: 0, kind: input, shape index: {}]   ;;  %s8793_s1 = inlined_call_operand.vmem [shape: bf16[5,17,64], index: 1, kind: input, shape index: {}]   ;;  %s8794_s2 = inlined_call_operand.hbm [shape: f32[1,64], index: 2, kind: input, shape index: {}]   ;;  %s8795_s3 = inlined_call_operand.hbm [shape: f32[1,64], index: 3, kind: input, shape index: {}]   ;;  %s8796_s4 = inlined_call_operand.hbm [shape: bf16[5,64,128], index: 4, kind: input, shape index: {}]   ;;  %s8797_s5 = inlined_call_operand.hbm [shape: f32[1,128], index: 5, kind: input, shape index: {}]   ;;  %s8798_s6 = inlined_call_operand.hbm [shape: f32[1,128], index: 6, kind: input, shape index: {}]   ;;  %s8799_s7 = inlined_call_operand.hbm [shape: bf16[128,512], index: 7, kind: input, shape index: {}]   ;;  %s8800_s8 = inlined_call_operand.hbm [shape: bf16[128,512], index: 8, kind: input, shape index: {}]   ;;  %s8801_s9 = inlined_call_operand.hbm [shape: bf16[128,512], index: 9, kind: input, shape index: {}]   ;;  %s8802_s10 = inlined_call_operand.vmem [shape: f32[1,512], index: 10, kind: input, shape index: {}]   ;;  %s8803_s11 = inlined_call_operand.hbm [shape: bf16[128,512], index: 11, kind: input, shape index: {}]   ;;  %s8804_s12 = inlined_call_operand.hbm [shape: bf16[128,512], index: 12, kind: input, shape index: {}]   ;;  %s8805_s13 = inlined_call_operand.hbm [shape: bf16[128,512], index: 13, kind: input, shape index: {}]   ;;  %s8806_s14 = inlined_call_operand.vmem [shape: f32[1,512], index: 14, kind: input, shape index: {}]   ;;  %s8807_s15 = inlined_call_operand.hbm [shape: bf16[128,384], index: 15, kind: input, shape index: {}]   ;;  %s8808_s16 = inlined_call_operand.vmem [shape: f32[1,384], index: 16, kind: input, shape index: {}]   ;;  %s8809_s17 = inlined_call_operand.vmem [shape: bf16[128,128], index: 17, kind: input, shape index: {}]   ;;  %s8810_s18 = inlined_call_operand.vmem [shape: f32[1,128], index: 18, kind: input, shape index: {}]   ;;  %s8811_s19 = inlined_call_operand.vmem [shape: bf16[128,64], index: 19, kind: input, shape index: {}]   ;;  %s8812_s20 = inlined_call_operand.hbm [shape: f32[1,64], index: 20, kind: input, shape index: {}]   ;;  %s8813_s21 = inlined_call_operand.vmem [shape: bf16[64,4], index: 21, kind: input, shape index: {}]   ;;  %s8814_s22 = inlined_call_operand.hbm [shape: f32[1,4], index: 22, kind: input, shape index: {}]   ;;  %s8815_s23 = inlined_call_operand.hbm [shape: f32[2,4], index: 23, kind: output, shape index: {}]  }
   0x1   :  { %8831 = sst [smem:[#allocation37_spill]] %s8792_s0 }
   0x2   :  { %8832 = sst [smem:[#allocation38_spill]] %s8793_s1 }
   0x3   :  { %8833 = sst [smem:[#allocation39_spill]] %s8794_s2 }
   0x4   :  { %8834 = sst [smem:[#allocation40_spill]] %s8795_s3 }
   0x5   :  { %8835 = sst [smem:[#allocation41_spill]] %s8796_s4 }
   0x6   :  { %8836 = sst [smem:[#allocation42_spill]] %s8797_s5 }
   0x7   :  { %8837 = sst [smem:[#allocation43_spill]] %s8798_s6 }
   0x8   :  { %8838 = sst [smem:[#allocation44_spill]] %s8799_s7 }
   0x9   :  { %8839 = sst [smem:[#allocation45_spill]] %s8810_s18 }
   0xa   :  { %8840 = sst [smem:[#allocation46_spill]] %s8815_s23 }
   0xb   :  { %28 = vsyncpa [#allocation3], 0 }
   0xc   :  { %29 = vsyncpa [#allocation6], 0 }
   0xd   :  { %30 = vsyncpa [#allocation9], 0 }
   0xe   :  { %31 = vsyncpa [#allocation12], 0 }
   0xf   :  { %32 = vsyncpa [#allocation15], 0 }
  0x10   :  { %33 = vsyncpa [#allocation18], 0 }
  0x11   :  { %34 = vsyncpa [#allocation21], 0 }
  0x12   :  { %35 = vsyncpa [#allocation24], 0 }
  0x13   :  { %36 = vsyncpa [#allocation4], 0  ;;  %s7347_s4 = smov [#allocation5]   ;;  %s7348_s24 = smov [#allocation8]  }
  0x14   :  { %s57_s30 = sshll.u32 %s7347_s4, 4  ;;  %s79_s25 = sshll.u32 %s7348_s24, 4  ;;  %s58_s30 = int_to_ptr.vmem [resolvable:$true] %s57_s30  ;;  %s80_s25 = int_to_ptr.vmem [resolvable:$true] %s79_s25 }
  0x15   :  { %s8841_s26 = sld [smem:[#allocation40_spill]] }
  0x1b   :  { %s6999_s2 = scalar_lea.hbm %s8841_s26, 16 }
  0x1c   :  { %p7000_p0 = scmp.ne.s32.totalorder %s8841_s26, %s6999_s2  ;;  %p7003_p1 = scmp.lt.u32.totalorder %s6999_s2, %s8841_s26 }
  0x1e   :  { %p7005_p2 = pnand %p7003_p1, %p7000_p0 }
  0x20   :  { %7008 = shalt.err (!%p7005_p2)
}
  0x21   :  { %s7009_s29 = scalar_lea.vmem %s58_s30, 16  ;;  %s7013_s3 = scalar_lea.vmem %s58_s30, 32 }
  0x22   :  { %p7010_p3 = scmp.ne.s32.totalorder %s58_s30, %s7009_s29  ;;  %p7014_p4 = scmp.lt.s32.totalorder %s58_s30, %s58_s30 }
  0x23   :  { %p7015_p5 = scmp.lt.s32.totalorder %s7013_s3, %s7009_s29 }
  0x25   :  { %p7016_p6 = por %p7015_p5, %p7014_p4 }
  0x27   :  { %p7017_p7 = pnand %p7016_p6, %p7010_p3 }
  0x29   :  { %7020 = shalt.err (!%p7017_p7)
}
  0x2a   :  { %60 = dma.hbm_to_vmem [thread:$0]  %s8841_s26, 16, %s58_s30, [#allocation6]  }
  0x2b   :  { %s8842_s1 = sld [smem:[#allocation42_spill]] }
  0x31   :  { %s7021_s6 = scalar_lea.hbm %s8842_s1, 16 }
  0x32   :  { %p7022_p8 = scmp.ne.s32.totalorder %s8842_s1, %s7021_s6  ;;  %p7025_p9 = scmp.lt.u32.totalorder %s7021_s6, %s8842_s1 }
  0x34   :  { %p7027_p10 = pnand %p7025_p9, %p7022_p8 }
  0x36   :  { %7030 = shalt.err (!%p7027_p10)
}
  0x37   :  { %s7031_s29 = scalar_lea.vmem %s80_s25, 16  ;;  %s7035_s3 = scalar_lea.vmem %s80_s25, 32 }
  0x38   :  { %p7032_p11 = scmp.ne.s32.totalorder %s80_s25, %s7031_s29  ;;  %p7036_p12 = scmp.lt.s32.totalorder %s80_s25, %s80_s25 }
  0x39   :  { %p7037_p13 = scmp.lt.s32.totalorder %s7035_s3, %s7031_s29 }
  0x3b   :  { %p7038_p0 = por %p7037_p13, %p7036_p12 }
  0x3d   :  { %p7039_p1 = pnand %p7038_p0, %p7032_p11 }
  0x3f   :  { %7042 = shalt.err (!%p7039_p1)
}
  0x40   :  { %82 = dma.hbm_to_vmem [thread:$0]  %s8842_s1, 16, %s80_s25, [#allocation9]  }
  0x41   :  { %s7349_s0 = smov [#allocation11]   ;;  %s8843_s6 = sld [smem:[#allocation44_spill]] }
  0x42   :  { %s98_s4 = sshll.u32 %s7349_s0, 4  ;;  %s99_s4 = int_to_ptr.vmem [resolvable:$true] %s98_s4 }
  0x47   :  { %s7043_s27 = scalar_lea.hbm %s8843_s6, 4096 }
  0x48   :  { %p7044_p2 = scmp.ne.s32.totalorder %s8843_s6, %s7043_s27  ;;  %p7047_p3 = scmp.lt.u32.totalorder %s7043_s27, %s8843_s6 }
  0x4a   :  { %p7049_p4 = pnand %p7047_p3, %p7044_p2 }
  0x4c   :  { %7052 = shalt.err (!%p7049_p4)
}
  0x4d   :  { %s7053_s3 = scalar_lea.vmem %s99_s4, 4096  ;;  %p7058_p6 = scmp.lt.s32.totalorder %s99_s4, %s99_s4 }
  0x4e   :  { %p7054_p5 = scmp.ne.s32.totalorder %s99_s4, %s7053_s3  ;;  %p7059_p7 = scmp.lt.s32.totalorder %s7053_s3, %s7053_s3 }
  0x50   :  { %p7060_p8 = por %p7059_p7, %p7058_p6 }
  0x52   :  { %p7061_p9 = pnand %p7060_p8, %p7054_p5 }
  0x54   :  { %7064 = shalt.err (!%p7061_p9)
}
  0x55   :  { %s7350_s25 = smov 256   ;;  %s7351_s1 = smov 16  }
  0x56   :  { %104 = dma.hbm_to_vmem [thread:$0]  %s8843_s6, 4096, %s99_s4, [#allocation12], %s7350_s25, %s7350_s25, %s7351_s1  }
  0x57   :  { %s7352_s0 = smov [#allocation14]   ;;  %s7353_s5 = smov [#allocation17]  }
  0x58   :  { %s122_s24 = sshll.u32 %s7352_s0, 4  ;;  %s148_s27 = sshll.u32 %s7353_s5, 4  ;;  %s123_s24 = int_to_ptr.vmem [resolvable:$true] %s122_s24  ;;  %s149_s27 = int_to_ptr.vmem [resolvable:$true] %s148_s27 }
  0x59   :  { %s7065_s28 = scalar_lea.hbm %s8801_s9, 4096 }
  0x5a   :  { %p7066_p10 = scmp.ne.s32.totalorder %s8801_s9, %s7065_s28  ;;  %p7069_p11 = scmp.lt.u32.totalorder %s7065_s28, %s8801_s9 }
  0x5c   :  { %p7071_p12 = pnand %p7069_p11, %p7066_p10 }
  0x5e   :  { %7074 = shalt.err (!%p7071_p12)
}
  0x5f   :  { %s7075_s4 = scalar_lea.vmem %s123_s24, 4096  ;;  %p7080_p0 = scmp.lt.s32.totalorder %s123_s24, %s123_s24 }
  0x60   :  { %p7076_p13 = scmp.ne.s32.totalorder %s123_s24, %s7075_s4  ;;  %p7081_p1 = scmp.lt.s32.totalorder %s7075_s4, %s7075_s4 }
  0x62   :  { %p7082_p2 = por %p7081_p1, %p7080_p0 }
  0x64   :  { %p7083_p3 = pnand %p7082_p2, %p7076_p13 }
  0x66   :  { %7086 = shalt.err (!%p7083_p3)
}
  0x67   :  { %128 = dma.hbm_to_vmem [thread:$0]  %s8801_s9, 4096, %s123_s24, [#allocation15], %s7350_s25, %s7350_s25, %s7351_s1  }
  0x68   :  { %s7087_s23 = scalar_lea.hbm %s8804_s12, 4096 }
  0x69   :  { %p7088_p4 = scmp.ne.s32.totalorder %s8804_s12, %s7087_s23  ;;  %p7091_p5 = scmp.lt.u32.totalorder %s7087_s23, %s8804_s12 }
  0x6b   :  { %p7093_p6 = pnand %p7091_p5, %p7088_p4 }
  0x6d   :  { %7096 = shalt.err (!%p7093_p6)
}
  0x6e   :  { %s7097_s28 = scalar_lea.vmem %s149_s27, 4096  ;;  %p7102_p8 = scmp.lt.s32.totalorder %s149_s27, %s149_s27 }
  0x6f   :  { %p7098_p7 = scmp.ne.s32.totalorder %s149_s27, %s7097_s28  ;;  %p7103_p9 = scmp.lt.s32.totalorder %s7097_s28, %s7097_s28 }
  0x71   :  { %p7104_p10 = por %p7103_p9, %p7102_p8 }
  0x73   :  { %p7105_p11 = pnand %p7104_p10, %p7098_p7 }
  0x75   :  { %7108 = shalt.err (!%p7105_p11)
}
  0x76   :  { %154 = dma.hbm_to_vmem [thread:$0]  %s8804_s12, 4096, %s149_s27, [#allocation18], %s7350_s25, %s7350_s25, %s7351_s1  }
  0x77   :  { %s7354_s29 = smov [#allocation20]   ;;  %s7109_s30 = scalar_lea.hbm %s8807_s15, 3072 }
  0x78   :  { %s174_s3 = sshll.u32 %s7354_s29, 4  ;;  %p7110_p12 = scmp.ne.s32.totalorder %s8807_s15, %s7109_s30  ;;  %s175_s3 = int_to_ptr.vmem [resolvable:$true] %s174_s3 }
  0x79   :  { %p7113_p13 = scmp.lt.u32.totalorder %s7109_s30, %s8807_s15 }
  0x7b   :  { %p7115_p0 = pnand %p7113_p13, %p7110_p12 }
  0x7d   :  { %7118 = shalt.err (!%p7115_p0)
}
  0x7e   :  { %s7119_s5 = scalar_lea.vmem %s175_s3, 3072  ;;  %p7124_p2 = scmp.lt.s32.totalorder %s175_s3, %s175_s3 }
  0x7f   :  { %p7120_p1 = scmp.ne.s32.totalorder %s175_s3, %s7119_s5  ;;  %p7125_p3 = scmp.lt.s32.totalorder %s7119_s5, %s7119_s5 }
  0x81   :  { %p7126_p4 = por %p7125_p3, %p7124_p2 }
  0x83   :  { %p7127_p5 = pnand %p7126_p4, %p7120_p1 }
  0x85   :  { %7130 = shalt.err (!%p7127_p5)
}
  0x86   :  { %s7355_s12 = smov 192   ;;  %s7356_s27 = smov 12  }
  0x87   :  { %180 = dma.hbm_to_vmem [thread:$0]  %s8807_s15, 3072, %s175_s3, [#allocation21], %s7355_s12, %s7355_s12, %s7356_s27  }
  0x88   :  { %s7357_s28 = smov [#allocation2]   ;;  %s7358_s24 = smov [#allocation7]  }
  0x89   :  { %s47_s9 = sshll.u32 %s7357_s28, 4  ;;  %s66_s29 = sshll.u32 %s7358_s24, 4  ;;  %s48_s9 = int_to_ptr.vmem [resolvable:$true] %s47_s9  ;;  %s7574_s29 = int_to_ptr.vmem [resolvable:$true] %s66_s29 }
  0x8a   :  { %s8844_s30 = sld [smem:[#allocation39_spill]] }
  0x90   :  { %s7131_s26 = scalar_lea.hbm %s8844_s30, 16 }
  0x91   :  { %p7132_p6 = scmp.ne.s32.totalorder %s8844_s30, %s7131_s26  ;;  %p7135_p7 = scmp.lt.u32.totalorder %s7131_s26, %s8844_s30 }
  0x93   :  { %p7137_p8 = pnand %p7135_p7, %p7132_p6 }
  0x95   :  { %7140 = shalt.err (!%p7137_p8)
}
  0x96   :  { %s7141_s15 = scalar_lea.vmem %s48_s9, 16  ;;  %s7145_s3 = scalar_lea.vmem %s48_s9, 32 }
  0x97   :  { %p7142_p9 = scmp.ne.s32.totalorder %s48_s9, %s7141_s15  ;;  %p7146_p10 = scmp.lt.s32.totalorder %s48_s9, %s48_s9 }
  0x98   :  { %p7147_p11 = scmp.lt.s32.totalorder %s7145_s3, %s7141_s15 }
  0x9a   :  { %p7148_p12 = por %p7147_p11, %p7146_p10 }
  0x9c   :  { %p7149_p13 = pnand %p7148_p12, %p7142_p9 }
  0x9e   :  { %7152 = shalt.err (!%p7149_p13)
}
  0x9f   :  { %50 = dma.hbm_to_vmem [thread:$0]  %s8844_s30, 16, %s48_s9, [#allocation3]  }
  0xa0   :  { %s8845_s28 = sld [smem:[#allocation41_spill]] }
  0xa6   :  { %s7153_s24 = scalar_lea.hbm %s8845_s28, 2560 }
  0xa7   :  { %p7154_p0 = scmp.ne.s32.totalorder %s8845_s28, %s7153_s24  ;;  %p7157_p1 = scmp.lt.u32.totalorder %s7153_s24, %s8845_s28 }
  0xa9   :  { %p7159_p2 = pnand %p7157_p1, %p7154_p0 }
  0xab   :  { %7162 = shalt.err (!%p7159_p2)
}
  0xac   :  { %s7163_s23 = scalar_lea.vmem %s7574_s29, 2560  ;;  %p7168_p4 = scmp.lt.s32.totalorder %s7574_s29, %s7574_s29 }
  0xad   :  { %p7164_p3 = scmp.ne.s32.totalorder %s7574_s29, %s7163_s23  ;;  %p7169_p5 = scmp.lt.s32.totalorder %s7163_s23, %s7163_s23 }
  0xaf   :  { %p7170_p6 = por %p7169_p5, %p7168_p4 }
  0xb1   :  { %p7171_p7 = pnand %p7170_p6, %p7164_p3 }
  0xb3   :  { %7174 = shalt.err (!%p7171_p7)
}
  0xb4   :  { %s7359_s9 = smov 64   ;;  %s7360_s30 = smov 4  }
  0xb5   :  { %72 = dma.hbm_to_vmem [thread:$0]  %s8845_s28, 2560, %s7574_s29, [#allocation6], %s7359_s9, %s7359_s9, %s7360_s30  }
  0xb6   :  { %s7361_s15 = smov [#allocation10]   ;;  %s7362_s12 = smov [#allocation13]  }
  0xb7   :  { %s89_s3 = sshll.u32 %s7361_s15, 4  ;;  %s110_s27 = sshll.u32 %s7362_s12, 4  ;;  %s90_s3 = int_to_ptr.vmem [resolvable:$true] %s89_s3  ;;  %s7607_s27 = int_to_ptr.vmem [resolvable:$true] %s110_s27 }
  0xb8   :  { %s8846_s24 = sld [smem:[#allocation43_spill]] }
  0xbe   :  { %s7175_s4 = scalar_lea.hbm %s8846_s24, 16 }
  0xbf   :  { %p7176_p8 = scmp.ne.s32.totalorder %s8846_s24, %s7175_s4  ;;  %p7179_p9 = scmp.lt.u32.totalorder %s7175_s4, %s8846_s24 }
  0xc1   :  { %p7181_p10 = pnand %p7179_p9, %p7176_p8 }
  0xc3   :  { %7184 = shalt.err (!%p7181_p10)
}
  0xc4   :  { %s7185_s29 = scalar_lea.vmem %s90_s3, 16  ;;  %s7189_s28 = scalar_lea.vmem %s90_s3, 32 }
  0xc5   :  { %p7186_p11 = scmp.ne.s32.totalorder %s90_s3, %s7185_s29  ;;  %p7190_p12 = scmp.lt.s32.totalorder %s90_s3, %s90_s3 }
  0xc6   :  { %p7191_p13 = scmp.lt.s32.totalorder %s7189_s28, %s7185_s29 }
  0xc8   :  { %p7192_p0 = por %p7191_p13, %p7190_p12 }
  0xca   :  { %p7193_p1 = pnand %p7192_p0, %p7186_p11 }
  0xcc   :  { %7196 = shalt.err (!%p7193_p1)
}
  0xcd   :  { %92 = dma.hbm_to_vmem [thread:$0]  %s8846_s24, 16, %s90_s3, [#allocation9]  }
  0xce   :  { %s7197_s12 = scalar_lea.hbm %s8800_s8, 4096 }
  0xcf   :  { %p7198_p2 = scmp.ne.s32.totalorder %s8800_s8, %s7197_s12  ;;  %p7201_p3 = scmp.lt.u32.totalorder %s7197_s12, %s8800_s8 }
  0xd1   :  { %p7203_p4 = pnand %p7201_p3, %p7198_p2 }
  0xd3   :  { %7206 = shalt.err (!%p7203_p4)
}
  0xd4   :  { %s7207_s26 = scalar_lea.vmem %s7607_s27, 4096  ;;  %p7212_p6 = scmp.lt.s32.totalorder %s7607_s27, %s7607_s27 }
  0xd5   :  { %p7208_p5 = scmp.ne.s32.totalorder %s7607_s27, %s7207_s26  ;;  %p7213_p7 = scmp.lt.s32.totalorder %s7207_s26, %s7207_s26 }
  0xd7   :  { %p7214_p8 = por %p7213_p7, %p7212_p6 }
  0xd9   :  { %p7215_p9 = pnand %p7214_p8, %p7208_p5 }
  0xdb   :  { %7218 = shalt.err (!%p7215_p9)
}
  0xdc   :  { %116 = dma.hbm_to_vmem [thread:$0]  %s8800_s8, 4096, %s7607_s27, [#allocation12], %s7350_s25, %s7350_s25, %s7351_s1  }
  0xdd   :  { %s7363_s18 = smov [#allocation16]   ;;  %s7364_s29 = smov [#allocation19]  }
  0xde   :  { %s136_s23 = sshll.u32 %s7363_s18, 4  ;;  %s160_s28 = sshll.u32 %s7364_s29, 4  ;;  %s137_s23 = int_to_ptr.vmem [resolvable:$true] %s136_s23  ;;  %s7641_s28 = int_to_ptr.vmem [resolvable:$true] %s160_s28 }
  0xdf   :  { %s7219_s5 = scalar_lea.hbm %s8803_s11, 4096 }
  0xe0   :  { %p7220_p10 = scmp.ne.s32.totalorder %s8803_s11, %s7219_s5  ;;  %p7223_p11 = scmp.lt.u32.totalorder %s7219_s5, %s8803_s11 }
  0xe2   :  { %p7225_p12 = pnand %p7223_p11, %p7220_p10 }
  0xe4   :  { %7228 = shalt.err (!%p7225_p12)
}
  0xe5   :  { %s7229_s8 = scalar_lea.vmem %s137_s23, 4096  ;;  %p7234_p0 = scmp.lt.s32.totalorder %s137_s23, %s137_s23 }
  0xe6   :  { %p7230_p13 = scmp.ne.s32.totalorder %s137_s23, %s7229_s8  ;;  %p7235_p1 = scmp.lt.s32.totalorder %s7229_s8, %s7229_s8 }
  0xe8   :  { %p7236_p2 = por %p7235_p1, %p7234_p0 }
  0xea   :  { %p7237_p3 = pnand %p7236_p2, %p7230_p13 }
  0xec   :  { %7240 = shalt.err (!%p7237_p3)
}
  0xed   :  { %142 = dma.hbm_to_vmem [thread:$0]  %s8803_s11, 4096, %s137_s23, [#allocation15], %s7350_s25, %s7350_s25, %s7351_s1  }
  0xee   :  { %s7241_s3 = scalar_lea.hbm %s8805_s13, 4096 }
  0xef   :  { %p7242_p4 = scmp.ne.s32.totalorder %s8805_s13, %s7241_s3  ;;  %p7245_p5 = scmp.lt.u32.totalorder %s7241_s3, %s8805_s13 }
  0xf1   :  { %p7247_p6 = pnand %p7245_p5, %p7242_p4 }
  0xf3   :  { %7250 = shalt.err (!%p7247_p6)
}
  0xf4   :  { %s7251_s0 = scalar_lea.vmem %s7641_s28, 4096  ;;  %p7256_p8 = scmp.lt.s32.totalorder %s7641_s28, %s7641_s28 }
  0xf5   :  { %p7252_p7 = scmp.ne.s32.totalorder %s7641_s28, %s7251_s0  ;;  %p7257_p9 = scmp.lt.s32.totalorder %s7251_s0, %s7251_s0 }
  0xf7   :  { %p7258_p10 = por %p7257_p9, %p7256_p8 }
  0xf9   :  { %p7259_p11 = pnand %p7258_p10, %p7252_p7 }
  0xfb   :  { %7262 = shalt.err (!%p7259_p11)
}
  0xfc   :  { %166 = dma.hbm_to_vmem [thread:$0]  %s8805_s13, 4096, %s7641_s28, [#allocation18], %s7350_s25, %s7350_s25, %s7351_s1  }
  0xfd   :  { %s7365_s5 = smov [#allocation22]   ;;  %s7366_s12 = smov [#allocation23]  }
  0xfe   :  { %s195_s15 = sshll.u32 %s7365_s5, 4  ;;  %s207_s2 = sshll.u32 %s7366_s12, 4  ;;  %s196_s15 = int_to_ptr.vmem [resolvable:$true] %s195_s15  ;;  %s208_s2 = int_to_ptr.vmem [resolvable:$true] %s207_s2 }
  0xff   :  { %s7263_s27 = scalar_lea.hbm %s8812_s20, 16 }
 0x100   :  { %p7264_p12 = scmp.ne.s32.totalorder %s8812_s20, %s7263_s27  ;;  %p7267_p13 = scmp.lt.u32.totalorder %s7263_s27, %s8812_s20 }
 0x102   :  { %p7269_p0 = pnand %p7267_p13, %p7264_p12 }
 0x104   :  { %7272 = shalt.err (!%p7269_p0)
}
 0x105   :  { %s7273_s13 = scalar_lea.vmem %s196_s15, 16  ;;  %s7277_s25 = scalar_lea.vmem %s196_s15, 32 }
 0x106   :  { %p7274_p1 = scmp.ne.s32.totalorder %s196_s15, %s7273_s13  ;;  %p7278_p2 = scmp.lt.s32.totalorder %s196_s15, %s196_s15 }
 0x107   :  { %p7279_p3 = scmp.lt.s32.totalorder %s7277_s25, %s7273_s13 }
 0x109   :  { %p7280_p4 = por %p7279_p3, %p7278_p2 }
 0x10b   :  { %p7281_p5 = pnand %p7280_p4, %p7274_p1 }
 0x10d   :  { %7284 = shalt.err (!%p7281_p5)
}
 0x10e   :  { %198 = dma.hbm_to_vmem [thread:$0]  %s8812_s20, 16, %s196_s15, [#allocation21]  }
 0x10f   :  { %s7285_s29 = scalar_lea.hbm %s8814_s22, 16 }
 0x110   :  { %p7286_p6 = scmp.ne.s32.totalorder %s8814_s22, %s7285_s29  ;;  %p7289_p7 = scmp.lt.u32.totalorder %s7285_s29, %s8814_s22 }
 0x112   :  { %p7291_p8 = pnand %p7289_p7, %p7286_p6 }
 0x114   :  { %7294 = shalt.err (!%p7291_p8)
}
 0x115   :  { %s7295_s5 = scalar_lea.vmem %s208_s2, 16  ;;  %s7299_s12 = scalar_lea.vmem %s208_s2, 32 }
 0x116   :  { %p7296_p9 = scmp.ne.s32.totalorder %s208_s2, %s7295_s5  ;;  %p7300_p10 = scmp.lt.s32.totalorder %s208_s2, %s208_s2 }
 0x117   :  { %p7301_p11 = scmp.lt.s32.totalorder %s7299_s12, %s7295_s5 }
 0x119   :  { %p7302_p12 = por %p7301_p11, %p7300_p10 }
 0x11b   :  { %p7303_p13 = pnand %p7302_p12, %p7296_p9 }
 0x11d   :  { %7306 = shalt.err (!%p7303_p13)
}
 0x11e   :  { %210 = dma.hbm_to_vmem [thread:$0]  %s8814_s22, 16, %s208_s2, [#allocation24]  }
 0x11f   :  { %7329 = dma.done.wait [#allocation3], 16  }
 0x120   :  { %7330 = vsyncadd [#allocation3], 4294967280 }
 0x121   :  { %7331 = dma.done.wait [#allocation6], 2576  }
 0x122   :  { %7332 = vsyncadd [#allocation6], 4294964720 }
 0x123   :  { %7333 = dma.done.wait [#allocation9], 32  }
 0x124   :  { %7334 = vsyncadd [#allocation9], 4294967264 }
 0x125   :  { %7335 = dma.done.wait [#allocation12], 8192  }
 0x126   :  { %7336 = vsyncadd [#allocation12], 4294959104 }
 0x127   :  { %7337 = dma.done.wait [#allocation15], 8192  }
 0x128   :  { %7338 = vsyncadd [#allocation15], 4294959104 }
 0x129   :  { %7339 = dma.done.wait [#allocation18], 8192  }
 0x12a   :  { %7340 = vsyncadd [#allocation18], 4294959104 }
 0x12b   :  { %7341 = dma.done.wait [#allocation21], 3088  }
 0x12c   :  { %7342 = vsyncadd [#allocation21], 4294964208 }
 0x12d   :  { %7343 = dma.done.wait [#allocation24], 16  }
 0x12e   :  { %7344 = vsyncadd [#allocation24], 4294967280  ;;  %v8825_v0 = vmov 0.0   ;;  %vm7368_vm0 = vmmov 0   ;;  %vm336_vm1 = vcmask 1040384   ;;  %v8827_v1 = vmov 0  }
 0x12f   :  { %6061 = vmatprep.subr.bf16.mxu0 %v8825_v0  ;;  %6065 = vmatprep.mubr.msk.bf16.mxu0 %vm7368_vm0, %v8825_v0  ;;  %v7707_v2 = vsel %vm336_vm1, 65535, %v8827_v1  ;;  %s8847_s7 = sld [smem:[#allocation38_spill]]  ;;  %vm261_vm2 = vcmask 1041408   ;;  %s8848_s26 = sld [smem:[#allocation37_spill]]  ;;  %vm270_vm3 = vcmask 1045504   ;;  %vm279_vm4 = vcmask 1043456  }
 0x130   :  { %vm293_vm5 = vsmask.f32 7424  ;;  %vm326_vm6 = vcmask 138240   ;;  %vm571_vm7 = vsmask.f32 6400  ;;  %vm479_vm8 = vcmask 1046528  }
 0x131   :  { %vm812_vm9 = vcmask 1042432   ;;  %vm815_vm10 = vcmask 1044480   ;;  %vm925_vm11 = vcmask 523264   ;;  %vm4279_vm12 = vcmask 261120   ;;  %s7371_s25 = smov 32   ;;  %s8855_s5 = sld [smem:[#allocation45_spill]] }
 0x132   :  { %vm4326_vm13 = vcmask 27648   ;;  %vm4349_vm14 = vcmask 31744   ;;  %vm4767_vm15 = vcmask 785408   ;;  %s7372_s22 = smov [#allocation25]  }
 0x133   :  { %s5573_s2 = sshll.u32 %s7372_s22, 4  ;;  %s5574_s2 = int_to_ptr.vmem [resolvable:$true] %s5573_s2 }
 0x134   :  { %p7312_p1 = scmp.lt.s32.totalorder %s5574_s2, %s5574_s2 }
 0x135   :  { %v6469_v3 = vld [vmem:[%s8847_s7 + $0xc] sm:$0xff]   ;;  %v6470_v4 = vld [vmem:[%s8847_s7 + $0x14] ss:$0 sps:$4 sm:$0x11]   ;;  %v254_v5 = vld [vmem:[%s8848_s26] sm:$0xff] }
 0x136   :  { %6062 = vmatpush3.bf16.msra.mxu0 %v6469_v3  ;;  %v255_v6 = vld [vmem:[%s8848_s26 + $0x8] sm:$0xff]  ;;  %v5589_v7 = vld [vmem:[%s8848_s26 + $0x10] sm:$0xff]  ;;  %v5590_v8 = vld [vmem:[%s8848_s26 + $0x18] sm:$0xff]  ;;  %v262_v9 = vrot.slane %v254_v5, 6  ;;  %v340_v10 = vand.u32 %v6470_v4, %v7707_v2 }
 0x137   :  { %6063 = vmatprep.subr.bf16.mxu0 %v8825_v0  ;;  %v263_v11 = vrot.slane %v255_v6, 6  ;;  %v271_v12 = vrot.slane %v5589_v7, 2  ;;  %v272_v13 = vrot.slane %v5590_v8, 2  ;;  %v6471_v31 = vld [vmem:[%s8847_s7] sm:$0xff]   ;;  %v6473_v57 = vld [vmem:[%s8847_s7 + $0x18] sm:$0xff]   ;;  %v6477_v7 = vld [vmem:[%s8847_s7 + $0x30] sm:$0xff]  }
 0x138   :  { %v277_v14 = vsel %vm261_vm2, 0.0, %v262_v9  ;;  %v6472_v33 = vld [vmem:[%s8847_s7 + $0x8] ss:$0 sps:$4 sm:$0x11]  }
 0x139   :  { %v264_v15 = vsel %vm261_vm2, %v262_v9, %v263_v11  ;;  %v273_v16 = vsel %vm270_vm3, %v271_v12, %v272_v13  ;;  %v278_v17 = vsel %vm261_vm2, %v263_v11, 0.0  ;;  %v282_v18 = vsel %vm270_vm3, %v272_v13, 0.0  ;;  %v6474_v58 = vld [vmem:[%s8847_s7 + $0x20] ss:$0 sps:$4 sm:$0x11]   ;;  %v6475_v62 = vld [vmem:[%s8847_s7 + $0x24] sm:$0xff]  }
 0x13a   :  { %6064 = vmatpush3.bf16.msra.mxu0 %v340_v10  ;;  %v280_v19 = vsel %vm279_vm4, %v278_v17, 0.0  ;;  %v7735_v20 = vpack.c.bf16 %v264_v15, %v277_v14  ;;  %v7737_v21 = vpack.c.bf16 %v282_v18, %v282_v18  ;;  %v414_v47 = vand.u32 %v6472_v33, %v7707_v2  ;;  %v6476_v63 = vld [vmem:[%s8847_s7 + $0x2c] ss:$0 sps:$4 sm:$0x11]   ;;  %v6481_v11 = vld [vmem:[#allocation7 + $0x30] sm:$0xff]   ;;  %v7849_v13 = vld [vmem:[#allocation7] sm:$0xff]  }
 0x13b   :  { %v281_v22 = vsel %vm270_vm3, %v280_v19, %v271_v12  ;;  %6077 = vmatprep.subr.bf16.mxu0 %v8825_v0  ;;  %v504_v59 = vand.u32 %v6474_v58, %v7707_v2  ;;  %v602_v5 = vand.u32 %v6476_v63, %v7707_v2  ;;  %v6478_v8 = vld [vmem:[%s8847_s7 + $0x38] ss:$0 sps:$4 sm:$0x11]   ;;  %v6480_v10 = vld [vmem:[#allocation7 + $0x28] sm:$0xff]   ;;  %v6482_v12 = vld [vmem:[#allocation7 + $0x38] sm:$0xff]  }
 0x13c   :  { %v7741_v23 = vpack.c.bf16 %v273_v16, %v281_v22  ;;  %v295_v24 = vshrl.u32 %v7735_v20, 16  ;;  %v297_v25 = vshll.u32 %v7735_v20, 16  ;;  %v310_v26 = vshll.u32 %v7737_v21, 16  ;;  %v6502_v14 = vld [vmem:[#allocation11 + $0x8] ss:$16 sps:$4 sm:$0xff]  }
 0x13d   :  { %v314_v34 = vshrl.u32 %v7737_v21, 16  ;;  %v670_v45 = vrot.slane %v7735_v20, 2  ;;  %v673_v49 = vrot.slane %v7737_v21, 2  ;;  %v480_v60 = vrot.slane %v7735_v20, 1  ;;  %v6504_v15 = vld [vmem:[#allocation11 + $0xc] ss:$16 sps:$4 sm:$0xff]  }
 0x13e   :  { %v299_v27 = vrot.slane %v297_v25, 1  ;;  %v302_v28 = vshll.u32 %v7741_v23, 16  ;;  %v572_v29 = vrot.slane %v295_v24, 1  ;;  %v573_v30 = vrot.slane %v297_v25, 2  ;;  %v6510_v16 = vld [vmem:[#allocation11 + $0x2c] ss:$16 sps:$4 sm:$0xff]  }
 0x13f   :  { %v306_v32 = vshrl.u32 %v7741_v23, 16  ;;  %v312_v39 = vrot.slane %v310_v26, 1  ;;  %v579_v42 = vrot.slane %v314_v34, 1  ;;  %v580_v44 = vrot.slane %v310_v26, 2  ;;  %v6508_v17 = vld [vmem:[#allocation11 + $0x28] ss:$16 sps:$4 sm:$0xff]  }
 0x140   :  { %v300_v35 = vor.u32 %v299_v27, %v295_v24  ;;  %v304_v36 = vrot.slane %v302_v28, 1  ;;  %v576_v37 = vrot.slane %v302_v28, 2  ;;  %v574_v38 = vor.u32 %v573_v30, %v572_v29  ;;  %v5628_v18 = vld [vmem:[#allocation2] ss:$0 sm:$0xff] }
 0x141   :  { %v575_v40 = vrot.slane %v306_v32, 1  ;;  %v671_v48 = vrot.slane %v7741_v23, 2  ;;  %v581_v51 = vor.u32 %v580_v44, %v579_v42  ;;  %v316_v56 = vor.u32 %v314_v34, %v312_v39 }
 0x142   :  { %v305_v41 = vsel %vm293_vm5, %v300_v35, %v304_v36  ;;  %v308_v46 = vor.u32 %v306_v32, %v304_v36  ;;  %v481_v61 = vrot.slane %v7741_v23, 1  ;;  %v483_v4 = vrot.slane %v7737_v21, 1 }
 0x143   :  { %6066 = vmatmul.mubr.msk.bf16.vlgmr.msra.gmra.mrb[0].mxu0 %vm326_vm6, %v305_v41  ;;  %v577_v43 = vor.u32 %v576_v37, %v575_v40  ;;  %v672_v52 = vsel %vm270_vm3, %v670_v45, %v671_v48  ;;  %v674_v53 = vsel %vm270_vm3, %v671_v48, %v673_v49  ;;  %v694_v9 = vand.u32 %v6478_v8, %v7707_v2  ;;  %v6479_v2 = vld [vmem:[#allocation7 + $0x20] sm:$0xff]  }
 0x144   :  { %6078 = vmatpush3.bf16.msra.mxu0 %v6471_v31  ;;  %6069 = vmatprep.mubr.msk.bf16.mxu0 %vm7368_vm0, %v8825_v0  ;;  %v313_v55 = vsel %vm293_vm5, %v308_v46, %v312_v39  ;;  %v482_v3 = vsel %vm479_vm8, %v480_v60, %v481_v61  ;;  %v484_v6 = vsel %vm479_vm8, %v481_v61, %v483_v4 }
 0x145   :  { %6079 = vmatprep.subr.bf16.mxu0 %v8825_v0  ;;  %v578_v50 = vsel %vm571_vm7, %v574_v38, %v577_v43  ;;  %v582_v54 = vsel %vm571_vm7, %v577_v43, %v581_v51  ;;  %6141 = vmatprep.subr.bf16.mxu1 %v6479_v2 }
 0x146   :  { %6142 = vmatpush3.bf16.msra.mxu1 %v6479_v2 }
 0x147   :  { %6143 = vmatprep.subr.bf16.mxu1 %v6480_v10 }
 0x148   :  { %6080 = vmatpush3.bf16.msra.mxu0 %v414_v47 }
 0x149   :  { %6093 = vmatprep.subr.bf16.mxu0 %v8825_v0 }
 0x14a   :  { %6144 = vmatpush3.bf16.msra.mxu1 %v6480_v10 }
 0x14b   :  { %6070 = vmatmul.mubr.msk.bf16.gmra.mrb[4].mxu0 %vm326_vm6, %v313_v55  ;;  %6145 = vmatprep.subr.bf16.mxu1 %v6481_v11 }
 0x14c   :  { %6073 = vmatprep.mubr.msk.bf16.mxu0 %vm7368_vm0, %v8825_v0 }
 0x14e   :  { %6146 = vmatpush3.bf16.msra.mxu1 %v6481_v11 }
 0x14f   :  { %6147 = vmatprep.subr.bf16.mxu1 %v6482_v12 }
 0x152   :  { %6148 = vmatpush3.bf16.msra.mxu1 %v6482_v12 }
 0x153   :  { %6074 = vmatmul.mubr.msk.bf16.gmra.mrb[8].mxu0 %vm326_vm6, %v316_v56  ;;  %6153 = vmatprep.subr.bf16.mxu1 %v7849_v13 }
 0x154   :  { %6081 = vmatprep.mubr.msk.bf16.mxu0 %vm7368_vm0, %v8825_v0 }
 0x15b   :  { %6082 = vmatmul.mubr.msk.bf16.vlgmr.msra.gmra.mrb[0].mxu0 %vm326_vm6, %v7735_v20  ;;  %v5629_v20 = vld [vmem:[#allocation5] ss:$0 sm:$0xff] }
 0x15c   :  { %6094 = vmatpush3.bf16.msra.mxu0 %v6473_v57  ;;  %6085 = vmatprep.mubr.msk.bf16.mxu0 %vm7368_vm0, %v8825_v0 }
 0x15d   :  { %6095 = vmatprep.subr.bf16.mxu0 %v8825_v0 }
 0x160   :  { %6096 = vmatpush3.bf16.msra.mxu0 %v504_v59 }
 0x161   :  { %6109 = vmatprep.subr.bf16.mxu0 %v8825_v0 }
 0x163   :  { %6086 = vmatmul.mubr.msk.bf16.gmra.mrb[4].mxu0 %vm326_vm6, %v7741_v23 }
 0x164   :  { %6089 = vmatprep.mubr.msk.bf16.mxu0 %vm7368_vm0, %v8825_v0 }
 0x16b   :  { %6090 = vmatmul.mubr.msk.bf16.gmra.mrb[8].mxu0 %vm326_vm6, %v7737_v21 }
 0x16c   :  { %6097 = vmatprep.mubr.msk.bf16.mxu0 %vm7368_vm0, %v8825_v0 }
 0x173   :  { %6098 = vmatmul.mubr.msk.bf16.vlgmr.msra.gmra.mrb[0].mxu0 %vm326_vm6, %v482_v3 }
 0x174   :  { %6110 = vmatpush3.bf16.msra.mxu0 %v6475_v62  ;;  %6101 = vmatprep.mubr.msk.bf16.mxu0 %vm7368_vm0, %v8825_v0 }
 0x175   :  { %6111 = vmatprep.subr.bf16.mxu0 %v8825_v0 }
 0x178   :  { %6112 = vmatpush3.bf16.msra.mxu0 %v602_v5 }
 0x179   :  { %6125 = vmatprep.subr.bf16.mxu0 %v8825_v0 }
 0x17b   :  { %6102 = vmatmul.mubr.msk.bf16.gmra.mrb[4].mxu0 %vm326_vm6, %v484_v6 }
 0x17c   :  { %6105 = vmatprep.mubr.msk.bf16.mxu0 %vm7368_vm0, %v8825_v0 }
 0x183   :  { %6106 = vmatmul.mubr.msk.bf16.gmra.mrb[8].mxu0 %vm326_vm6, %v483_v4 }
 0x184   :  { %6113 = vmatprep.mubr.msk.bf16.mxu0 %vm7368_vm0, %v8825_v0 }
 0x18b   :  { %6114 = vmatmul.mubr.msk.bf16.vlgmr.msra.gmra.mrb[0].mxu0 %vm326_vm6, %v578_v50 }
 0x18c   :  { %6126 = vmatpush3.bf16.msra.mxu0 %v6477_v7  ;;  %6117 = vmatprep.mubr.msk.bf16.mxu0 %vm7368_vm0, %v8825_v0 }
 0x18d   :  { %6127 = vmatprep.subr.bf16.mxu0 %v8825_v0 }
 0x190   :  { %6128 = vmatpush3.bf16.msra.mxu0 %v694_v9 }
 0x191   :  { %1645 = vmatprep.subr.bf16.mxu0 %v6504_v15 }
 0x193   :  { %6118 = vmatmul.mubr.msk.bf16.gmra.mrb[4].mxu0 %vm326_vm6, %v582_v54 }
 0x194   :  { %6121 = vmatprep.mubr.msk.bf16.mxu0 %vm7368_vm0, %v8825_v0 }
 0x19b   :  { %6122 = vmatmul.mubr.msk.bf16.gmra.mrb[8].mxu0 %vm326_vm6, %v581_v51 }
 0x19c   :  { %6129 = vmatprep.mubr.msk.bf16.mxu0 %vm7368_vm0, %v8825_v0 }
 0x1a3   :  { %6130 = vmatmul.mubr.msk.bf16.vlgmr.msra.gmra.mrb[0].mxu0 %vm326_vm6, %v672_v52 }
 0x1a4   :  { %6133 = vmatprep.mubr.msk.bf16.mxu0 %vm7368_vm0, %v8825_v0  ;;  %1646 = vmatpush1.bf16.msra.mxu0 %v6502_v14 }
 0x1a5   :  { %1647 = vmatprep.subr.bf16.mxu0 %v6510_v16 }
 0x1a8   :  { %1648 = vmatpush1.bf16.msra.mxu0 %v6508_v17 }
 0x1ab   :  { %6134 = vmatmul.mubr.msk.bf16.gmra.mrb[4].mxu0 %vm326_vm6, %v674_v53 }
 0x1ac   :  { %6137 = vmatprep.mubr.msk.bf16.mxu0 %vm7368_vm0, %v8825_v0 }
 0x1b3   :  { %6138 = vmatmul.mubr.msk.bf16.gmra.mrb[8].mxu0 %vm326_vm6, %v673_v49 }
 0x1b4   :  { %1677 = vmatprep.mubr.bf16.mxu0 %v8827_v1 }
 0x276   :  { %v730_v19 = vpop.f32.mrb[0].mxu0 }
 0x277   :  { %v764_v21 = vmul.f32 %v5628_v18, %v730_v19  ;;  %v6131_v22 = vpop.f32.mrb[1].mxu0 }
 0x278   :  { %v733_v23 = vpop.f32.mrb[2].mxu0 }
 0x279   :  { %v776_v24 = vadd.f32 %v5629_v20, %v764_v21  ;;  %v765_v25 = vmul.f32 %v5628_v18, %v733_v23  ;;  %v6132_v26 = vpop.f32.mrb[3].mxu0 }
 0x27b   :  { %v781_v27 = vmax.f32 %v776_v24, 0.0  ;;  %v777_v28 = vadd.f32 %v5629_v20, %v765_v25 }
 0x27d   :  { %v787_v29 = vrot.slane %v781_v27, 1  ;;  %v782_v30 = vmax.f32 %v777_v28, 0.0 }
 0x27e   :  { %v738_v31 = vpop.f32.mrb[4].mxu0 }
 0x27f   :  { %v789_v32 = vmax.f32 %v781_v27, %v787_v29  ;;  %v791_v33 = vrot.slane %v782_v30, 1  ;;  %v766_v34 = vmul.f32 %v5628_v18, %v738_v31  ;;  %v6135_v35 = vpop.f32.mrb[5].mxu0 }
 0x280   :  { %v741_v36 = vpop.f32.mrb[6].mxu0 }
 0x281   :  { %v795_v37 = vrot.slane %v789_v32, 1  ;;  %v797_v38 = vrot.slane %v789_v32, 2  ;;  %v793_v39 = vmax.f32 %v782_v30, %v791_v33  ;;  %v6136_v40 = vpop.f32.mrb[7].mxu0  ;;  %v778_v41 = vadd.f32 %v5629_v20, %v766_v34 }
 0x282   :  { %v767_v42 = vmul.f32 %v5628_v18, %v741_v36  ;;  %v799_v43 = vrot.slane %v789_v32, 3 }
 0x283   :  { %v810_v44 = vsel %vm336_vm1, %v789_v32, %v795_v37  ;;  %v802_v45 = vrot.slane %v793_v39, 4  ;;  %v783_v47 = vmax.f32 %v778_v41, 0.0  ;;  %v804_v50 = vrot.slane %v793_v39, 5 }
 0x284   :  { %v811_v46 = vsel %vm261_vm2, %v810_v44, %v797_v38  ;;  %v779_v48 = vadd.f32 %v5629_v20, %v767_v42  ;;  %v806_v51 = vrot.slane %v793_v39, 6  ;;  %v808_v56 = vrot.slane %v793_v39, 7 }
 0x285   :  { %v813_v49 = vsel %vm812_vm9, %v811_v46, %v799_v43  ;;  %v821_v53 = vrot.slane %v783_v47, 1 }
 0x286   :  { %v814_v52 = vsel %vm279_vm4, %v813_v49, %v802_v45  ;;  %v784_v54 = vmax.f32 %v779_v48, 0.0  ;;  %v746_v55 = vpop.f32.mrb[8].mxu0 }
 0x287   :  { %v816_v57 = vsel %vm815_vm10, %v814_v52, %v804_v50  ;;  %v768_v58 = vmul.f32 %v5628_v18, %v746_v55  ;;  %v6139_v59 = vpop.f32.mrb[9].mxu0  ;;  %v823_v61 = vmax.f32 %v783_v47, %v821_v53 }
 0x288   :  { %v817_v60 = vsel %vm270_vm3, %v816_v57, %v806_v51  ;;  %v825_v62 = vrot.slane %v784_v54, 1  ;;  %v749_v63 = vpop.f32.mrb[10].mxu0  ;;  %v6486_v57 = vld [vmem:[#allocation7 + $0x18] sm:$0xff]   ;;  %v6488_v59 = vld [vmem:[#allocation7 + $0x48] sm:$0xff]  }
 0x289   :  { %v819_v3 = vsel %vm479_vm8, %v817_v60, %v808_v56  ;;  %v780_v4 = vadd.f32 %v5629_v20, %v768_v58  ;;  %v6140_v5 = vpop.f32.mrb[11].mxu0  ;;  %v833_v6 = vrot.slane %v823_v61, 4  ;;  %v835_v7 = vrot.slane %v823_v61, 5  ;;  %v6485_v56 = vld [vmem:[#allocation7 + $0x10] sm:$0xff]   ;;  %v6487_v58 = vld [vmem:[#allocation7 + $0x40] sm:$0xff]   ;;  %v6490_v60 = vld [vmem:[#allocation7 + $0x58] sm:$0xff]  }
 0x28a   :  { %v827_v8 = vmax.f32 %v784_v54, %v825_v62  ;;  %v857_v15 = vrot.slane %v819_v3, 6  ;;  %v6484_v54 = vld [vmem:[#allocation7 + $0x8] sm:$0xff]   ;;  %v6491_v61 = vld [vmem:[#allocation7 + $0x60] sm:$0xff]   ;;  %v6493_v63 = vld [vmem:[#allocation7 + $0x70] sm:$0xff]  }
 0x28b   :  { %v785_v9 = vmax.f32 %v780_v4, 0.0  ;;  %v849_v2 = vsel %vm336_vm1, %v833_v6, %v835_v7  ;;  %v6492_v62 = vld [vmem:[#allocation7 + $0x68] sm:$0xff]   ;;  %v6494_v3 = vld [vmem:[#allocation7 + $0x78] sm:$0xff]   ;;  %v6495_v4 = vld [vmem:[#allocation7 + $0x80] sm:$0xff]  }
 0x28c   :  { %v838_v10 = vrot.slane %v827_v8, 6  ;;  %v840_v11 = vrot.slane %v827_v8, 7  ;;  %v842_v16 = vrot.slane %v827_v8, 1  ;;  %v863_v24 = vsel %vm261_vm2, %v857_v15, 0.0  ;;  %v6496_v5 = vld [vmem:[#allocation7 + $0x88] sm:$0xff]   ;;  %v6497_v6 = vld [vmem:[#allocation7 + $0x90] sm:$0xff]  }
 0x28d   :  { %v829_v12 = vrot.slane %v785_v9, 1  ;;  %v864_v27 = vsel %vm279_vm4, %v863_v24, 0.0  ;;  %v862_v28 = vsel %vm261_vm2, 0.0, %v857_v15  ;;  %v6498_v7 = vld [vmem:[#allocation7 + $0x98] sm:$0xff]  }
 0x28e   :  { %v850_v14 = vsel %vm261_vm2, %v849_v2, %v838_v10  ;;  %v6507_v2 = vld [vmem:[#allocation11 + $0x24] ss:$16 sps:$4 sm:$0xff]   ;;  %v6505_v10 = vld [vmem:[#allocation11 + $0x20] ss:$16 sps:$4 sm:$0xff]   ;;  %v6514_v15 = vld [vmem:[#allocation11 + $0x48] ss:$16 sps:$4 sm:$0xff]  }
 0x28f   :  { %v851_v17 = vsel %vm812_vm9, %v850_v14, %v840_v11  ;;  %v831_v18 = vmax.f32 %v785_v9, %v829_v12  ;;  %v6499_v9 = vld [vmem:[#allocation11] ss:$16 sps:$4 sm:$0xff]   ;;  %v6513_v11 = vld [vmem:[#allocation11 + $0x44] ss:$16 sps:$4 sm:$0xff]   ;;  %v6516_v12 = vld [vmem:[#allocation11 + $0x4c] ss:$16 sps:$4 sm:$0xff]  }
 0x290   :  { %v852_v19 = vsel %vm279_vm4, %v851_v17, %v827_v8  ;;  %v6501_v8 = vld [vmem:[#allocation11 + $0x4] ss:$16 sps:$4 sm:$0xff]   ;;  %v6511_v14 = vld [vmem:[#allocation11 + $0x40] ss:$16 sps:$4 sm:$0xff]   ;;  %1649 = vmatprep.subr.bf16.mxu0 %v6516_v12  ;;  %v6522_v17 = vld [vmem:[#allocation11 + $0x6c] ss:$16 sps:$4 sm:$0xff]  }
 0x291   :  { %v845_v20 = vrot.slane %v831_v18, 2  ;;  %v847_v21 = vrot.slane %v831_v18, 3  ;;  %v853_v22 = vsel %vm815_vm10, %v852_v19, %v842_v16  ;;  %1650 = vmatpush1.bf16.msra.mxu0 %v6514_v15  ;;  %v6519_v16 = vld [vmem:[#allocation11 + $0x64] ss:$16 sps:$4 sm:$0xff]   ;;  %v6517_v18 = vld [vmem:[#allocation11 + $0x60] ss:$16 sps:$4 sm:$0xff]  }
 0x292   :  { %v6520_v19 = vld [vmem:[#allocation11 + $0x68] ss:$16 sps:$4 sm:$0xff]   ;;  %1651 = vmatprep.subr.bf16.mxu0 %v6522_v17  ;;  %v6531_v24 = vld [vmem:[#allocation11 + $0xa4] ss:$16 sps:$4 sm:$0xff]   ;;  %v6559_v15 = vld [vmem:[#allocation13 + $0x40] ss:$16 sps:$4 sm:$0xff]  }
 0x293   :  { %v854_v23 = vsel %vm270_vm3, %v853_v22, %v845_v20  ;;  %v6525_v20 = vld [vmem:[#allocation11 + $0x84] ss:$16 sps:$4 sm:$0xff]   ;;  %v6523_v22 = vld [vmem:[#allocation11 + $0x80] ss:$16 sps:$4 sm:$0xff]  }
 0x294   :  { %v855_v25 = vsel %vm479_vm8, %v854_v23, %v847_v21  ;;  %v6528_v21 = vld [vmem:[#allocation11 + $0x8c] ss:$16 sps:$4 sm:$0xff]   ;;  %v6526_v23 = vld [vmem:[#allocation11 + $0x88] ss:$16 sps:$4 sm:$0xff]   ;;  %v6561_v12 = vld [vmem:[#allocation13 + $0x44] ss:$16 sps:$4 sm:$0xff]  }
 0x295   :  { %v860_v26 = vrot.slane %v855_v25, 2  ;;  %1652 = vmatpush1.bf16.msra.mxu0 %v6520_v19  ;;  %v6534_v25 = vld [vmem:[#allocation11 + $0xac] ss:$16 sps:$4 sm:$0xff]   ;;  %v6567_v17 = vld [vmem:[#allocation13 + $0x64] ss:$16 sps:$4 sm:$0xff]  }
 0x296   :  { %1653 = vmatprep.subr.bf16.mxu0 %v6528_v21  ;;  %v6565_v19 = vld [vmem:[#allocation13 + $0x60] ss:$16 sps:$4 sm:$0xff]   ;;  %v6573_v21 = vld [vmem:[#allocation13 + $0x84] ss:$16 sps:$4 sm:$0xff]  }
 0x297   :  { %v865_v29 = vsel %vm270_vm3, %v864_v27, %v860_v26  ;;  %v866_v30 = vsel %vm270_vm3, %v860_v26, 0.0  ;;  %v6529_v26 = vld [vmem:[#allocation11 + $0xa0] ss:$16 sps:$4 sm:$0xff]   ;;  %v6532_v27 = vld [vmem:[#allocation11 + $0xa8] ss:$16 sps:$4 sm:$0xff]  }
 0x298   :  { %v875_v31 = vpack.c.bf16 %v865_v29, %v862_v28  ;;  %v7871_v32 = vpack.c.bf16 %v866_v30, %v866_v30  ;;  %v6537_v28 = vld [vmem:[#allocation11 + $0xc4] ss:$16 sps:$4 sm:$0xff]   ;;  %v6540_v29 = vld [vmem:[#allocation11 + $0xcc] ss:$16 sps:$4 sm:$0xff]   ;;  %v6535_v30 = vld [vmem:[#allocation11 + $0xc0] ss:$16 sps:$4 sm:$0xff]  }
 0x299   :  { %1654 = vmatpush1.bf16.msra.mxu0 %v6526_v23  ;;  %v6571_v23 = vld [vmem:[#allocation13 + $0x80] ss:$16 sps:$4 sm:$0xff]  }
 0x29a   :  { %v887_v33 = vshrl.u32 %v875_v31, 16  ;;  %v889_v34 = vshll.u32 %v875_v31, 16  ;;  %v894_v35 = vshll.u32 %v7871_v32, 16  ;;  %v898_v36 = vshrl.u32 %v7871_v32, 16  ;;  %1655 = vmatprep.subr.bf16.mxu0 %v6534_v25  ;;  %v6579_v25 = vld [vmem:[#allocation13 + $0xa4] ss:$16 sps:$4 sm:$0xff]  }
 0x29b   :  { %v1067_v37 = vrot.slane %v875_v31, 1  ;;  %v1068_v38 = vrot.slane %v7871_v32, 1  ;;  %v1257_v39 = vrot.slane %v875_v31, 2  ;;  %v1258_v40 = vrot.slane %v7871_v32, 2 }
 0x29c   :  { %v891_v41 = vrot.slane %v889_v34, 1  ;;  %v896_v42 = vrot.slane %v894_v35, 1  ;;  %v1160_v43 = vrot.slane %v887_v33, 1  ;;  %v1164_v44 = vrot.slane %v894_v35, 2  ;;  %v6544_v35 = vld [vmem:[#allocation11 + $0xe8] ss:$16 sps:$4 sm:$0xff]  }
 0x29d   :  { %v1069_v45 = vsel %vm479_vm8, %v1067_v37, %v1068_v38  ;;  %v1161_v46 = vrot.slane %v889_v34, 2  ;;  %v1163_v47 = vrot.slane %v898_v36, 1  ;;  %v1259_v48 = vsel %vm270_vm3, %v1257_v39, %v1258_v40  ;;  %1656 = vmatpush1.bf16.msra.mxu0 %v6532_v27  ;;  %v6541_v34 = vld [vmem:[#allocation11 + $0xe0] ss:$16 sps:$4 sm:$0xff]   ;;  %v6552_v37 = vld [vmem:[#allocation13 + $0xc] ss:$16 sps:$4 sm:$0xff]  }
 0x29e   :  { %v892_v49 = vor.u32 %v891_v41, %v887_v33  ;;  %v900_v53 = vor.u32 %v898_v36, %v896_v42  ;;  %1657 = vmatprep.subr.bf16.mxu0 %v6540_v29  ;;  %v6546_v33 = vld [vmem:[#allocation11 + $0xec] ss:$16 sps:$4 sm:$0xff]   ;;  %v6549_v36 = vld [vmem:[#allocation13 + $0x4] ss:$16 sps:$4 sm:$0xff]   ;;  %v6577_v27 = vld [vmem:[#allocation13 + $0xa0] ss:$16 sps:$4 sm:$0xff]  }
 0x29f   :  { %v1162_v50 = vor.u32 %v1161_v46, %v1160_v43  ;;  %v1165_v51 = vor.u32 %v1164_v44, %v1163_v47  ;;  %v6585_v29 = vld [vmem:[#allocation13 + $0xc4] ss:$16 sps:$4 sm:$0xff]  }
 0x2a0   :  { %v897_v52 = vsel %vm293_vm5, %v892_v49, %v896_v42 }
 0x2a1   :  { %6149 = vmatprep.mubr.msk.bf16.mxu1 %vm925_vm11, %v897_v52  ;;  %v1166_v55 = vsel %vm571_vm7, %v1162_v50, %v1165_v51 }
 0x2a2   :  { %6150 = vmatmul.mubr.msk.bf16.vlgmr.msra.gmra.mrb[0].mxu1 %vm925_vm11, %v900_v53 }
 0x2a3   :  { %6154 = vmatpush3.bf16.msra.mxu1 %v7849_v13  ;;  %6161 = vmatprep.mubr.msk.bf16.mxu1 %vm925_vm11, %v875_v31  ;;  %v6489_v13 = vld [vmem:[#allocation7 + $0x50] sm:$0xff]   ;;  %v6538_v31 = vld [vmem:[#allocation11 + $0xc8] ss:$16 sps:$4 sm:$0xff]  }
 0x2a4   :  { %6155 = vmatprep.subr.bf16.mxu1 %v6484_v54  ;;  %1658 = vmatpush1.bf16.msra.mxu0 %v6538_v31  ;;  %v6583_v31 = vld [vmem:[#allocation13 + $0xc0] ss:$16 sps:$4 sm:$0xff]  }
 0x2a5   :  { %1659 = vmatprep.subr.bf16.mxu0 %v6546_v33  ;;  %v6591_v33 = vld [vmem:[#allocation13 + $0xe4] ss:$16 sps:$4 sm:$0xff]  }
 0x2a7   :  { %6156 = vmatpush3.bf16.msra.mxu1 %v6484_v54 }
 0x2a8   :  { %6157 = vmatprep.subr.bf16.mxu1 %v6485_v56  ;;  %1660 = vmatpush1.bf16.msra.mxu0 %v6544_v35  ;;  %v6589_v35 = vld [vmem:[#allocation13 + $0xe0] ss:$16 sps:$4 sm:$0xff]  }
 0x2a9   :  { %1919 = vmatprep.subr.bf16.mxu0 %v6552_v37  ;;  %v7911_v37 = vld [vmem:[#allocation14 + $0x4] ss:$16 sps:$4 sm:$0xff]  }
 0x2ab   :  { %6158 = vmatpush3.bf16.msra.mxu1 %v6485_v56 }
 0x2ac   :  { %6159 = vmatprep.subr.bf16.mxu1 %v6486_v57 }
 0x2af   :  { %6160 = vmatpush3.bf16.msra.mxu1 %v6486_v57 }
 0x2b0   :  { %6165 = vmatprep.subr.bf16.mxu1 %v6487_v58 }
 0x2b2   :  { %6162 = vmatmul.mubr.msk.bf16.vlgmr.msra.gmra.mrb[0].mxu1 %vm925_vm11, %v7871_v32  ;;  %v6543_v32 = vld [vmem:[#allocation11 + $0xe4] ss:$16 sps:$4 sm:$0xff]  }
 0x2b3   :  { %6166 = vmatpush3.bf16.msra.mxu1 %v6487_v58  ;;  %6173 = vmatprep.mubr.msk.bf16.mxu1 %vm925_vm11, %v1069_v45 }
 0x2b4   :  { %6167 = vmatprep.subr.bf16.mxu1 %v6488_v59 }
 0x2b7   :  { %6168 = vmatpush3.bf16.msra.mxu1 %v6488_v59 }
 0x2b8   :  { %6169 = vmatprep.subr.bf16.mxu1 %v6489_v13 }
 0x2bb   :  { %6170 = vmatpush3.bf16.msra.mxu1 %v6489_v13 }
 0x2bc   :  { %6171 = vmatprep.subr.bf16.mxu1 %v6490_v60 }
 0x2bf   :  { %6172 = vmatpush3.bf16.msra.mxu1 %v6490_v60 }
 0x2c0   :  { %6177 = vmatprep.subr.bf16.mxu1 %v6491_v61 }
 0x2c2   :  { %6174 = vmatmul.mubr.msk.bf16.vlgmr.msra.gmra.mrb[0].mxu1 %vm925_vm11, %v1068_v38  ;;  %v5660_v38 = vld [vmem:[#allocation8] ss:$0 sm:$0xff] }
 0x2c3   :  { %6178 = vmatpush3.bf16.msra.mxu1 %v6491_v61  ;;  %6185 = vmatprep.mubr.msk.bf16.mxu1 %vm925_vm11, %v1166_v55 }
 0x2c4   :  { %6179 = vmatprep.subr.bf16.mxu1 %v6492_v62 }
 0x2c7   :  { %6180 = vmatpush3.bf16.msra.mxu1 %v6492_v62 }
 0x2c8   :  { %6181 = vmatprep.subr.bf16.mxu1 %v6493_v63 }
 0x2cb   :  { %6182 = vmatpush3.bf16.msra.mxu1 %v6493_v63 }
 0x2cc   :  { %6183 = vmatprep.subr.bf16.mxu1 %v6494_v3 }
 0x2cf   :  { %6184 = vmatpush3.bf16.msra.mxu1 %v6494_v3 }
 0x2d0   :  { %6189 = vmatprep.subr.bf16.mxu1 %v6495_v4 }
 0x2d2   :  { %6186 = vmatmul.mubr.msk.bf16.vlgmr.msra.gmra.mrb[0].mxu1 %vm925_vm11, %v1165_v51 }
 0x2d3   :  { %6190 = vmatpush3.bf16.msra.mxu1 %v6495_v4  ;;  %6197 = vmatprep.mubr.msk.bf16.mxu1 %vm925_vm11, %v1259_v48 }
 0x2d4   :  { %6191 = vmatprep.subr.bf16.mxu1 %v6496_v5 }
 0x2d7   :  { %6192 = vmatpush3.bf16.msra.mxu1 %v6496_v5  ;;  %v6547_v5 = vld [vmem:[#allocation13] ss:$16 sps:$4 sm:$0xff]  }
 0x2d8   :  { %6193 = vmatprep.subr.bf16.mxu1 %v6497_v6 }
 0x2db   :  { %6194 = vmatpush3.bf16.msra.mxu1 %v6497_v6  ;;  %v6550_v6 = vld [vmem:[#allocation13 + $0x8] ss:$16 sps:$4 sm:$0xff]  }
 0x2dc   :  { %6195 = vmatprep.subr.bf16.mxu1 %v6498_v7 }
 0x2df   :  { %6196 = vmatpush3.bf16.msra.mxu1 %v6498_v7 }
 0x2e0   :  { %1604 = vmatprep.subr.bf16.mxu1 %v6501_v8 }
 0x2e2   :  { %6198 = vmatmul.mubr.msk.bf16.vlgmr.msra.gmra.mrb[0].mxu1 %vm925_vm11, %v1258_v40  ;;  %v5661_v40 = vld [vmem:[#allocation10] ss:$0 sm:$0xff] }
 0x2e3   :  { %1605 = vmatpush1.bf16.msra.mxu1 %v6499_v9  ;;  %1636 = vmatprep.mubr.bf16.mxu1 %v8827_v1  ;;  %v6555_v9 = vld [vmem:[#allocation13 + $0x24] ss:$16 sps:$4 sm:$0xff]  }
 0x2e4   :  { %1606 = vmatprep.subr.bf16.mxu1 %v6507_v2  ;;  %v6558_v2 = vld [vmem:[#allocation13 + $0x2c] ss:$16 sps:$4 sm:$0xff]  }
 0x2e7   :  { %1607 = vmatpush1.bf16.msra.mxu1 %v6505_v10  ;;  %v6553_v10 = vld [vmem:[#allocation13 + $0x20] ss:$16 sps:$4 sm:$0xff]  }
 0x2e8   :  { %1608 = vmatprep.subr.bf16.mxu1 %v6513_v11  ;;  %v6556_v11 = vld [vmem:[#allocation13 + $0x28] ss:$16 sps:$4 sm:$0xff]  }
 0x2eb   :  { %1609 = vmatpush1.bf16.msra.mxu1 %v6511_v14  ;;  %v6564_v14 = vld [vmem:[#allocation13 + $0x4c] ss:$16 sps:$4 sm:$0xff]  }
 0x2ec   :  { %1610 = vmatprep.subr.bf16.mxu1 %v6519_v16  ;;  %v6562_v16 = vld [vmem:[#allocation13 + $0x48] ss:$16 sps:$4 sm:$0xff]  }
 0x2ef   :  { %1611 = vmatpush1.bf16.msra.mxu1 %v6517_v18  ;;  %v6570_v18 = vld [vmem:[#allocation13 + $0x6c] ss:$16 sps:$4 sm:$0xff]  }
 0x2f0   :  { %1612 = vmatprep.subr.bf16.mxu1 %v6525_v20  ;;  %v6568_v20 = vld [vmem:[#allocation13 + $0x68] ss:$16 sps:$4 sm:$0xff]  }
 0x2f3   :  { %1613 = vmatpush1.bf16.msra.mxu1 %v6523_v22  ;;  %v6576_v22 = vld [vmem:[#allocation13 + $0x8c] ss:$16 sps:$4 sm:$0xff]  }
 0x2f4   :  { %1614 = vmatprep.subr.bf16.mxu1 %v6531_v24  ;;  %v6574_v24 = vld [vmem:[#allocation13 + $0x88] ss:$16 sps:$4 sm:$0xff]  }
 0x2f7   :  { %1615 = vmatpush1.bf16.msra.mxu1 %v6529_v26  ;;  %v6582_v26 = vld [vmem:[#allocation13 + $0xac] ss:$16 sps:$4 sm:$0xff]  }
 0x2f8   :  { %1616 = vmatprep.subr.bf16.mxu1 %v6537_v28  ;;  %v6580_v28 = vld [vmem:[#allocation13 + $0xa8] ss:$16 sps:$4 sm:$0xff]  }
 0x2fb   :  { %1617 = vmatpush1.bf16.msra.mxu1 %v6535_v30  ;;  %v6588_v30 = vld [vmem:[#allocation13 + $0xcc] ss:$16 sps:$4 sm:$0xff]  }
 0x2fc   :  { %1618 = vmatprep.subr.bf16.mxu1 %v6543_v32  ;;  %v6586_v32 = vld [vmem:[#allocation13 + $0xc8] ss:$16 sps:$4 sm:$0xff]  }
 0x2ff   :  { %1619 = vmatpush1.bf16.msra.mxu1 %v6541_v34  ;;  %v6594_v34 = vld [vmem:[#allocation13 + $0xec] ss:$16 sps:$4 sm:$0xff]  }
 0x300   :  { %1878 = vmatprep.subr.bf16.mxu1 %v6549_v36  ;;  %v6592_v36 = vld [vmem:[#allocation13 + $0xe8] ss:$16 sps:$4 sm:$0xff]  }
 0x3b5   :  { %v6199_v39 = vpop.f32.mrb[0].mxu1 }
 0x3b6   :  { %v1350_v41 = vmul.f32 %v6199_v39, %v5660_v38  ;;  %v1324_v42 = vpop.f32.mrb[1].mxu1  ;;  %v7915_v39 = vld [vmem:[#allocation14] ss:$16 sps:$4 sm:$0xff]  }
 0x3b7   :  { %v1348_v43 = vmul.f32 %v5660_v38, %v1324_v42  ;;  %v6200_v44 = vpop.f32.mrb[2].mxu1  ;;  %v7923_v42 = vld [vmem:[#allocation14 + $0x2c] ss:$16 sps:$4 sm:$0xff]  }
 0x3b8   :  { %v1360_v45 = vadd.f32 %v5661_v40, %v1350_v41  ;;  %v1327_v46 = vpop.f32.mrb[3].mxu1  ;;  %v7921_v41 = vld [vmem:[#allocation14 + $0x24] ss:$16 sps:$4 sm:$0xff]   ;;  %v7931_v44 = vld [vmem:[#allocation14 + $0x28] ss:$16 sps:$4 sm:$0xff]  }
 0x3b9   :  { %v1358_v47 = vadd.f32 %v5661_v40, %v1348_v43  ;;  %v1349_v48 = vmul.f32 %v5660_v38, %v1327_v46  ;;  %v7913_v38 = vld [vmem:[#allocation14 + $0xc] ss:$16 sps:$4 sm:$0xff]   ;;  %v7929_v43 = vld [vmem:[#allocation14 + $0x20] ss:$16 sps:$4 sm:$0xff]  }
 0x3ba   :  { %v1363_v49 = vmax.f32 %v1360_v45, 0.0  ;;  %v7935_v45 = vld [vmem:[#allocation14 + $0x44] ss:$16 sps:$4 sm:$0xff]   ;;  %v7937_v46 = vld [vmem:[#allocation14 + $0x4c] ss:$16 sps:$4 sm:$0xff]  }
 0x3bb   :  { %v1361_v50 = vmax.f32 %v1358_v47, 0.0  ;;  %v1359_v51 = vadd.f32 %v5661_v40, %v1349_v48  ;;  %v7917_v40 = vld [vmem:[#allocation14 + $0x8] ss:$16 sps:$4 sm:$0xff]   ;;  %v7943_v47 = vld [vmem:[#allocation14 + $0x40] ss:$16 sps:$4 sm:$0xff]  }
 0x3bc   :  { %v1373_v53 = vrot.slane %v1363_v49, 1  ;;  %v7945_v48 = vld [vmem:[#allocation14 + $0x48] ss:$16 sps:$4 sm:$0xff]  }
 0x3bd   :  { %v1362_v52 = vmax.f32 %v1359_v51, 0.0  ;;  %v1365_v54 = vrot.slane %v1361_v50, 1  ;;  %v7955_v51 = vld [vmem:[#allocation14 + $0x60] ss:$16 sps:$4 sm:$0xff]  }
 0x3be   :  { %v1375_v57 = vmax.f32 %v1363_v49, %v1373_v53  ;;  %v7949_v49 = vld [vmem:[#allocation14 + $0x64] ss:$16 sps:$4 sm:$0xff]  }
 0x3bf   :  { %v1369_v55 = vrot.slane %v1362_v52, 1  ;;  %v1367_v58 = vmax.f32 %v1361_v50, %v1365_v54  ;;  %v7951_v50 = vld [vmem:[#allocation14 + $0x6c] ss:$16 sps:$4 sm:$0xff]   ;;  %v7961_v53 = vld [vmem:[#allocation14 + $0x84] ss:$16 sps:$4 sm:$0xff]  }
 0x3c0   :  { %v1380_v61 = vrot.slane %v1375_v57, 3  ;;  %v7963_v54 = vld [vmem:[#allocation14 + $0x8c] ss:$16 sps:$4 sm:$0xff]   ;;  %v7973_v57 = vld [vmem:[#allocation14 + $0xa4] ss:$16 sps:$4 sm:$0xff]  }
 0x3c1   :  { %v1371_v56 = vmax.f32 %v1362_v52, %v1369_v55  ;;  %v7957_v52 = vld [vmem:[#allocation14 + $0x68] ss:$16 sps:$4 sm:$0xff]   ;;  %v7967_v55 = vld [vmem:[#allocation14 + $0x80] ss:$16 sps:$4 sm:$0xff]  }
 0x3c3   :  { %v1377_v59 = vrot.slane %v1371_v56, 3  ;;  %v7969_v56 = vld [vmem:[#allocation14 + $0x88] ss:$16 sps:$4 sm:$0xff]  }
 0x3c5   :  { %v1382_v13 = vsel %vm336_vm1, %v1367_v58, %v1377_v59 }
 0x3c6   :  { %v1383_v60 = vsel %vm261_vm2, %v1382_v13, %v1367_v58  ;;  %v7981_v13 = vld [vmem:[#allocation14 + $0xa8] ss:$16 sps:$4 sm:$0xff]  }
 0x3c7   :  { %v1384_v62 = vsel %vm812_vm9, %v1383_v60, %v1377_v59  ;;  %v7979_v59 = vld [vmem:[#allocation14 + $0xa0] ss:$16 sps:$4 sm:$0xff]   ;;  %v7985_v60 = vld [vmem:[#allocation14 + $0xc4] ss:$16 sps:$4 sm:$0xff]  }
 0x3c8   :  { %v1385_v63 = vsel %vm279_vm4, %v1384_v62, %v1367_v58  ;;  %v7991_v62 = vld [vmem:[#allocation14 + $0xc0] ss:$16 sps:$4 sm:$0xff]  }
 0x3c9   :  { %v1386_v3 = vsel %vm815_vm10, %v1385_v63, %v1380_v61  ;;  %v7993_v63 = vld [vmem:[#allocation14 + $0xc8] ss:$16 sps:$4 sm:$0xff]  }
 0x3ca   :  { %v1387_v4 = vsel %vm270_vm3, %v1386_v3, %v1367_v58  ;;  %v7975_v58 = vld [vmem:[#allocation14 + $0xac] ss:$16 sps:$4 sm:$0xff]   ;;  %v7997_v3 = vld [vmem:[#allocation14 + $0xe4] ss:$16 sps:$4 sm:$0xff]  }
 0x3cb   :  { %v1388_v7 = vsel %vm479_vm8, %v1387_v4, %v1380_v61  ;;  %v7987_v61 = vld [vmem:[#allocation14 + $0xcc] ss:$16 sps:$4 sm:$0xff]  }
 0x3cc   :  { %v7905_v8 = vpack.c.bf16 %v1388_v7, %v1388_v7  ;;  %v7999_v4 = vld [vmem:[#allocation14 + $0xec] ss:$16 sps:$4 sm:$0xff]  }
 0x3ce   :  { %1637 = vmatmul.mubr.bf16.vlgmr.msra.gmra.mrb[4].mxu1 %v7905_v8  ;;  %1678 = vmatmul.mubr.bf16.vlgmr.msra.gmra.mrb[12].mxu0 %v7905_v8 }
 0x3cf   :  { %1879 = vmatpush1.bf16.msra.mxu1 %v6547_v5  ;;  %1920 = vmatpush1.bf16.msra.mxu0 %v6550_v6  ;;  %v8003_v5 = vld [vmem:[#allocation14 + $0xe0] ss:$16 sps:$4 sm:$0xff]   ;;  %v8005_v6 = vld [vmem:[#allocation14 + $0xe8] ss:$16 sps:$4 sm:$0xff]  }
 0x3d0   :  { %1880 = vmatprep.subr.bf16.mxu1 %v6555_v9  ;;  %1921 = vmatprep.subr.bf16.mxu0 %v6558_v2 }
 0x3d1   :  { %1910 = vmatprep.mubr.bf16.mxu1 %v8827_v1  ;;  %1951 = vmatprep.mubr.bf16.mxu0 %v8827_v1 }
 0x3d3   :  { %1881 = vmatpush1.bf16.msra.mxu1 %v6553_v10  ;;  %1922 = vmatpush1.bf16.msra.mxu0 %v6556_v11 }
 0x3d4   :  { %1882 = vmatprep.subr.bf16.mxu1 %v6561_v12  ;;  %1923 = vmatprep.subr.bf16.mxu0 %v6564_v14 }
 0x3d7   :  { %1883 = vmatpush1.bf16.msra.mxu1 %v6559_v15  ;;  %1924 = vmatpush1.bf16.msra.mxu0 %v6562_v16  ;;  %v1424_v15 = vlaneseq }
 0x3d8   :  { %1884 = vmatprep.subr.bf16.mxu1 %v6567_v17  ;;  %1925 = vmatprep.subr.bf16.mxu0 %v6570_v18 }
 0x3d9   :  { %v8049_v16 = vshrl.u32 %v1424_v15, 7 }
 0x3db   :  { %1885 = vmatpush1.bf16.msra.mxu1 %v6565_v19  ;;  %1926 = vmatpush1.bf16.msra.mxu0 %v6568_v20  ;;  %8849 = vst [vmem:[#allocation35_spill] sm:$0xff] %v8049_v16  ;;  %v8052_v17 = vsub.s32 0, %v8049_v16  ;;  %v8055_v18 = vsub.s32 2, %v8049_v16  ;;  %v8058_v19 = vsub.s32 1, %v8049_v16  ;;  %v1438_v20 = vsub.s32 3, %v8049_v16 }
 0x3dc   :  { %1886 = vmatprep.subr.bf16.mxu1 %v6573_v21  ;;  %1927 = vmatprep.subr.bf16.mxu0 %v6576_v22  ;;  %v1422_v21 = vld [vmem:[%s8802_s10] sm:$0xf] }
 0x3dd   :  { %8850 = vst [vmem:[#allocation36_spill] sm:$0xff] %v8055_v18  ;;  %v1427_v22 = vrot.slane %v1422_v21, %v8052_v17 }
 0x3df   :  { %1887 = vmatpush1.bf16.msra.mxu1 %v6571_v23  ;;  %1928 = vmatpush1.bf16.msra.mxu0 %v6574_v24  ;;  %v1435_v23 = vrot.slane %v1422_v21, %v8055_v18  ;;  %v1431_v24 = vrot.slane %v1422_v21, %v8058_v19 }
 0x3e0   :  { %1888 = vmatprep.subr.bf16.mxu1 %v6579_v25  ;;  %1929 = vmatprep.subr.bf16.mxu0 %v6582_v26  ;;  %v1439_v25 = vrot.slane %v1422_v21, %v1438_v20 }
 0x3e3   :  { %1889 = vmatpush1.bf16.msra.mxu1 %v6577_v27  ;;  %1930 = vmatpush1.bf16.msra.mxu0 %v6580_v28 }
 0x3e4   :  { %1890 = vmatprep.subr.bf16.mxu1 %v6585_v29  ;;  %1931 = vmatprep.subr.bf16.mxu0 %v6588_v30 }
 0x3e7   :  { %1891 = vmatpush1.bf16.msra.mxu1 %v6583_v31  ;;  %1932 = vmatpush1.bf16.msra.mxu0 %v6586_v32 }
 0x3e8   :  { %1892 = vmatprep.subr.bf16.mxu1 %v6591_v33  ;;  %1933 = vmatprep.subr.bf16.mxu0 %v6594_v34 }
 0x3eb   :  { %1893 = vmatpush1.bf16.msra.mxu1 %v6589_v35  ;;  %1934 = vmatpush1.bf16.msra.mxu0 %v6592_v36 }
 0x3ec   :  { %2168 = vmatprep.subr.bf16.mxu1 %v7911_v37  ;;  %2209 = vmatprep.subr.bf16.mxu0 %v7913_v38 }
 0x3ee   :  { %1911 = vmatmul.mubr.bf16.vlgmr.msra.gmra.mrb[8].mxu1 %v7905_v8  ;;  %1952 = vmatmul.mubr.bf16.vlgmr.msra.gmra.mrb[16].mxu0 %v7905_v8 }
 0x3ef   :  { %2169 = vmatpush1.bf16.msra.mxu1 %v7915_v39  ;;  %2210 = vmatpush1.bf16.msra.mxu0 %v7917_v40 }
 0x3f0   :  { %2170 = vmatprep.subr.bf16.mxu1 %v7921_v41  ;;  %2211 = vmatprep.subr.bf16.mxu0 %v7923_v42 }
 0x3f1   :  { %2200 = vmatprep.mubr.bf16.mxu1 %v8827_v1  ;;  %2241 = vmatprep.mubr.bf16.mxu0 %v8827_v1 }
 0x3f3   :  { %2171 = vmatpush1.bf16.msra.mxu1 %v7929_v43  ;;  %2212 = vmatpush1.bf16.msra.mxu0 %v7931_v44 }
 0x3f4   :  { %2172 = vmatprep.subr.bf16.mxu1 %v7935_v45  ;;  %2213 = vmatprep.subr.bf16.mxu0 %v7937_v46 }
 0x3f7   :  { %2173 = vmatpush1.bf16.msra.mxu1 %v7943_v47  ;;  %2214 = vmatpush1.bf16.msra.mxu0 %v7945_v48 }
 0x3f8   :  { %2174 = vmatprep.subr.bf16.mxu1 %v7949_v49  ;;  %2215 = vmatprep.subr.bf16.mxu0 %v7951_v50 }
 0x3fb   :  { %2175 = vmatpush1.bf16.msra.mxu1 %v7955_v51  ;;  %2216 = vmatpush1.bf16.msra.mxu0 %v7957_v52 }
 0x3fc   :  { %2176 = vmatprep.subr.bf16.mxu1 %v7961_v53  ;;  %2217 = vmatprep.subr.bf16.mxu0 %v7963_v54 }
 0x3ff   :  { %2177 = vmatpush1.bf16.msra.mxu1 %v7967_v55  ;;  %2218 = vmatpush1.bf16.msra.mxu0 %v7969_v56 }
 0x400   :  { %2178 = vmatprep.subr.bf16.mxu1 %v7973_v57  ;;  %2219 = vmatprep.subr.bf16.mxu0 %v7975_v58 }
 0x403   :  { %2179 = vmatpush1.bf16.msra.mxu1 %v7979_v59  ;;  %2220 = vmatpush1.bf16.msra.mxu0 %v7981_v13 }
 0x404   :  { %2180 = vmatprep.subr.bf16.mxu1 %v7985_v60  ;;  %2221 = vmatprep.subr.bf16.mxu0 %v7987_v61 }
 0x407   :  { %2181 = vmatpush1.bf16.msra.mxu1 %v7991_v62  ;;  %2222 = vmatpush1.bf16.msra.mxu0 %v7993_v63 }
 0x408   :  { %2182 = vmatprep.subr.bf16.mxu1 %v7997_v3  ;;  %2223 = vmatprep.subr.bf16.mxu0 %v7999_v4 }
 0x40b   :  { %2183 = vmatpush1.bf16.msra.mxu1 %v8003_v5  ;;  %2224 = vmatpush1.bf16.msra.mxu0 %v8005_v6 }
 0x40c   :  { %2291 = vmatprep.subr.bf16.mxu1 %v7911_v37  ;;  %2332 = vmatprep.subr.bf16.mxu0 %v7913_v38 }
 0x40e   :  { %2201 = vmatmul.mubr.bf16.vlgmr.msra.gmra.mrb[12].mxu1 %v8827_v1  ;;  %2242 = vmatmul.mubr.bf16.vlgmr.msra.gmra.mrb[20].mxu0 %v8827_v1 }
 0x40f   :  { %2292 = vmatpush1.bf16.msra.mxu1 %v7915_v39  ;;  %2333 = vmatpush1.bf16.msra.mxu0 %v7917_v40 }
 0x410   :  { %2293 = vmatprep.subr.bf16.mxu1 %v7921_v41  ;;  %2334 = vmatprep.subr.bf16.mxu0 %v7923_v42 }
 0x411   :  { %2323 = vmatprep.mubr.bf16.mxu1 %v8827_v1  ;;  %2364 = vmatprep.mubr.bf16.mxu0 %v8827_v1 }
 0x413   :  { %2294 = vmatpush1.bf16.msra.mxu1 %v7929_v43  ;;  %2335 = vmatpush1.bf16.msra.mxu0 %v7931_v44 }
 0x414   :  { %2295 = vmatprep.subr.bf16.mxu1 %v7935_v45  ;;  %2336 = vmatprep.subr.bf16.mxu0 %v7937_v46 }
 0x417   :  { %2296 = vmatpush1.bf16.msra.mxu1 %v7943_v47  ;;  %2337 = vmatpush1.bf16.msra.mxu0 %v7945_v48 }
 0x418   :  { %2297 = vmatprep.subr.bf16.mxu1 %v7949_v49  ;;  %2338 = vmatprep.subr.bf16.mxu0 %v7951_v50 }
 0x41b   :  { %2298 = vmatpush1.bf16.msra.mxu1 %v7955_v51  ;;  %2339 = vmatpush1.bf16.msra.mxu0 %v7957_v52 }
 0x41c   :  { %2299 = vmatprep.subr.bf16.mxu1 %v7961_v53  ;;  %2340 = vmatprep.subr.bf16.mxu0 %v7963_v54 }
 0x41f   :  { %2300 = vmatpush1.bf16.msra.mxu1 %v7967_v55  ;;  %2341 = vmatpush1.bf16.msra.mxu0 %v7969_v56 }
 0x420   :  { %2301 = vmatprep.subr.bf16.mxu1 %v7973_v57  ;;  %2342 = vmatprep.subr.bf16.mxu0 %v7975_v58 }
 0x423   :  { %2302 = vmatpush1.bf16.msra.mxu1 %v7979_v59  ;;  %2343 = vmatpush1.bf16.msra.mxu0 %v7981_v13 }
 0x424   :  { %2303 = vmatprep.subr.bf16.mxu1 %v7985_v60  ;;  %2344 = vmatprep.subr.bf16.mxu0 %v7987_v61 }
 0x427   :  { %2304 = vmatpush1.bf16.msra.mxu1 %v7991_v62  ;;  %2345 = vmatpush1.bf16.msra.mxu0 %v7993_v63 }
 0x428   :  { %2305 = vmatprep.subr.bf16.mxu1 %v7997_v3  ;;  %2346 = vmatprep.subr.bf16.mxu0 %v7999_v4 }
 0x42b   :  { %2306 = vmatpush1.bf16.msra.mxu1 %v8003_v5  ;;  %2347 = vmatpush1.bf16.msra.mxu0 %v8005_v6 }
 0x42c   :  { %2420 = vmatprep.subr.bf16.mxu1 %v7911_v37  ;;  %2461 = vmatprep.subr.bf16.mxu0 %v7913_v38 }
 0x4a1   :  { %v1638_v7 = vpop.f32.mrb[4].mxu1  ;;  %v1679_v8 = vpop.f32.mrb[12].mxu0 }
 0x4a2   :  { %v1640_v9 = vpop.f32.mrb[5].mxu1  ;;  %v1681_v2 = vpop.f32.mrb[13].mxu0  ;;  %v1639_v26 = vadd.f32 %v1638_v7, %v1427_v22  ;;  %v1680_v27 = vadd.f32 %v1679_v8, %v1435_v23 }
 0x4a3   :  { %v1642_v10 = vpop.f32.mrb[6].mxu1  ;;  %v1683_v11 = vpop.f32.mrb[14].mxu0  ;;  %v1641_v28 = vadd.f32 %v1640_v9, %v1431_v24  ;;  %v1682_v29 = vadd.f32 %v1681_v2, %v1439_v25 }
 0x4a4   :  { %v1643_v12 = vpop.f32.mrb[7].mxu1  ;;  %v1684_v14 = vpop.f32.mrb[15].mxu0 }
 0x4c1   :  { %v1912_v30 = vpop.f32.mrb[8].mxu1  ;;  %v1953_v31 = vpop.f32.mrb[16].mxu0 }
 0x4c2   :  { %v1964_v32 = vrot.slane %v1912_v30, 6  ;;  %v2278_v33 = vrot.slane %v1912_v30, 2  ;;  %v1966_v34 = vrot.slane %v1953_v31, 6  ;;  %v2280_v35 = vrot.slane %v1953_v31, 2  ;;  %v1914_v36 = vpop.f32.mrb[9].mxu1  ;;  %v1955_v10 = vpop.f32.mrb[17].mxu0 }
 0x4c3   :  { %v1965_v11 = vrot.slane %v1914_v36, 6  ;;  %v2279_v12 = vrot.slane %v1914_v36, 2  ;;  %v1967_v14 = vrot.slane %v1955_v10, 6  ;;  %v2281_v15 = vrot.slane %v1955_v10, 2  ;;  %v1916_v0 = vpop.f32.mrb[10].mxu1  ;;  %v1957_v1 = vpop.f32.mrb[18].mxu0 }
 0x4c4   :  { %v8069_v16 = vadd.f32 %v2278_v33, %v1639_v26  ;;  %v8071_v7 = vadd.f32 %v2280_v35, %v1680_v27  ;;  %v1917_v8 = vpop.f32.mrb[11].mxu1  ;;  %v1958_v9 = vpop.f32.mrb[19].mxu0  ;;  %v8073_v2 = vadd.f32 %v1964_v32, %v1639_v26  ;;  %v8075_v21 = vadd.f32 %v1966_v34, %v1680_v27 }
 0x4c5   :  { %v8077_v22 = vadd.f32 %v2279_v12, %v1641_v28  ;;  %v8079_v23 = vadd.f32 %v2281_v15, %v1682_v29  ;;  %v8081_v24 = vadd.f32 %v1965_v11, %v1641_v28  ;;  %v8083_v25 = vadd.f32 %v1967_v14, %v1682_v29 }
 0x4e1   :  { %v2202_v0 = vpop.f32.mrb[12].mxu1  ;;  %v2243_v1 = vpop.f32.mrb[20].mxu0 }
 0x4e2   :  { %v2250_v30 = vadd.f32 %v2202_v0, %v8073_v2  ;;  %v2204_v31 = vpop.f32.mrb[13].mxu1  ;;  %v2245_v33 = vpop.f32.mrb[21].mxu0  ;;  %v2252_v11 = vadd.f32 %v2243_v1, %v8075_v21 }
 0x4e3   :  { %v2251_v35 = vadd.f32 %v2204_v31, %v8081_v24  ;;  %v2206_v26 = vpop.f32.mrb[14].mxu1  ;;  %v2247_v32 = vpop.f32.mrb[22].mxu0  ;;  %v2253_v28 = vadd.f32 %v2245_v33, %v8083_v25 }
 0x4e4   :  { %v5758_v27 = vmul.f32 -1.442695, %v2250_v30  ;;  %v2207_v34 = vpop.f32.mrb[15].mxu1  ;;  %v2248_v36 = vpop.f32.mrb[23].mxu0 }
 0x4e5   :  { %v5759_v10 = vmul.f32 -1.442695, %v2251_v35  ;;  %v5760_v29 = vmul.f32 -1.442695, %v2253_v28 }
 0x4e6   :  { %6839 = vpow2.f32 %v5758_v27 }
 0x4e7   :  { %6841 = vpow2.f32 %v5759_v10  ;;  %v8851_v10 = vmov 0  }
 0x4e8   :  { %6843 = vpow2.f32 %v5760_v29 }
 0x4e9   :  { %6845 = vtanh.f32 %v2252_v11 }
 0x4f0   :  { %v6840_v12 = vpop.eup %6839 }
 0x4f1   :  { %v6842_v14 = vpop.eup %6841  ;;  %v2257_v15 = vadd.f32 1.0, %v6840_v12 }
 0x4f2   :  { %v2263_v8 = vadd.f32 1.0, %v6842_v14  ;;  %v6844_v9 = vpop.eup %6843 }
 0x4f3   :  { %6847 = vrcp.f32 %v2257_v15  ;;  %v6846_v0 = vpop.eup %6845  ;;  %v2270_v26 = vadd.f32 1.0, %v6844_v9 }
 0x4f4   :  { %6849 = vrcp.f32 %v2263_v8 }
 0x4f5   :  { %6851 = vrcp.f32 %v2270_v26 }
 0x4fd   :  { %v6848_v30 = vpop.eup %6847 }
 0x4fe   :  { %v6850_v31 = vpop.eup %6849  ;;  %v2274_v35 = vmul.f32 %v6848_v30, %v6846_v0 }
 0x4ff   :  { %v2273_v32 = vmul.f32 0.0, %v6850_v31  ;;  %v6852_v1 = vpop.eup %6851 }
 0x501   :  { %v8089_v27 = vadd.f32 %v2274_v35, %v2273_v32 }
 0x503   :  { %6853 = vtanh.f32 %v8089_v27 }
 0x50d   :  { %v6854_v33 = vpop.eup %6853 }
 0x50e   :  { %v8092_v34 = vmul.f32 %v6854_v33, %v6852_v1 }
 0x510   :  { %v2290_v36 = vpack.c.bf16 %v8092_v34, %v8092_v34 }
 0x512   :  { %2324 = vmatmul.mubr.bf16.vlgmr.msra.gmra.mrb[16].mxu1 %v2290_v36  ;;  %2365 = vmatmul.mubr.bf16.vlgmr.msra.gmra.mrb[24].mxu0 %v2290_v36 }
 0x513   :  { %2421 = vmatpush1.bf16.msra.mxu1 %v7915_v39  ;;  %2462 = vmatpush1.bf16.msra.mxu0 %v7917_v40 }
 0x514   :  { %2422 = vmatprep.subr.bf16.mxu1 %v7921_v41  ;;  %2463 = vmatprep.subr.bf16.mxu0 %v7923_v42 }
 0x515   :  { %2452 = vmatprep.mubr.bf16.mxu1 %v8851_v10  ;;  %2493 = vmatprep.mubr.bf16.mxu0 %v8851_v10 }
 0x517   :  { %2423 = vmatpush1.bf16.msra.mxu1 %v7929_v43  ;;  %2464 = vmatpush1.bf16.msra.mxu0 %v7931_v44 }
 0x518   :  { %2424 = vmatprep.subr.bf16.mxu1 %v7935_v45  ;;  %2465 = vmatprep.subr.bf16.mxu0 %v7937_v46 }
 0x51b   :  { %2425 = vmatpush1.bf16.msra.mxu1 %v7943_v47  ;;  %2466 = vmatpush1.bf16.msra.mxu0 %v7945_v48 }
 0x51c   :  { %2426 = vmatprep.subr.bf16.mxu1 %v7949_v49  ;;  %2467 = vmatprep.subr.bf16.mxu0 %v7951_v50 }
 0x51f   :  { %2427 = vmatpush1.bf16.msra.mxu1 %v7955_v51  ;;  %2468 = vmatpush1.bf16.msra.mxu0 %v7957_v52 }
 0x520   :  { %2428 = vmatprep.subr.bf16.mxu1 %v7961_v53  ;;  %2469 = vmatprep.subr.bf16.mxu0 %v7963_v54 }
 0x523   :  { %2429 = vmatpush1.bf16.msra.mxu1 %v7967_v55  ;;  %2470 = vmatpush1.bf16.msra.mxu0 %v7969_v56 }
 0x524   :  { %2430 = vmatprep.subr.bf16.mxu1 %v7973_v57  ;;  %2471 = vmatprep.subr.bf16.mxu0 %v7975_v58 }
 0x527   :  { %2431 = vmatpush1.bf16.msra.mxu1 %v7979_v59  ;;  %2472 = vmatpush1.bf16.msra.mxu0 %v7981_v13 }
 0x528   :  { %2432 = vmatprep.subr.bf16.mxu1 %v7985_v60  ;;  %2473 = vmatprep.subr.bf16.mxu0 %v7987_v61 }
 0x52b   :  { %2433 = vmatpush1.bf16.msra.mxu1 %v7991_v62  ;;  %2474 = vmatpush1.bf16.msra.mxu0 %v7993_v63 }
 0x52c   :  { %2434 = vmatprep.subr.bf16.mxu1 %v7997_v3  ;;  %2475 = vmatprep.subr.bf16.mxu0 %v7999_v4 }
 0x52f   :  { %2435 = vmatpush1.bf16.msra.mxu1 %v8003_v5  ;;  %2476 = vmatpush1.bf16.msra.mxu0 %v8005_v6 }
 0x530   :  { %2549 = vmatprep.subr.bf16.mxu1 %v7911_v37  ;;  %2590 = vmatprep.subr.bf16.mxu0 %v7913_v38 }
 0x5e5   :  { %v2325_v28 = vpop.f32.mrb[16].mxu1  ;;  %v2366_v29 = vpop.f32.mrb[24].mxu0 }
 0x5e6   :  { %v2377_v11 = vrot.slane %v2325_v28, 6  ;;  %v2327_v12 = vpop.f32.mrb[17].mxu1  ;;  %v2368_v14 = vpop.f32.mrb[25].mxu0  ;;  %v2379_v38 = vrot.slane %v2366_v29, 6 }
 0x5e7   :  { %v2378_v15 = vrot.slane %v2327_v12, 6  ;;  %v2329_v8 = vpop.f32.mrb[18].mxu1  ;;  %v2370_v9 = vpop.f32.mrb[26].mxu0  ;;  %v2380_v1 = vrot.slane %v2368_v14, 6  ;;  %v2409_v14 = vrot.slane %v8089_v27, 6 }
 0x5e8   :  { %v2385_v0 = vadd.f32 %v2377_v11, %v8069_v16  ;;  %v2330_v30 = vpop.f32.mrb[19].mxu1  ;;  %v2371_v31 = vpop.f32.mrb[27].mxu0  ;;  %v2387_v36 = vadd.f32 %v2379_v38, %v8071_v7 }
 0x5e9   :  { %v2386_v35 = vadd.f32 %v2378_v15, %v8077_v22  ;;  %v2388_v37 = vadd.f32 %v2380_v1, %v8079_v23 }
 0x5ea   :  { %v5761_v26 = vmul.f32 -1.442695, %v2385_v0 }
 0x5eb   :  { %v5762_v32 = vmul.f32 -1.442695, %v2386_v35  ;;  %v5763_v33 = vmul.f32 -1.442695, %v2388_v37 }
 0x5ec   :  { %6855 = vpow2.f32 %v5761_v26 }
 0x5ed   :  { %6857 = vpow2.f32 %v5762_v32 }
 0x5ee   :  { %6859 = vpow2.f32 %v5763_v33 }
 0x5ef   :  { %6861 = vtanh.f32 %v2387_v36 }
 0x5f6   :  { %v6856_v28 = vpop.eup %6855 }
 0x5f7   :  { %v6858_v12 = vpop.eup %6857  ;;  %v2392_v8 = vadd.f32 1.0, %v6856_v28 }
 0x5f8   :  { %v2398_v11 = vadd.f32 1.0, %v6858_v12  ;;  %v6860_v15 = vpop.eup %6859  ;;  %v6645_v12 = vld [vmem:[#allocation16 + $0x4] ss:$16 sps:$4 sm:$0xff]  }
 0x5f9   :  { %6863 = vrcp.f32 %v2392_v8  ;;  %v6862_v9 = vpop.eup %6861  ;;  %v2405_v35 = vadd.f32 1.0, %v6860_v15  ;;  %v6648_v8 = vld [vmem:[#allocation16 + $0xc] ss:$16 sps:$4 sm:$0xff]   ;;  %v6646_v15 = vld [vmem:[#allocation16 + $0x8] ss:$16 sps:$4 sm:$0xff]  }
 0x5fa   :  { %6865 = vrcp.f32 %v2398_v11  ;;  %v6643_v11 = vld [vmem:[#allocation16] ss:$16 sps:$4 sm:$0xff]  }
 0x5fb   :  { %6867 = vrcp.f32 %v2405_v35  ;;  %v6660_v35 = vld [vmem:[#allocation16 + $0x4c] ss:$16 sps:$4 sm:$0xff]  }
 0x603   :  { %v6864_v0 = vpop.eup %6863 }
 0x604   :  { %v6866_v30 = vpop.eup %6865  ;;  %v2412_v31 = vmul.f32 %v6864_v0, %v6862_v9  ;;  %v6651_v9 = vld [vmem:[#allocation16 + $0x24] ss:$16 sps:$4 sm:$0xff]   ;;  %v6654_v0 = vld [vmem:[#allocation16 + $0x2c] ss:$16 sps:$4 sm:$0xff]  }
 0x605   :  { %v2411_v29 = vmul.f32 %v6866_v30, %v2409_v14  ;;  %v6868_v32 = vpop.eup %6867  ;;  %v6649_v14 = vld [vmem:[#allocation16 + $0x20] ss:$16 sps:$4 sm:$0xff]   ;;  %v6652_v30 = vld [vmem:[#allocation16 + $0x28] ss:$16 sps:$4 sm:$0xff]  }
 0x607   :  { %v8135_v26 = vadd.f32 %v2412_v31, %v2411_v29  ;;  %v6657_v31 = vld [vmem:[#allocation16 + $0x44] ss:$16 sps:$4 sm:$0xff]   ;;  %v6655_v29 = vld [vmem:[#allocation16 + $0x40] ss:$16 sps:$4 sm:$0xff]  }
 0x609   :  { %6869 = vtanh.f32 %v8135_v26 }
 0x613   :  { %v6870_v1 = vpop.eup %6869 }
 0x614   :  { %v8138_v37 = vmul.f32 %v6870_v1, %v6868_v32  ;;  %v6663_v32 = vld [vmem:[#allocation16 + $0x64] ss:$16 sps:$4 sm:$0xff]   ;;  %v6666_v1 = vld [vmem:[#allocation16 + $0x6c] ss:$16 sps:$4 sm:$0xff]  }
 0x616   :  { %v2416_v38 = vpack.c.bf16 %v8138_v37, %v8138_v37 }
 0x618   :  { %v2418_v33 = vrot.slane %v2416_v38, 1  ;;  %v6661_v38 = vld [vmem:[#allocation16 + $0x60] ss:$16 sps:$4 sm:$0xff]  }
 0x61a   :  { %2453 = vmatmul.mubr.bf16.vlgmr.msra.gmra.mrb[20].mxu1 %v2418_v33  ;;  %2494 = vmatmul.mubr.bf16.vlgmr.msra.gmra.mrb[28].mxu0 %v2418_v33  ;;  %v6664_v33 = vld [vmem:[#allocation16 + $0x68] ss:$16 sps:$4 sm:$0xff]  }
 0x61b   :  { %2550 = vmatpush1.bf16.msra.mxu1 %v7915_v39  ;;  %2591 = vmatpush1.bf16.msra.mxu0 %v7917_v40 }
 0x61c   :  { %2551 = vmatprep.subr.bf16.mxu1 %v7921_v41  ;;  %2592 = vmatprep.subr.bf16.mxu0 %v7923_v42 }
 0x61d   :  { %2581 = vmatprep.mubr.bf16.mxu1 %v8851_v10  ;;  %2622 = vmatprep.mubr.bf16.mxu0 %v8851_v10 }
 0x61f   :  { %2552 = vmatpush1.bf16.msra.mxu1 %v7929_v43  ;;  %2593 = vmatpush1.bf16.msra.mxu0 %v7931_v44 }
 0x620   :  { %2553 = vmatprep.subr.bf16.mxu1 %v7935_v45  ;;  %2594 = vmatprep.subr.bf16.mxu0 %v7937_v46 }
 0x623   :  { %2554 = vmatpush1.bf16.msra.mxu1 %v7943_v47  ;;  %2595 = vmatpush1.bf16.msra.mxu0 %v7945_v48 }
 0x624   :  { %2555 = vmatprep.subr.bf16.mxu1 %v7949_v49  ;;  %2596 = vmatprep.subr.bf16.mxu0 %v7951_v50 }
 0x627   :  { %2556 = vmatpush1.bf16.msra.mxu1 %v7955_v51  ;;  %2597 = vmatpush1.bf16.msra.mxu0 %v7957_v52 }
 0x628   :  { %2557 = vmatprep.subr.bf16.mxu1 %v7961_v53  ;;  %2598 = vmatprep.subr.bf16.mxu0 %v7963_v54 }
 0x62b   :  { %2558 = vmatpush1.bf16.msra.mxu1 %v7967_v55  ;;  %2599 = vmatpush1.bf16.msra.mxu0 %v7969_v56 }
 0x62c   :  { %2559 = vmatprep.subr.bf16.mxu1 %v7973_v57  ;;  %2600 = vmatprep.subr.bf16.mxu0 %v7975_v58 }
 0x62f   :  { %2560 = vmatpush1.bf16.msra.mxu1 %v7979_v59  ;;  %2601 = vmatpush1.bf16.msra.mxu0 %v7981_v13 }
 0x630   :  { %2561 = vmatprep.subr.bf16.mxu1 %v7985_v60  ;;  %2602 = vmatprep.subr.bf16.mxu0 %v7987_v61 }
 0x633   :  { %2562 = vmatpush1.bf16.msra.mxu1 %v7991_v62  ;;  %2603 = vmatpush1.bf16.msra.mxu0 %v7993_v63 }
 0x634   :  { %2563 = vmatprep.subr.bf16.mxu1 %v7997_v3  ;;  %2604 = vmatprep.subr.bf16.mxu0 %v7999_v4  ;;  %v2538_v3 = vrot.slane %v8135_v26, 6  ;;  %v6658_v26 = vld [vmem:[#allocation16 + $0x48] ss:$16 sps:$4 sm:$0xff]  }
 0x637   :  { %2564 = vmatpush1.bf16.msra.mxu1 %v8003_v5  ;;  %2605 = vmatpush1.bf16.msra.mxu0 %v8005_v6 }
 0x638   :  { %2908 = vmatprep.subr.bf16.mxu1 %v6645_v12  ;;  %2949 = vmatprep.subr.bf16.mxu0 %v6648_v8 }
 0x6ed   :  { %v2454_v39 = vpop.f32.mrb[20].mxu1  ;;  %v2495_v40 = vpop.f32.mrb[28].mxu0 }
 0x6ee   :  { %v2506_v41 = vrot.slane %v2454_v39, 4  ;;  %v2456_v42 = vpop.f32.mrb[21].mxu1  ;;  %v2497_v43 = vpop.f32.mrb[29].mxu0  ;;  %v2508_v55 = vrot.slane %v2495_v40, 4  ;;  %v6669_v39 = vld [vmem:[#allocation16 + $0x84] ss:$16 sps:$4 sm:$0xff]  }
 0x6ef   :  { %v2507_v44 = vrot.slane %v2456_v42, 4  ;;  %v2458_v45 = vpop.f32.mrb[22].mxu1  ;;  %v2499_v46 = vpop.f32.mrb[30].mxu0  ;;  %v2509_v53 = vrot.slane %v2497_v43, 4  ;;  %v6672_v40 = vld [vmem:[#allocation16 + $0x8c] ss:$16 sps:$4 sm:$0xff]  }
 0x6f0   :  { %v2514_v47 = vadd.f32 %v2506_v41, %v8073_v2  ;;  %v2459_v48 = vpop.f32.mrb[23].mxu1  ;;  %v2500_v49 = vpop.f32.mrb[31].mxu0  ;;  %v2516_v57 = vadd.f32 %v2508_v55, %v8075_v21  ;;  %v6667_v41 = vld [vmem:[#allocation16 + $0x80] ss:$16 sps:$4 sm:$0xff]   ;;  %v6670_v42 = vld [vmem:[#allocation16 + $0x88] ss:$16 sps:$4 sm:$0xff]  }
 0x6f1   :  { %v2515_v50 = vadd.f32 %v2507_v44, %v8081_v24  ;;  %v2517_v54 = vadd.f32 %v2509_v53, %v8083_v25  ;;  %v6675_v43 = vld [vmem:[#allocation16 + $0xa4] ss:$16 sps:$4 sm:$0xff]   ;;  %v6678_v44 = vld [vmem:[#allocation16 + $0xac] ss:$16 sps:$4 sm:$0xff]   ;;  %v6673_v45 = vld [vmem:[#allocation16 + $0xa0] ss:$16 sps:$4 sm:$0xff]  }
 0x6f2   :  { %v5764_v51 = vmul.f32 -1.442695, %v2514_v47  ;;  %v6676_v46 = vld [vmem:[#allocation16 + $0xa8] ss:$16 sps:$4 sm:$0xff]   ;;  %v6681_v47 = vld [vmem:[#allocation16 + $0xc4] ss:$16 sps:$4 sm:$0xff]  }
 0x6f3   :  { %v5765_v52 = vmul.f32 -1.442695, %v2515_v50  ;;  %v5766_v56 = vmul.f32 -1.442695, %v2517_v54  ;;  %v6684_v48 = vld [vmem:[#allocation16 + $0xcc] ss:$16 sps:$4 sm:$0xff]  }
 0x6f4   :  { %6871 = vpow2.f32 %v5764_v51  ;;  %v6679_v49 = vld [vmem:[#allocation16 + $0xc0] ss:$16 sps:$4 sm:$0xff]   ;;  %v6682_v50 = vld [vmem:[#allocation16 + $0xc8] ss:$16 sps:$4 sm:$0xff]   ;;  %v6687_v51 = vld [vmem:[#allocation16 + $0xe4] ss:$16 sps:$4 sm:$0xff]  }
 0x6f5   :  { %6873 = vpow2.f32 %v5765_v52  ;;  %v6690_v52 = vld [vmem:[#allocation16 + $0xec] ss:$16 sps:$4 sm:$0xff]   ;;  %v6685_v53 = vld [vmem:[#allocation16 + $0xe0] ss:$16 sps:$4 sm:$0xff]   ;;  %v6688_v54 = vld [vmem:[#allocation16 + $0xe8] ss:$16 sps:$4 sm:$0xff]  }
 0x6f6   :  { %6875 = vpow2.f32 %v5766_v56  ;;  %v6693_v55 = vld [vmem:[#allocation17 + $0x4] ss:$16 sps:$4 sm:$0xff]   ;;  %v6696_v56 = vld [vmem:[#allocation17 + $0xc] ss:$16 sps:$4 sm:$0xff]  }
 0x6f7   :  { %6877 = vtanh.f32 %v2516_v57 }
 0x6fe   :  { %v6872_v58 = vpop.eup %6871 }
 0x6ff   :  { %v6874_v59 = vpop.eup %6873  ;;  %v2521_v13 = vadd.f32 1.0, %v6872_v58 }
 0x700   :  { %v2527_v60 = vadd.f32 1.0, %v6874_v59  ;;  %v6876_v61 = vpop.eup %6875 }
 0x701   :  { %6879 = vrcp.f32 %v2521_v13  ;;  %v6878_v62 = vpop.eup %6877  ;;  %v2534_v6 = vadd.f32 1.0, %v6876_v61 }
 0x702   :  { %6881 = vrcp.f32 %v2527_v60 }
 0x703   :  { %6883 = vrcp.f32 %v2534_v6 }
 0x70b   :  { %v6880_v63 = vpop.eup %6879 }
 0x70c   :  { %v6882_v4 = vpop.eup %6881  ;;  %v2541_v5 = vmul.f32 %v6880_v63, %v6878_v62 }
 0x70d   :  { %v2540_v2 = vmul.f32 %v6882_v4, %v2538_v3  ;;  %v6884_v21 = vpop.eup %6883 }
 0x70f   :  { %v8179_v24 = vadd.f32 %v2541_v5, %v2540_v2 }
 0x711   :  { %6885 = vtanh.f32 %v8179_v24 }
 0x71b   :  { %v6886_v25 = vpop.eup %6885 }
 0x71c   :  { %v8182_v27 = vmul.f32 %v6886_v25, %v6884_v21 }
 0x71e   :  { %v2545_v36 = vpack.c.bf16 %v8182_v27, %v8182_v27 }
 0x720   :  { %v2547_v28 = vrot.slane %v2545_v36, 2 }
 0x722   :  { %2582 = vmatmul.mubr.bf16.vlgmr.msra.gmra.mrb[24].mxu1 %v2547_v28  ;;  %2623 = vmatmul.mubr.bf16.vlgmr.msra.gmra.mrb[32].mxu0 %v2547_v28 }
 0x723   :  { %2940 = vmatprep.mubr.bf16.mxu1 %v8851_v10  ;;  %2981 = vmatprep.mubr.bf16.mxu0 %v8851_v10 }
 0x724   :  { %2909 = vmatpush1.bf16.msra.mxu1 %v6643_v11  ;;  %2950 = vmatpush1.bf16.msra.mxu0 %v6646_v15 }
 0x725   :  { %2910 = vmatprep.subr.bf16.mxu1 %v6651_v9  ;;  %2951 = vmatprep.subr.bf16.mxu0 %v6654_v0 }
 0x728   :  { %2911 = vmatpush1.bf16.msra.mxu1 %v6649_v14  ;;  %2952 = vmatpush1.bf16.msra.mxu0 %v6652_v30  ;;  %v2667_v30 = vrot.slane %v8179_v24, 6 }
 0x729   :  { %2912 = vmatprep.subr.bf16.mxu1 %v6657_v31  ;;  %2953 = vmatprep.subr.bf16.mxu0 %v6660_v35 }
 0x72c   :  { %2913 = vmatpush1.bf16.msra.mxu1 %v6655_v29  ;;  %2954 = vmatpush1.bf16.msra.mxu0 %v6658_v26 }
 0x72d   :  { %2914 = vmatprep.subr.bf16.mxu1 %v6663_v32  ;;  %2955 = vmatprep.subr.bf16.mxu0 %v6666_v1  ;;  %v2679_v1 = vrot.slane %v8182_v27, 2 }
 0x72f   :  { %v2681_v24 = vsel %vm925_vm11, %v8138_v37, %v2679_v1  ;;  %v8262_v1 = vld [vmem:[#allocation19 + $0x84] ss:$16 sps:$4 sm:$0xff]  }
 0x730   :  { %2915 = vmatpush1.bf16.msra.mxu1 %v6661_v38  ;;  %2956 = vmatpush1.bf16.msra.mxu0 %v6664_v33 }
 0x731   :  { %2916 = vmatprep.subr.bf16.mxu1 %v6669_v39  ;;  %2957 = vmatprep.subr.bf16.mxu0 %v6672_v40  ;;  %v2683_v39 = vrot.slane %v8138_v37, 6  ;;  %v6700_v37 = vld [vmem:[#allocation17 + $0x28] ss:$16 sps:$4 sm:$0xff]  }
 0x734   :  { %2917 = vmatpush1.bf16.msra.mxu1 %v6667_v41  ;;  %2958 = vmatpush1.bf16.msra.mxu0 %v6670_v42  ;;  %v2687_v41 = vrot.slane %v8092_v34, 2  ;;  %v2685_v42 = vsel %vm925_vm11, %v8182_v27, %v2683_v39  ;;  %v6705_v27 = vld [vmem:[#allocation17 + $0x44] ss:$16 sps:$4 sm:$0xff]   ;;  %v8270_v39 = vld [vmem:[#allocation19 + $0x88] ss:$16 sps:$4 sm:$0xff]  }
 0x735   :  { %2918 = vmatprep.subr.bf16.mxu1 %v6675_v43  ;;  %2959 = vmatprep.subr.bf16.mxu0 %v6678_v44 }
 0x738   :  { %2919 = vmatpush1.bf16.msra.mxu1 %v6673_v45  ;;  %2960 = vmatpush1.bf16.msra.mxu0 %v6676_v46  ;;  %v6691_v46 = vld [vmem:[#allocation17] ss:$16 sps:$4 sm:$0xff]  }
 0x739   :  { %2920 = vmatprep.subr.bf16.mxu1 %v6681_v47  ;;  %2961 = vmatprep.subr.bf16.mxu0 %v6684_v48  ;;  %v6694_v47 = vld [vmem:[#allocation17 + $0x8] ss:$16 sps:$4 sm:$0xff]  }
 0x73c   :  { %2921 = vmatpush1.bf16.msra.mxu1 %v6679_v49  ;;  %2962 = vmatpush1.bf16.msra.mxu0 %v6682_v50  ;;  %v6699_v50 = vld [vmem:[#allocation17 + $0x24] ss:$16 sps:$4 sm:$0xff]  }
 0x73d   :  { %2922 = vmatprep.subr.bf16.mxu1 %v6687_v51  ;;  %2963 = vmatprep.subr.bf16.mxu0 %v6690_v52  ;;  %v6702_v51 = vld [vmem:[#allocation17 + $0x2c] ss:$16 sps:$4 sm:$0xff]  }
 0x73e   :  { %v6708_v52 = vld [vmem:[#allocation17 + $0x4c] ss:$16 sps:$4 sm:$0xff]  }
 0x740   :  { %2923 = vmatpush1.bf16.msra.mxu1 %v6685_v53  ;;  %2964 = vmatpush1.bf16.msra.mxu0 %v6688_v54  ;;  %v6703_v53 = vld [vmem:[#allocation17 + $0x40] ss:$16 sps:$4 sm:$0xff]   ;;  %v6706_v54 = vld [vmem:[#allocation17 + $0x48] ss:$16 sps:$4 sm:$0xff]  }
 0x741   :  { %3182 = vmatprep.subr.bf16.mxu1 %v6693_v55  ;;  %3223 = vmatprep.subr.bf16.mxu0 %v6696_v56  ;;  %v6711_v55 = vld [vmem:[#allocation17 + $0x64] ss:$16 sps:$4 sm:$0xff]   ;;  %v6714_v56 = vld [vmem:[#allocation17 + $0x6c] ss:$16 sps:$4 sm:$0xff]  }
 0x7f5   :  { %v2583_v57 = vpop.f32.mrb[24].mxu1  ;;  %v2624_v58 = vpop.f32.mrb[32].mxu0 }
 0x7f6   :  { %v2635_v59 = vrot.slane %v2583_v57, 2  ;;  %v2585_v13 = vpop.f32.mrb[25].mxu1  ;;  %v2626_v60 = vpop.f32.mrb[33].mxu0  ;;  %v2637_v28 = vrot.slane %v2624_v58, 2  ;;  %v6709_v57 = vld [vmem:[#allocation17 + $0x60] ss:$16 sps:$4 sm:$0xff]  }
 0x7f7   :  { %v2636_v61 = vrot.slane %v2585_v13, 2  ;;  %v2587_v62 = vpop.f32.mrb[26].mxu1  ;;  %v2628_v63 = vpop.f32.mrb[34].mxu0  ;;  %v2638_v25 = vrot.slane %v2626_v60, 2  ;;  %v6712_v58 = vld [vmem:[#allocation17 + $0x68] ss:$16 sps:$4 sm:$0xff]  }
 0x7f8   :  { %v2643_v3 = vadd.f32 %v2635_v59, %v8069_v16  ;;  %v2588_v4 = vpop.f32.mrb[27].mxu1  ;;  %v2629_v5 = vpop.f32.mrb[35].mxu0  ;;  %v2645_v8 = vadd.f32 %v2637_v28, %v8071_v7  ;;  %v6717_v59 = vld [vmem:[#allocation17 + $0x84] ss:$16 sps:$4 sm:$0xff]   ;;  %v6720_v13 = vld [vmem:[#allocation17 + $0x8c] ss:$16 sps:$4 sm:$0xff]  }
 0x7f9   :  { %v2644_v6 = vadd.f32 %v2636_v61, %v8077_v22  ;;  %v2646_v36 = vadd.f32 %v2638_v25, %v8079_v23  ;;  %v6715_v60 = vld [vmem:[#allocation17 + $0x80] ss:$16 sps:$4 sm:$0xff]   ;;  %v6718_v61 = vld [vmem:[#allocation17 + $0x88] ss:$16 sps:$4 sm:$0xff]   ;;  %v6723_v62 = vld [vmem:[#allocation17 + $0xa4] ss:$16 sps:$4 sm:$0xff]  }
 0x7fa   :  { %v5767_v2 = vmul.f32 -1.442695, %v2643_v3  ;;  %v6726_v63 = vld [vmem:[#allocation17 + $0xac] ss:$16 sps:$4 sm:$0xff]   ;;  %v6721_v3 = vld [vmem:[#allocation17 + $0xa0] ss:$16 sps:$4 sm:$0xff]  }
 0x7fb   :  { %v5768_v21 = vmul.f32 -1.442695, %v2644_v6  ;;  %v5769_v12 = vmul.f32 -1.442695, %v2646_v36  ;;  %v6724_v4 = vld [vmem:[#allocation17 + $0xa8] ss:$16 sps:$4 sm:$0xff]  }
 0x7fc   :  { %6887 = vpow2.f32 %v5767_v2  ;;  %v6729_v5 = vld [vmem:[#allocation17 + $0xc4] ss:$16 sps:$4 sm:$0xff]   ;;  %v6732_v6 = vld [vmem:[#allocation17 + $0xcc] ss:$16 sps:$4 sm:$0xff]   ;;  %v6727_v2 = vld [vmem:[#allocation17 + $0xc0] ss:$16 sps:$4 sm:$0xff]  }
 0x7fd   :  { %6889 = vpow2.f32 %v5768_v21  ;;  %v6730_v21 = vld [vmem:[#allocation17 + $0xc8] ss:$16 sps:$4 sm:$0xff]   ;;  %v6735_v25 = vld [vmem:[#allocation17 + $0xe4] ss:$16 sps:$4 sm:$0xff]   ;;  %v6738_v36 = vld [vmem:[#allocation17 + $0xec] ss:$16 sps:$4 sm:$0xff]  }
 0x7fe   :  { %6891 = vpow2.f32 %v5769_v12  ;;  %v6733_v28 = vld [vmem:[#allocation17 + $0xe0] ss:$16 sps:$4 sm:$0xff]   ;;  %v6736_v12 = vld [vmem:[#allocation17 + $0xe8] ss:$16 sps:$4 sm:$0xff]  }
 0x7ff   :  { %6893 = vtanh.f32 %v2645_v8  ;;  %v8212_v8 = vld [vmem:[#allocation19 + $0x4] ss:$16 sps:$4 sm:$0xff]  }
 0x806   :  { %v6888_v11 = vpop.eup %6887 }
 0x807   :  { %v6890_v15 = vpop.eup %6889  ;;  %v2650_v9 = vadd.f32 1.0, %v6888_v11  ;;  %v8214_v11 = vld [vmem:[#allocation19 + $0xc] ss:$16 sps:$4 sm:$0xff]  }
 0x808   :  { %v2656_v16 = vadd.f32 1.0, %v6890_v15  ;;  %v6892_v22 = vpop.eup %6891  ;;  %v8216_v15 = vld [vmem:[#allocation19] ss:$16 sps:$4 sm:$0xff]  }
 0x809   :  { %6895 = vrcp.f32 %v2650_v9  ;;  %v6894_v0 = vpop.eup %6893  ;;  %v2663_v23 = vadd.f32 1.0, %v6892_v22  ;;  %v8218_v9 = vld [vmem:[#allocation19 + $0x8] ss:$16 sps:$4 sm:$0xff]   ;;  %v8224_v22 = vld [vmem:[#allocation19 + $0x2c] ss:$16 sps:$4 sm:$0xff]  }
 0x80a   :  { %6897 = vrcp.f32 %v2656_v16  ;;  %v8222_v16 = vld [vmem:[#allocation19 + $0x24] ss:$16 sps:$4 sm:$0xff]  }
 0x80b   :  { %6899 = vrcp.f32 %v2663_v23  ;;  %v8246_v23 = vld [vmem:[#allocation19 + $0x48] ss:$16 sps:$4 sm:$0xff]  }
 0x813   :  { %v6896_v14 = vpop.eup %6895 }
 0x814   :  { %v6898_v31 = vpop.eup %6897  ;;  %v2670_v35 = vmul.f32 %v6896_v14, %v6894_v0  ;;  %v8230_v0 = vld [vmem:[#allocation19 + $0x20] ss:$16 sps:$4 sm:$0xff]   ;;  %v8232_v14 = vld [vmem:[#allocation19 + $0x28] ss:$16 sps:$4 sm:$0xff]  }
 0x815   :  { %v2669_v29 = vmul.f32 %v6898_v31, %v2667_v30  ;;  %v6900_v7 = vpop.eup %6899  ;;  %v8236_v30 = vld [vmem:[#allocation19 + $0x44] ss:$16 sps:$4 sm:$0xff]   ;;  %v8238_v31 = vld [vmem:[#allocation19 + $0x4c] ss:$16 sps:$4 sm:$0xff]  }
 0x817   :  { %v2671_v26 = vadd.f32 %v2670_v35, %v2669_v29  ;;  %v8244_v35 = vld [vmem:[#allocation19 + $0x40] ss:$16 sps:$4 sm:$0xff]   ;;  %v8250_v29 = vld [vmem:[#allocation19 + $0x64] ss:$16 sps:$4 sm:$0xff]  }
 0x819   :  { %6901 = vtanh.f32 %v2671_v26  ;;  %v8252_v26 = vld [vmem:[#allocation19 + $0x6c] ss:$16 sps:$4 sm:$0xff]  }
 0x823   :  { %v6902_v32 = vpop.eup %6901 }
 0x824   :  { %v2673_v38 = vmul.f32 %v6902_v32, %v6900_v7  ;;  %v8256_v7 = vld [vmem:[#allocation19 + $0x60] ss:$16 sps:$4 sm:$0xff]   ;;  %v8258_v32 = vld [vmem:[#allocation19 + $0x68] ss:$16 sps:$4 sm:$0xff]  }
 0x826   :  { %v2675_v33 = vrot.slane %v2673_v38, 6  ;;  %v2689_v44 = vsel %vm925_vm11, %v2673_v38, %v2687_v41  ;;  %v8264_v38 = vld [vmem:[#allocation19 + $0x8c] ss:$16 sps:$4 sm:$0xff]   ;;  %v8280_v41 = vld [vmem:[#allocation19 + $0xa0] ss:$16 sps:$4 sm:$0xff]  }
 0x828   :  { %v2677_v40 = vsel %vm925_vm11, %v8092_v34, %v2675_v33  ;;  %v6697_v34 = vld [vmem:[#allocation17 + $0x20] ss:$16 sps:$4 sm:$0xff]  }
 0x829   :  { %v2690_v43 = vsel %vm261_vm2, %v2677_v40, %v2681_v24  ;;  %v8268_v33 = vld [vmem:[#allocation19 + $0x80] ss:$16 sps:$4 sm:$0xff]   ;;  %v8274_v40 = vld [vmem:[#allocation19 + $0xa4] ss:$16 sps:$4 sm:$0xff]   ;;  %v8276_v24 = vld [vmem:[#allocation19 + $0xac] ss:$16 sps:$4 sm:$0xff]  }
 0x82a   :  { %v2691_v45 = vsel %vm279_vm4, %v2690_v43, %v2685_v42  ;;  %v8282_v42 = vld [vmem:[#allocation19 + $0xa8] ss:$16 sps:$4 sm:$0xff]   ;;  %v8286_v43 = vld [vmem:[#allocation19 + $0xc4] ss:$16 sps:$4 sm:$0xff]  }
 0x82b   :  { %v2692_v48 = vsel %vm270_vm3, %v2691_v45, %v2689_v44  ;;  %v8288_v44 = vld [vmem:[#allocation19 + $0xcc] ss:$16 sps:$4 sm:$0xff]   ;;  %v8292_v45 = vld [vmem:[#allocation19 + $0xc0] ss:$16 sps:$4 sm:$0xff]  }
 0x82c   :  { %v8206_v49 = vpack.c.bf16 %v2692_v48, %v2692_v48  ;;  %v8300_v48 = vld [vmem:[#allocation19 + $0xec] ss:$16 sps:$4 sm:$0xff]  }
 0x82e   :  { %2941 = vmatmul.mubr.bf16.vlgmr.msra.gmra.mrb[28].mxu1 %v8206_v49  ;;  %2982 = vmatmul.mubr.bf16.vlgmr.msra.gmra.mrb[36].mxu0 %v8206_v49 }
 0x82f   :  { %3183 = vmatpush1.bf16.msra.mxu1 %v6691_v46  ;;  %3224 = vmatpush1.bf16.msra.mxu0 %v6694_v47  ;;  %v8294_v46 = vld [vmem:[#allocation19 + $0xc8] ss:$16 sps:$4 sm:$0xff]   ;;  %v8298_v47 = vld [vmem:[#allocation19 + $0xe4] ss:$16 sps:$4 sm:$0xff]  }
 0x830   :  { %3184 = vmatprep.subr.bf16.mxu1 %v6699_v50  ;;  %3225 = vmatprep.subr.bf16.mxu0 %v6702_v51  ;;  %v8306_v50 = vld [vmem:[#allocation19 + $0xe8] ss:$16 sps:$4 sm:$0xff]  }
 0x831   :  { %3214 = vmatprep.mubr.bf16.mxu1 %v8851_v10  ;;  %3255 = vmatprep.mubr.bf16.mxu0 %v8851_v10 }
 0x833   :  { %3185 = vmatpush1.bf16.msra.mxu1 %v6697_v34  ;;  %3226 = vmatpush1.bf16.msra.mxu0 %v6700_v37 }
 0x834   :  { %3186 = vmatprep.subr.bf16.mxu1 %v6705_v27  ;;  %3227 = vmatprep.subr.bf16.mxu0 %v6708_v52 }
 0x837   :  { %3187 = vmatpush1.bf16.msra.mxu1 %v6703_v53  ;;  %3228 = vmatpush1.bf16.msra.mxu0 %v6706_v54 }
 0x838   :  { %3188 = vmatprep.subr.bf16.mxu1 %v6711_v55  ;;  %3229 = vmatprep.subr.bf16.mxu0 %v6714_v56  ;;  %v2726_v56 = vld [vmem:[%s8806_s14] sm:$0xf] }
 0x83b   :  { %3189 = vmatpush1.bf16.msra.mxu1 %v6709_v57  ;;  %3230 = vmatpush1.bf16.msra.mxu0 %v6712_v58  ;;  %v2731_v57 = vrot.slane %v2726_v56, %v8052_v17  ;;  %v2739_v58 = vrot.slane %v2726_v56, %v8055_v18 }
 0x83c   :  { %3190 = vmatprep.subr.bf16.mxu1 %v6717_v59  ;;  %3231 = vmatprep.subr.bf16.mxu0 %v6720_v13  ;;  %v2735_v59 = vrot.slane %v2726_v56, %v8058_v19 }
 0x83f   :  { %3191 = vmatpush1.bf16.msra.mxu1 %v6715_v60  ;;  %3232 = vmatpush1.bf16.msra.mxu0 %v6718_v61  ;;  %v2743_v60 = vrot.slane %v2726_v56, %v1438_v20 }
 0x840   :  { %3192 = vmatprep.subr.bf16.mxu1 %v6723_v62  ;;  %3233 = vmatprep.subr.bf16.mxu0 %v6726_v63 }
 0x843   :  { %3193 = vmatpush1.bf16.msra.mxu1 %v6721_v3  ;;  %3234 = vmatpush1.bf16.msra.mxu0 %v6724_v4 }
 0x844   :  { %3194 = vmatprep.subr.bf16.mxu1 %v6729_v5  ;;  %3235 = vmatprep.subr.bf16.mxu0 %v6732_v6 }
 0x847   :  { %3195 = vmatpush1.bf16.msra.mxu1 %v6727_v2  ;;  %3236 = vmatpush1.bf16.msra.mxu0 %v6730_v21 }
 0x848   :  { %3196 = vmatprep.subr.bf16.mxu1 %v6735_v25  ;;  %3237 = vmatprep.subr.bf16.mxu0 %v6738_v36 }
 0x84b   :  { %3197 = vmatpush1.bf16.msra.mxu1 %v6733_v28  ;;  %3238 = vmatpush1.bf16.msra.mxu0 %v6736_v12 }
 0x84c   :  { %3472 = vmatprep.subr.bf16.mxu1 %v8212_v8  ;;  %3513 = vmatprep.subr.bf16.mxu0 %v8214_v11 }
 0x84e   :  { %3215 = vmatmul.mubr.bf16.vlgmr.msra.gmra.mrb[32].mxu1 %v8206_v49  ;;  %3256 = vmatmul.mubr.bf16.vlgmr.msra.gmra.mrb[40].mxu0 %v8206_v49  ;;  %v8304_v49 = vld [vmem:[#allocation19 + $0xe0] ss:$16 sps:$4 sm:$0xff]  }
 0x84f   :  { %3473 = vmatpush1.bf16.msra.mxu1 %v8216_v15  ;;  %3514 = vmatpush1.bf16.msra.mxu0 %v8218_v9 }
 0x850   :  { %3474 = vmatprep.subr.bf16.mxu1 %v8222_v16  ;;  %3515 = vmatprep.subr.bf16.mxu0 %v8224_v22 }
 0x851   :  { %3504 = vmatprep.mubr.bf16.mxu1 %v8851_v10  ;;  %3545 = vmatprep.mubr.bf16.mxu0 %v8851_v10 }
 0x853   :  { %3475 = vmatpush1.bf16.msra.mxu1 %v8230_v0  ;;  %3516 = vmatpush1.bf16.msra.mxu0 %v8232_v14 }
 0x854   :  { %3476 = vmatprep.subr.bf16.mxu1 %v8236_v30  ;;  %3517 = vmatprep.subr.bf16.mxu0 %v8238_v31 }
 0x857   :  { %3477 = vmatpush1.bf16.msra.mxu1 %v8244_v35  ;;  %3518 = vmatpush1.bf16.msra.mxu0 %v8246_v23 }
 0x858   :  { %3478 = vmatprep.subr.bf16.mxu1 %v8250_v29  ;;  %3519 = vmatprep.subr.bf16.mxu0 %v8252_v26 }
 0x85b   :  { %3479 = vmatpush1.bf16.msra.mxu1 %v8256_v7  ;;  %3520 = vmatpush1.bf16.msra.mxu0 %v8258_v32 }
 0x85c   :  { %3480 = vmatprep.subr.bf16.mxu1 %v8262_v1  ;;  %3521 = vmatprep.subr.bf16.mxu0 %v8264_v38 }
 0x85f   :  { %3481 = vmatpush1.bf16.msra.mxu1 %v8268_v33  ;;  %3522 = vmatpush1.bf16.msra.mxu0 %v8270_v39 }
 0x860   :  { %3482 = vmatprep.subr.bf16.mxu1 %v8274_v40  ;;  %3523 = vmatprep.subr.bf16.mxu0 %v8276_v24 }
 0x863   :  { %3483 = vmatpush1.bf16.msra.mxu1 %v8280_v41  ;;  %3524 = vmatpush1.bf16.msra.mxu0 %v8282_v42 }
 0x864   :  { %3484 = vmatprep.subr.bf16.mxu1 %v8286_v43  ;;  %3525 = vmatprep.subr.bf16.mxu0 %v8288_v44 }
 0x867   :  { %3485 = vmatpush1.bf16.msra.mxu1 %v8292_v45  ;;  %3526 = vmatpush1.bf16.msra.mxu0 %v8294_v46 }
 0x868   :  { %3486 = vmatprep.subr.bf16.mxu1 %v8298_v47  ;;  %3527 = vmatprep.subr.bf16.mxu0 %v8300_v48 }
 0x86b   :  { %3487 = vmatpush1.bf16.msra.mxu1 %v8304_v49  ;;  %3528 = vmatpush1.bf16.msra.mxu0 %v8306_v50 }
 0x86c   :  { %3595 = vmatprep.subr.bf16.mxu1 %v8212_v8  ;;  %3636 = vmatprep.subr.bf16.mxu0 %v8214_v11 }
 0x86e   :  { %3505 = vmatmul.mubr.bf16.vlgmr.msra.gmra.mrb[36].mxu1 %v8851_v10  ;;  %3546 = vmatmul.mubr.bf16.vlgmr.msra.gmra.mrb[44].mxu0 %v8851_v10 }
 0x86f   :  { %3596 = vmatpush1.bf16.msra.mxu1 %v8216_v15  ;;  %3637 = vmatpush1.bf16.msra.mxu0 %v8218_v9 }
 0x870   :  { %3597 = vmatprep.subr.bf16.mxu1 %v8222_v16  ;;  %3638 = vmatprep.subr.bf16.mxu0 %v8224_v22 }
 0x871   :  { %3627 = vmatprep.mubr.bf16.mxu1 %v8851_v10  ;;  %3668 = vmatprep.mubr.bf16.mxu0 %v8851_v10 }
 0x873   :  { %3598 = vmatpush1.bf16.msra.mxu1 %v8230_v0  ;;  %3639 = vmatpush1.bf16.msra.mxu0 %v8232_v14 }
 0x874   :  { %3599 = vmatprep.subr.bf16.mxu1 %v8236_v30  ;;  %3640 = vmatprep.subr.bf16.mxu0 %v8238_v31 }
 0x877   :  { %3600 = vmatpush1.bf16.msra.mxu1 %v8244_v35  ;;  %3641 = vmatpush1.bf16.msra.mxu0 %v8246_v23 }
 0x878   :  { %3601 = vmatprep.subr.bf16.mxu1 %v8250_v29  ;;  %3642 = vmatprep.subr.bf16.mxu0 %v8252_v26 }
 0x87b   :  { %3602 = vmatpush1.bf16.msra.mxu1 %v8256_v7  ;;  %3643 = vmatpush1.bf16.msra.mxu0 %v8258_v32 }
 0x87c   :  { %3603 = vmatprep.subr.bf16.mxu1 %v8262_v1  ;;  %3644 = vmatprep.subr.bf16.mxu0 %v8264_v38 }
 0x87f   :  { %3604 = vmatpush1.bf16.msra.mxu1 %v8268_v33  ;;  %3645 = vmatpush1.bf16.msra.mxu0 %v8270_v39 }
 0x880   :  { %3605 = vmatprep.subr.bf16.mxu1 %v8274_v40  ;;  %3646 = vmatprep.subr.bf16.mxu0 %v8276_v24 }
 0x883   :  { %3606 = vmatpush1.bf16.msra.mxu1 %v8280_v41  ;;  %3647 = vmatpush1.bf16.msra.mxu0 %v8282_v42 }
 0x884   :  { %3607 = vmatprep.subr.bf16.mxu1 %v8286_v43  ;;  %3648 = vmatprep.subr.bf16.mxu0 %v8288_v44 }
 0x887   :  { %3608 = vmatpush1.bf16.msra.mxu1 %v8292_v45  ;;  %3649 = vmatpush1.bf16.msra.mxu0 %v8294_v46 }
 0x888   :  { %3609 = vmatprep.subr.bf16.mxu1 %v8298_v47  ;;  %3650 = vmatprep.subr.bf16.mxu0 %v8300_v48 }
 0x88b   :  { %3610 = vmatpush1.bf16.msra.mxu1 %v8304_v49  ;;  %3651 = vmatpush1.bf16.msra.mxu0 %v8306_v50 }
 0x88c   :  { %3724 = vmatprep.subr.bf16.mxu1 %v8212_v8  ;;  %3765 = vmatprep.subr.bf16.mxu0 %v8214_v11 }
 0x901   :  { %v2942_v51 = vpop.f32.mrb[28].mxu1  ;;  %v2983_v34 = vpop.f32.mrb[36].mxu0 }
 0x902   :  { %v2944_v37 = vpop.f32.mrb[29].mxu1  ;;  %v2985_v27 = vpop.f32.mrb[37].mxu0  ;;  %v2943_v61 = vadd.f32 %v2942_v51, %v2731_v57  ;;  %v2984_v62 = vadd.f32 %v2983_v34, %v2739_v58 }
 0x903   :  { %v2946_v52 = vpop.f32.mrb[30].mxu1  ;;  %v2987_v53 = vpop.f32.mrb[38].mxu0  ;;  %v2945_v63 = vadd.f32 %v2944_v37, %v2735_v59  ;;  %v2986_v3 = vadd.f32 %v2985_v27, %v2743_v60 }
 0x904   :  { %v2947_v54 = vpop.f32.mrb[31].mxu1  ;;  %v2988_v55 = vpop.f32.mrb[39].mxu0 }
 0x921   :  { %v3216_v4 = vpop.f32.mrb[32].mxu1  ;;  %v3257_v5 = vpop.f32.mrb[40].mxu0 }
 0x922   :  { %v3268_v6 = vrot.slane %v3216_v4, 6  ;;  %v3582_v2 = vrot.slane %v3216_v4, 2  ;;  %v3270_v21 = vrot.slane %v3257_v5, 6  ;;  %v3584_v25 = vrot.slane %v3257_v5, 2  ;;  %v3218_v36 = vpop.f32.mrb[33].mxu1  ;;  %v3259_v28 = vpop.f32.mrb[41].mxu0 }
 0x923   :  { %v3269_v12 = vrot.slane %v3218_v36, 6  ;;  %v3583_v52 = vrot.slane %v3218_v36, 2  ;;  %v3271_v53 = vrot.slane %v3259_v28, 6  ;;  %v3585_v54 = vrot.slane %v3259_v28, 2  ;;  %v3220_v55 = vpop.f32.mrb[34].mxu1  ;;  %v3261_v18 = vpop.f32.mrb[42].mxu0 }
 0x924   :  { %v8358_v13 = vadd.f32 %v3582_v2, %v2943_v61  ;;  %v8360_v20 = vadd.f32 %v3584_v25, %v2984_v62  ;;  %v3221_v51 = vpop.f32.mrb[35].mxu1  ;;  %v3262_v34 = vpop.f32.mrb[43].mxu0  ;;  %v8362_v37 = vadd.f32 %v3268_v6, %v2943_v61  ;;  %v8364_v27 = vadd.f32 %v3270_v21, %v2984_v62 }
 0x925   :  { %v8366_v56 = vadd.f32 %v3583_v52, %v2945_v63  ;;  %v8368_v57 = vadd.f32 %v3585_v54, %v2986_v3  ;;  %v8370_v58 = vadd.f32 %v3269_v12, %v2945_v63  ;;  %v8372_v59 = vadd.f32 %v3271_v53, %v2986_v3 }
 0x941   :  { %v3506_v60 = vpop.f32.mrb[36].mxu1  ;;  %v3547_v18 = vpop.f32.mrb[44].mxu0 }
 0x942   :  { %v3554_v4 = vadd.f32 %v3506_v60, %v8362_v37  ;;  %v3508_v5 = vpop.f32.mrb[37].mxu1  ;;  %v3549_v2 = vpop.f32.mrb[45].mxu0  ;;  %v3556_v12 = vadd.f32 %v3547_v18, %v8364_v27 }
 0x943   :  { %v3555_v25 = vadd.f32 %v3508_v5, %v8370_v58  ;;  %v3510_v61 = vpop.f32.mrb[38].mxu1  ;;  %v3551_v6 = vpop.f32.mrb[46].mxu0  ;;  %v3557_v63 = vadd.f32 %v3549_v2, %v8372_v59 }
 0x944   :  { %v5866_v62 = vmul.f32 -1.442695, %v3554_v4  ;;  %v3511_v21 = vpop.f32.mrb[39].mxu1  ;;  %v3552_v36 = vpop.f32.mrb[47].mxu0 }
 0x945   :  { %v5867_v28 = vmul.f32 -1.442695, %v3555_v25  ;;  %v5868_v3 = vmul.f32 -1.442695, %v3557_v63 }
 0x946   :  { %6903 = vpow2.f32 %v5866_v62 }
 0x947   :  { %6905 = vpow2.f32 %v5867_v28 }
 0x948   :  { %6907 = vpow2.f32 %v5868_v3 }
 0x949   :  { %6909 = vtanh.f32 %v3556_v12 }
 0x950   :  { %v6904_v52 = vpop.eup %6903 }
 0x951   :  { %v6906_v53 = vpop.eup %6905  ;;  %v3561_v54 = vadd.f32 1.0, %v6904_v52 }
 0x952   :  { %v3567_v55 = vadd.f32 1.0, %v6906_v53  ;;  %v6908_v51 = vpop.eup %6907 }
 0x953   :  { %6911 = vrcp.f32 %v3561_v54  ;;  %v6910_v34 = vpop.eup %6909  ;;  %v3574_v25 = vadd.f32 1.0, %v6908_v51 }
 0x954   :  { %6913 = vrcp.f32 %v3567_v55 }
 0x955   :  { %6915 = vrcp.f32 %v3574_v25 }
 0x95d   :  { %v6912_v60 = vpop.eup %6911 }
 0x95e   :  { %v6914_v4 = vpop.eup %6913  ;;  %v3578_v5 = vmul.f32 %v6912_v60, %v6910_v34 }
 0x95f   :  { %v3577_v61 = vmul.f32 0.0, %v6914_v4  ;;  %v6916_v18 = vpop.eup %6915 }
 0x961   :  { %v8378_v6 = vadd.f32 %v3578_v5, %v3577_v61 }
 0x963   :  { %6917 = vtanh.f32 %v8378_v6 }
 0x96d   :  { %v6918_v2 = vpop.eup %6917 }
 0x96e   :  { %v8381_v62 = vmul.f32 %v6918_v2, %v6916_v18 }
 0x970   :  { %v3594_v21 = vpack.c.bf16 %v8381_v62, %v8381_v62 }
 0x972   :  { %3628 = vmatmul.mubr.bf16.vlgmr.msra.gmra.mrb[40].mxu1 %v3594_v21  ;;  %3669 = vmatmul.mubr.bf16.vlgmr.msra.gmra.mrb[48].mxu0 %v3594_v21 }
 0x973   :  { %3725 = vmatpush1.bf16.msra.mxu1 %v8216_v15  ;;  %3766 = vmatpush1.bf16.msra.mxu0 %v8218_v9 }
 0x974   :  { %3726 = vmatprep.subr.bf16.mxu1 %v8222_v16  ;;  %3767 = vmatprep.subr.bf16.mxu0 %v8224_v22 }
 0x975   :  { %3756 = vmatprep.mubr.bf16.mxu1 %v8851_v10  ;;  %3797 = vmatprep.mubr.bf16.mxu0 %v8851_v10 }
 0x977   :  { %3727 = vmatpush1.bf16.msra.mxu1 %v8230_v0  ;;  %3768 = vmatpush1.bf16.msra.mxu0 %v8232_v14 }
 0x978   :  { %3728 = vmatprep.subr.bf16.mxu1 %v8236_v30  ;;  %3769 = vmatprep.subr.bf16.mxu0 %v8238_v31 }
 0x97b   :  { %3729 = vmatpush1.bf16.msra.mxu1 %v8244_v35  ;;  %3770 = vmatpush1.bf16.msra.mxu0 %v8246_v23 }
 0x97c   :  { %3730 = vmatprep.subr.bf16.mxu1 %v8250_v29  ;;  %3771 = vmatprep.subr.bf16.mxu0 %v8252_v26 }
 0x97f   :  { %3731 = vmatpush1.bf16.msra.mxu1 %v8256_v7  ;;  %3772 = vmatpush1.bf16.msra.mxu0 %v8258_v32 }
 0x980   :  { %3732 = vmatprep.subr.bf16.mxu1 %v8262_v1  ;;  %3773 = vmatprep.subr.bf16.mxu0 %v8264_v38 }
 0x983   :  { %3733 = vmatpush1.bf16.msra.mxu1 %v8268_v33  ;;  %3774 = vmatpush1.bf16.msra.mxu0 %v8270_v39 }
 0x984   :  { %3734 = vmatprep.subr.bf16.mxu1 %v8274_v40  ;;  %3775 = vmatprep.subr.bf16.mxu0 %v8276_v24 }
 0x987   :  { %3735 = vmatpush1.bf16.msra.mxu1 %v8280_v41  ;;  %3776 = vmatpush1.bf16.msra.mxu0 %v8282_v42 }
 0x988   :  { %3736 = vmatprep.subr.bf16.mxu1 %v8286_v43  ;;  %3777 = vmatprep.subr.bf16.mxu0 %v8288_v44 }
 0x98b   :  { %3737 = vmatpush1.bf16.msra.mxu1 %v8292_v45  ;;  %3778 = vmatpush1.bf16.msra.mxu0 %v8294_v46 }
 0x98c   :  { %3738 = vmatprep.subr.bf16.mxu1 %v8298_v47  ;;  %3779 = vmatprep.subr.bf16.mxu0 %v8300_v48 }
 0x98f   :  { %3739 = vmatpush1.bf16.msra.mxu1 %v8304_v49  ;;  %3780 = vmatpush1.bf16.msra.mxu0 %v8306_v50 }
 0x990   :  { %3853 = vmatprep.subr.bf16.mxu1 %v8212_v8  ;;  %3894 = vmatprep.subr.bf16.mxu0 %v8214_v11 }
 0xa45   :  { %v3629_v36 = vpop.f32.mrb[40].mxu1  ;;  %v3670_v28 = vpop.f32.mrb[48].mxu0 }
 0xa46   :  { %v3681_v63 = vrot.slane %v3629_v36, 6  ;;  %v3631_v3 = vpop.f32.mrb[41].mxu1  ;;  %v3672_v12 = vpop.f32.mrb[49].mxu0  ;;  %v3683_v11 = vrot.slane %v3670_v28, 6 }
 0xa47   :  { %v3682_v52 = vrot.slane %v3631_v3, 6  ;;  %v3633_v53 = vpop.f32.mrb[42].mxu1  ;;  %v3674_v54 = vpop.f32.mrb[50].mxu0  ;;  %v3684_v25 = vrot.slane %v3672_v12, 6  ;;  %v3713_v12 = vrot.slane %v8378_v6, 6 }
 0xa48   :  { %v3689_v55 = vadd.f32 %v3681_v63, %v8358_v13  ;;  %v3634_v51 = vpop.f32.mrb[43].mxu1  ;;  %v3675_v34 = vpop.f32.mrb[51].mxu0  ;;  %v3691_v18 = vadd.f32 %v3683_v11, %v8360_v20 }
 0xa49   :  { %v3690_v60 = vadd.f32 %v3682_v52, %v8366_v56  ;;  %v3692_v8 = vadd.f32 %v3684_v25, %v8368_v57 }
 0xa4a   :  { %v5869_v4 = vmul.f32 -1.442695, %v3689_v55 }
 0xa4b   :  { %v5870_v5 = vmul.f32 -1.442695, %v3690_v60  ;;  %v5871_v61 = vmul.f32 -1.442695, %v3692_v8 }
 0xa4c   :  { %6919 = vpow2.f32 %v5869_v4 }
 0xa4d   :  { %6921 = vpow2.f32 %v5870_v5 }
 0xa4e   :  { %6923 = vpow2.f32 %v5871_v61 }
 0xa4f   :  { %6925 = vtanh.f32 %v3691_v18 }
 0xa56   :  { %v6920_v2 = vpop.eup %6919 }
 0xa57   :  { %v6922_v21 = vpop.eup %6921  ;;  %v3696_v36 = vadd.f32 1.0, %v6920_v2  ;;  %v6789_v2 = vld [vmem:[#allocation20 + $0x4] ss:$12 sps:$4 sm:$0xff]  }
 0xa58   :  { %v3702_v63 = vadd.f32 1.0, %v6922_v21  ;;  %v6924_v3 = vpop.eup %6923  ;;  %v6787_v21 = vld [vmem:[#allocation20] ss:$12 sps:$4 sm:$0xff]  }
 0xa59   :  { %6927 = vrcp.f32 %v3696_v36  ;;  %v6926_v52 = vpop.eup %6925  ;;  %v3709_v51 = vadd.f32 1.0, %v6924_v3  ;;  %v6790_v36 = vld [vmem:[#allocation20 + $0x8] ss:$12 sps:$4 sm:$0xff]   ;;  %v6791_v3 = vld [vmem:[#allocation20 + $0x18] ss:$12 sps:$4 sm:$0xff]  }
 0xa5a   :  { %6929 = vrcp.f32 %v3702_v63  ;;  %v6793_v63 = vld [vmem:[#allocation20 + $0x1c] ss:$12 sps:$4 sm:$0xff]  }
 0xa5b   :  { %6931 = vrcp.f32 %v3709_v51  ;;  %v6802_v51 = vld [vmem:[#allocation20 + $0x50] ss:$12 sps:$4 sm:$0xff]  }
 0xa63   :  { %v6928_v53 = vpop.eup %6927 }
 0xa64   :  { %v6930_v54 = vpop.eup %6929  ;;  %v3716_v55 = vmul.f32 %v6928_v53, %v6926_v52  ;;  %v6794_v52 = vld [vmem:[#allocation20 + $0x20] ss:$12 sps:$4 sm:$0xff]   ;;  %v6795_v53 = vld [vmem:[#allocation20 + $0x30] ss:$12 sps:$4 sm:$0xff]  }
 0xa65   :  { %v3715_v28 = vmul.f32 %v6930_v54, %v3713_v12  ;;  %v6932_v60 = vpop.eup %6931  ;;  %v6797_v12 = vld [vmem:[#allocation20 + $0x34] ss:$12 sps:$4 sm:$0xff]   ;;  %v6801_v54 = vld [vmem:[#allocation20 + $0x4c] ss:$12 sps:$4 sm:$0xff]  }
 0xa67   :  { %v8424_v34 = vadd.f32 %v3716_v55, %v3715_v28  ;;  %v6799_v55 = vld [vmem:[#allocation20 + $0x48] ss:$12 sps:$4 sm:$0xff]   ;;  %v6805_v28 = vld [vmem:[#allocation20 + $0x64] ss:$12 sps:$4 sm:$0xff]  }
 0xa69   :  { %6933 = vtanh.f32 %v8424_v34 }
 0xa73   :  { %v6934_v4 = vpop.eup %6933 }
 0xa74   :  { %v8427_v5 = vmul.f32 %v6934_v4, %v6932_v60  ;;  %v6806_v60 = vld [vmem:[#allocation20 + $0x68] ss:$12 sps:$4 sm:$0xff]  }
 0xa75   :  { %v6809_v4 = vld [vmem:[#allocation20 + $0x7c] ss:$12 sps:$4 sm:$0xff]  }
 0xa76   :  { %v3720_v25 = vpack.c.bf16 %v8427_v5, %v8427_v5 }
 0xa78   :  { %v3722_v8 = vrot.slane %v3720_v25, 1  ;;  %v6807_v25 = vld [vmem:[#allocation20 + $0x78] ss:$12 sps:$4 sm:$0xff]  }
 0xa7a   :  { %3757 = vmatmul.mubr.bf16.vlgmr.msra.gmra.mrb[44].mxu1 %v3722_v8  ;;  %3798 = vmatmul.mubr.bf16.vlgmr.msra.gmra.mrb[52].mxu0 %v3722_v8  ;;  %v6810_v8 = vld [vmem:[#allocation20 + $0x80] ss:$12 sps:$4 sm:$0xff]  }
 0xa7b   :  { %3854 = vmatpush1.bf16.msra.mxu1 %v8216_v15  ;;  %3895 = vmatpush1.bf16.msra.mxu0 %v8218_v9  ;;  %v8853_v15 = vmov 0.0  }
 0xa7c   :  { %3855 = vmatprep.subr.bf16.mxu1 %v8222_v16  ;;  %3896 = vmatprep.subr.bf16.mxu0 %v8224_v22 }
 0xa7d   :  { %3885 = vmatprep.mubr.bf16.mxu1 %v8851_v10  ;;  %3926 = vmatprep.mubr.bf16.mxu0 %v8851_v10 }
 0xa7f   :  { %3856 = vmatpush1.bf16.msra.mxu1 %v8230_v0  ;;  %3897 = vmatpush1.bf16.msra.mxu0 %v8232_v14 }
 0xa80   :  { %3857 = vmatprep.subr.bf16.mxu1 %v8236_v30  ;;  %3898 = vmatprep.subr.bf16.mxu0 %v8238_v31 }
 0xa83   :  { %3858 = vmatpush1.bf16.msra.mxu1 %v8244_v35  ;;  %3899 = vmatpush1.bf16.msra.mxu0 %v8246_v23 }
 0xa84   :  { %3859 = vmatprep.subr.bf16.mxu1 %v8250_v29  ;;  %3900 = vmatprep.subr.bf16.mxu0 %v8252_v26 }
 0xa87   :  { %3860 = vmatpush1.bf16.msra.mxu1 %v8256_v7  ;;  %3901 = vmatpush1.bf16.msra.mxu0 %v8258_v32 }
 0xa88   :  { %3861 = vmatprep.subr.bf16.mxu1 %v8262_v1  ;;  %3902 = vmatprep.subr.bf16.mxu0 %v8264_v38 }
 0xa8b   :  { %3862 = vmatpush1.bf16.msra.mxu1 %v8268_v33  ;;  %3903 = vmatpush1.bf16.msra.mxu0 %v8270_v39 }
 0xa8c   :  { %3863 = vmatprep.subr.bf16.mxu1 %v8274_v40  ;;  %3904 = vmatprep.subr.bf16.mxu0 %v8276_v24 }
 0xa8f   :  { %3864 = vmatpush1.bf16.msra.mxu1 %v8280_v41  ;;  %3905 = vmatpush1.bf16.msra.mxu0 %v8282_v42 }
 0xa90   :  { %3865 = vmatprep.subr.bf16.mxu1 %v8286_v43  ;;  %3906 = vmatprep.subr.bf16.mxu0 %v8288_v44 }
 0xa93   :  { %3866 = vmatpush1.bf16.msra.mxu1 %v8292_v45  ;;  %3907 = vmatpush1.bf16.msra.mxu0 %v8294_v46 }
 0xa94   :  { %3867 = vmatprep.subr.bf16.mxu1 %v8298_v47  ;;  %3908 = vmatprep.subr.bf16.mxu0 %v8300_v48  ;;  %v3842_v48 = vrot.slane %v8424_v34, 6  ;;  %v6803_v34 = vld [vmem:[#allocation20 + $0x60] ss:$12 sps:$4 sm:$0xff]  }
 0xa97   :  { %3868 = vmatpush1.bf16.msra.mxu1 %v8304_v49  ;;  %3909 = vmatpush1.bf16.msra.mxu0 %v8306_v50 }
 0xa98   :  { %6201 = vmatprep.subr.bf16.mxu0 %v8853_v15  ;;  %4195 = vmatprep.subr.bf16.mxu1 %v6789_v2 }
 0xb4d   :  { %v3758_v9 = vpop.f32.mrb[44].mxu1  ;;  %v3799_v16 = vpop.f32.mrb[52].mxu0 }
 0xb4e   :  { %v3810_v22 = vrot.slane %v3758_v9, 4  ;;  %v3760_v0 = vpop.f32.mrb[45].mxu1  ;;  %v3801_v14 = vpop.f32.mrb[53].mxu0  ;;  %v3812_v39 = vrot.slane %v3799_v16, 4  ;;  %v6813_v9 = vld [vmem:[#allocation20 + $0x94] ss:$12 sps:$4 sm:$0xff]  }
 0xb4f   :  { %v3811_v30 = vrot.slane %v3760_v0, 4  ;;  %v3762_v31 = vpop.f32.mrb[46].mxu1  ;;  %v3803_v35 = vpop.f32.mrb[54].mxu0  ;;  %v3813_v38 = vrot.slane %v3801_v14, 4  ;;  %v6811_v16 = vld [vmem:[#allocation20 + $0x90] ss:$12 sps:$4 sm:$0xff]  }
 0xb50   :  { %v3818_v23 = vadd.f32 %v3810_v22, %v8362_v37  ;;  %v3763_v29 = vpop.f32.mrb[47].mxu1  ;;  %v3804_v26 = vpop.f32.mrb[55].mxu0  ;;  %v3820_v24 = vadd.f32 %v3812_v39, %v8364_v27  ;;  %v6814_v22 = vld [vmem:[#allocation20 + $0x98] ss:$12 sps:$4 sm:$0xff]   ;;  %v6815_v14 = vld [vmem:[#allocation20 + $0xa8] ss:$12 sps:$4 sm:$0xff]  }
 0xb51   :  { %v3819_v7 = vadd.f32 %v3811_v30, %v8370_v58  ;;  %v3821_v33 = vadd.f32 %v3813_v38, %v8372_v59  ;;  %v6817_v0 = vld [vmem:[#allocation20 + $0xac] ss:$12 sps:$4 sm:$0xff]   ;;  %v6818_v30 = vld [vmem:[#allocation20 + $0xb0] ss:$12 sps:$4 sm:$0xff]  }
 0xb52   :  { %v5872_v32 = vmul.f32 -1.442695, %v3818_v23 }
 0xb53   :  { %v5873_v1 = vmul.f32 -1.442695, %v3819_v7  ;;  %v5874_v40 = vmul.f32 -1.442695, %v3821_v33 }
 0xb54   :  { %6935 = vpow2.f32 %v5872_v32 }
 0xb55   :  { %6937 = vpow2.f32 %v5873_v1 }
 0xb56   :  { %6939 = vpow2.f32 %v5874_v40 }
 0xb57   :  { %6941 = vtanh.f32 %v3820_v24 }
 0xb5e   :  { %v6936_v41 = vpop.eup %6935 }
 0xb5f   :  { %v6938_v42 = vpop.eup %6937  ;;  %v3825_v43 = vadd.f32 1.0, %v6936_v41 }
 0xb60   :  { %v3831_v44 = vadd.f32 1.0, %v6938_v42  ;;  %v6940_v45 = vpop.eup %6939 }
 0xb61   :  { %6943 = vrcp.f32 %v3825_v43  ;;  %v6942_v46 = vpop.eup %6941  ;;  %v3838_v37 = vadd.f32 1.0, %v6940_v45 }
 0xb62   :  { %6945 = vrcp.f32 %v3831_v44 }
 0xb63   :  { %6947 = vrcp.f32 %v3838_v37 }
 0xb6b   :  { %v6944_v47 = vpop.eup %6943 }
 0xb6c   :  { %v6946_v49 = vpop.eup %6945  ;;  %v3845_v50 = vmul.f32 %v6944_v47, %v6942_v46 }
 0xb6d   :  { %v3844_v58 = vmul.f32 %v6946_v49, %v3842_v48  ;;  %v6948_v27 = vpop.eup %6947 }
 0xb6f   :  { %v8469_v59 = vadd.f32 %v3845_v50, %v3844_v58 }
 0xb71   :  { %6949 = vtanh.f32 %v8469_v59  ;;  %v3971_v58 = vrot.slane %v8469_v59, 6 }
 0xb7b   :  { %v6950_v6 = vpop.eup %6949 }
 0xb7c   :  { %v8472_v11 = vmul.f32 %v6950_v6, %v6948_v27 }
 0xb7e   :  { %v3849_v61 = vpack.c.bf16 %v8472_v11, %v8472_v11 }
 0xb80   :  { %v3851_v18 = vrot.slane %v3849_v61, 2 }
 0xb82   :  { %3886 = vmatmul.mubr.bf16.vlgmr.msra.gmra.mrb[48].mxu1 %v3851_v18  ;;  %3927 = vmatmul.mubr.bf16.vlgmr.msra.gmra.mrb[56].mxu0 %v3851_v18 }
 0xb83   :  { %4227 = vmatprep.mubr.bf16.mxu1 %v8851_v10  ;;  %6217 = vmatprep.mubr.msk.bf16.mxu0 %vm7368_vm0, %v8853_v15  ;;  %v6798_v10 = vld [vmem:[#allocation20 + $0x38] ss:$12 sps:$4 sm:$0xff]  }
 0xb84   :  { %4196 = vmatpush1.bf16.msra.mxu1 %v6787_v21  ;;  %6202 = vmatpush3.bf16.msra.mxu0 %v6790_v36  ;;  %v3987_v36 = vrot.slane %v8427_v5, 6 }
 0xb85   :  { %6203 = vmatprep.subr.bf16.mxu0 %v8853_v15  ;;  %4197 = vmatprep.subr.bf16.mxu1 %v6793_v63 }
 0xb86   :  { %v3989_v59 = vsel %vm925_vm11, %v8472_v11, %v3987_v36 }
 0xb88   :  { %4198 = vmatpush1.bf16.msra.mxu1 %v6791_v3  ;;  %6204 = vmatpush3.bf16.msra.mxu0 %v6794_v52  ;;  %v3991_v52 = vrot.slane %v8381_v62, 2 }
 0xb89   :  { %6205 = vmatprep.subr.bf16.mxu0 %v8853_v15  ;;  %4199 = vmatprep.subr.bf16.mxu1 %v6797_v12 }
 0xb8c   :  { %4200 = vmatpush1.bf16.msra.mxu1 %v6795_v53  ;;  %6206 = vmatpush3.bf16.msra.mxu0 %v6798_v10 }
 0xb8d   :  { %4201 = vmatprep.subr.bf16.mxu1 %v6801_v54  ;;  %6207 = vmatprep.subr.bf16.mxu0 %v8853_v15 }
 0xb90   :  { %4202 = vmatpush1.bf16.msra.mxu1 %v6799_v55  ;;  %6208 = vmatpush3.bf16.msra.mxu0 %v6802_v51  ;;  %v3998_v55 = vrot.slane %v3989_v59, 2 }
 0xb91   :  { %4203 = vmatprep.subr.bf16.mxu1 %v6805_v28  ;;  %6209 = vmatprep.subr.bf16.mxu0 %v8853_v15 }
 0xb94   :  { %4204 = vmatpush1.bf16.msra.mxu1 %v6803_v34  ;;  %6210 = vmatpush3.bf16.msra.mxu0 %v6806_v60 }
 0xb95   :  { %4205 = vmatprep.subr.bf16.mxu1 %v6809_v4  ;;  %6211 = vmatprep.subr.bf16.mxu0 %v8853_v15 }
 0xb98   :  { %4206 = vmatpush1.bf16.msra.mxu1 %v6807_v25  ;;  %6212 = vmatpush3.bf16.msra.mxu0 %v6810_v8  ;;  %v4008_v25 = vrot.slane %v3989_v59, 7 }
 0xb99   :  { %4207 = vmatprep.subr.bf16.mxu1 %v6813_v9  ;;  %6213 = vmatprep.subr.bf16.mxu0 %v8853_v15 }
 0xb9c   :  { %4208 = vmatpush1.bf16.msra.mxu1 %v6811_v16  ;;  %6214 = vmatpush3.bf16.msra.mxu0 %v6814_v22  ;;  %v4050_v22 = vld [vmem:[%s8808_s16] sm:$0x7]  ;;  %s7370_s16 = smov 96  }
 0xb9d   :  { %4209 = vmatprep.subr.bf16.mxu1 %v6817_v0  ;;  %6215 = vmatprep.subr.bf16.mxu0 %v8853_v15  ;;  %v4055_v0 = vrot.slane %v4050_v22, %v8052_v17 }
 0xba0   :  { %4210 = vmatpush1.bf16.msra.mxu1 %v6815_v14  ;;  %6216 = vmatpush3.bf16.msra.mxu0 %v6818_v30  ;;  %v4059_v14 = vrot.slane %v4050_v22, %v8058_v19 }
 0xba1   :  { %6221 = vmatprep.subr.bf16.mxu1 %v8853_v15  ;;  %6239 = vmatprep.subr.bf16.mxu0 %v8853_v15 }
 0xc55   :  { %v3887_v31 = vpop.f32.mrb[48].mxu1  ;;  %v3928_v35 = vpop.f32.mrb[56].mxu0 }
 0xc56   :  { %v3939_v23 = vrot.slane %v3887_v31, 2  ;;  %v3889_v29 = vpop.f32.mrb[49].mxu1  ;;  %v3930_v26 = vpop.f32.mrb[57].mxu0  ;;  %v3941_v44 = vrot.slane %v3928_v35, 2 }
 0xc57   :  { %v3940_v7 = vrot.slane %v3889_v29, 2  ;;  %v3891_v32 = vpop.f32.mrb[50].mxu1  ;;  %v3932_v1 = vpop.f32.mrb[58].mxu0  ;;  %v3942_v42 = vrot.slane %v3930_v26, 2  ;;  %v8854_v26 = vld [vmem:[#allocation36_spill] sm:$0xff] }
 0xc58   :  { %v3947_v38 = vadd.f32 %v3939_v23, %v8358_v13  ;;  %v3892_v33 = vpop.f32.mrb[51].mxu1  ;;  %v3933_v39 = vpop.f32.mrb[59].mxu0  ;;  %v3949_v46 = vadd.f32 %v3941_v44, %v8360_v20  ;;  %v3983_v20 = vrot.slane %v8472_v11, 2 }
 0xc59   :  { %v3948_v40 = vadd.f32 %v3940_v7, %v8366_v56  ;;  %v3950_v43 = vadd.f32 %v3942_v42, %v8368_v57  ;;  %v4063_v7 = vrot.slane %v4050_v22, %v8854_v26 }
 0xc5a   :  { %v5875_v24 = vmul.f32 -1.442695, %v3947_v38  ;;  %v3985_v3 = vsel %vm925_vm11, %v8427_v5, %v3983_v20 }
 0xc5b   :  { %v5876_v41 = vmul.f32 -1.442695, %v3948_v40  ;;  %v5877_v45 = vmul.f32 -1.442695, %v3950_v43  ;;  %v3995_v10 = vrot.slane %v3985_v3, 1  ;;  %v4006_v5 = vrot.slane %v3985_v3, 6 }
 0xc5c   :  { %6951 = vpow2.f32 %v5875_v24 }
 0xc5d   :  { %6953 = vpow2.f32 %v5876_v41 }
 0xc5e   :  { %6955 = vpow2.f32 %v5877_v45 }
 0xc5f   :  { %6957 = vtanh.f32 %v3949_v46 }
 0xc66   :  { %v6952_v47 = vpop.eup %6951 }
 0xc67   :  { %v6954_v48 = vpop.eup %6953  ;;  %v3954_v49 = vadd.f32 1.0, %v6952_v47 }
 0xc68   :  { %v3960_v13 = vadd.f32 1.0, %v6954_v48  ;;  %v6956_v56 = vpop.eup %6955 }
 0xc69   :  { %6959 = vrcp.f32 %v3954_v49  ;;  %v6958_v50 = vpop.eup %6957  ;;  %v3967_v57 = vadd.f32 1.0, %v6956_v56 }
 0xc6a   :  { %6961 = vrcp.f32 %v3960_v13 }
 0xc6b   :  { %6963 = vrcp.f32 %v3967_v57 }
 0xc73   :  { %v6960_v37 = vpop.eup %6959 }
 0xc74   :  { %v6962_v27 = vpop.eup %6961  ;;  %v3974_v6 = vmul.f32 %v6960_v37, %v6958_v50 }
 0xc75   :  { %v3973_v61 = vmul.f32 %v6962_v27, %v3971_v58  ;;  %v6964_v2 = vpop.eup %6963 }
 0xc77   :  { %v3975_v18 = vadd.f32 %v3974_v6, %v3973_v61 }
 0xc79   :  { %6965 = vtanh.f32 %v3975_v18 }
 0xc83   :  { %v6966_v21 = vpop.eup %6965 }
 0xc84   :  { %v3977_v63 = vmul.f32 %v6966_v21, %v6964_v2 }
 0xc86   :  { %v3979_v53 = vrot.slane %v3977_v63, 6  ;;  %v3993_v12 = vsel %vm925_vm11, %v3977_v63, %v3991_v52 }
 0xc87   :  { %v4001_v51 = vrot.slane %v3993_v12, 3 }
 0xc88   :  { %v3981_v54 = vsel %vm925_vm11, %v8381_v62, %v3979_v53 }
 0xc89   :  { %v4004_v28 = vrot.slane %v3981_v54, 5  ;;  %v4010_v34 = vsel %vm336_vm1, %v3981_v54, %v3995_v10 }
 0xc8a   :  { %v4011_v60 = vsel %vm261_vm2, %v4010_v34, %v3998_v55 }
 0xc8b   :  { %v4012_v4 = vsel %vm812_vm9, %v4011_v60, %v4001_v51 }
 0xc8c   :  { %v4013_v11 = vsel %vm279_vm4, %v4012_v4, %v4004_v28 }
 0xc8d   :  { %v4014_v8 = vsel %vm815_vm10, %v4013_v11, %v4006_v5 }
 0xc8e   :  { %v4015_v9 = vsel %vm270_vm3, %v4014_v8, %v4008_v25 }
 0xc8f   :  { %v4016_v16 = vsel %vm479_vm8, %v4015_v9, %v3993_v12 }
 0xc90   :  { %v4049_v62 = vpack.c.bf16 %v4016_v16, %v4016_v16 }
 0xc92   :  { %4228 = vmatmul.mubr.bf16.vlgmr.msra.gmra.mrb[52].mxu1 %v4049_v62  ;;  %6218 = vmatmul.mubr.bf16.vlgmr.msra.gmra.mrb[60].mxu0 %v4049_v62 }
 0xc93   :  { %6223 = vmatprep.mubr.msk.bf16.mxu1 %vm7368_vm0, %v8853_v15  ;;  %6241 = vmatprep.mubr.msk.bf16.mxu0 %vm7368_vm0, %v8853_v15 }
 0xd65   :  { %v4229_v30 = vpop.f32.mrb[52].mxu1  ;;  %v4270_v31 = vpop.f32.mrb[60].mxu0 }
 0xd66   :  { %v4230_v35 = vadd.f32 %v4229_v30, %v4055_v0  ;;  %v4231_v23 = vpop.f32.mrb[53].mxu1  ;;  %v6219_v29 = vpop.f32.mrb[61].mxu0  ;;  %v4271_v41 = vadd.f32 %v4270_v31, %v4063_v7 }
 0xd67   :  { %v4232_v32 = vadd.f32 %v4231_v23, %v4059_v14  ;;  %v4233_v1 = vpop.f32.mrb[54].mxu1  ;;  %v4273_v38 = vpop.f32.mrb[62].mxu0 }
 0xd68   :  { %v4234_v33 = vpop.f32.mrb[55].mxu1  ;;  %v6220_v39 = vpop.f32.mrb[63].mxu0  ;;  %v4276_v40 = vmul.f32 0.17677669, %v4230_v35  ;;  %v8523_v42 = vpack.c.bf16 %v4271_v41, %v4271_v41 }
 0xd69   :  { %v4278_v24 = vpack.c.bf16 %v4232_v32, %v4232_v32 }
 0xd6a   :  { %v4277_v19 = vpack.c.bf16 %v4276_v40, %v4276_v40  ;;  %v4354_v43 = vsel %vm261_vm2, %v8523_v42, 0 }
 0xd6b   :  { %4400 = vrot.lane.b32.xlu1 %v4278_v24, %s7370_s16  ;;  %v4284_v17 = vsel %vm4279_vm12, %v4278_v24, 0  ;;  %v4770_v44 = vrot.slane %v4278_v24, 2 }
 0xd6c   :  { %6222 = vmatpush3.bf16.xpose.msra.mxu1 %v4284_v17  ;;  %v8536_v45 = vrot.slane %v4277_v19, 2 }
 0xd6d   :  { %6227 = vmatprep.subr.bf16.mxu1 %v8853_v15  ;;  %v4775_v5 = vsel %vm4279_vm12, %v4770_v44, 0 }
 0xd6f   :  { %4397 = vrot.lane.b32.xlu1 %v4277_v19, %s7370_s16 }
 0xd73   :  { %4517 = vrot.lane.b32.xlu1 %v4277_v19, %s7359_s9  ;;  %6224 = vmatmul.mubr.msk.bf16.vlgmr.msra.gmra.mrb[56].mxu1 %vm4279_vm12, %v4277_v19 }
 0xd74   :  { %6228 = vmatpush3.bf16.msra.mxu1 %v4354_v43  ;;  %6229 = vmatprep.mubr.msk.bf16.mxu1 %vm7368_vm0, %v8853_v15 }
 0xd75   :  { %6233 = vmatprep.subr.bf16.mxu1 %v8853_v15 }
 0xd77   :  { %4637 = vrot.lane.b32.xlu1 %v4278_v24, %s7371_s25 }
 0xd7b   :  { %4635 = vrot.lane.b32.xlu1 %v4277_v19, %s7371_s25 }
 0xd7f   :  { %4886 = vrot.lane.b32.xlu1 %v4770_v44, %s7370_s16 }
 0xd83   :  { %4884 = vrot.lane.b32.xlu1 %v8536_v45, %s7370_s16 }
 0xd87   :  { %5004 = vrot.lane.b32.xlu1 %v4770_v44, %s7359_s9 }
 0xd8b   :  { %5122 = vrot.lane.b32.xlu1 %v4770_v44, %s7371_s25 }
 0xddd   :  { %v4401_v52 = vpop.permute.xlu1 %4400 }
 0xdde   :  { %v4406_v12 = vsel %vm4279_vm12, %v4401_v52, 0 }
 0xde1   :  { %v4398_v10 = vpop.permute.xlu1 %4397 }
 0xde5   :  { %v4518_v55 = vpop.permute.xlu1 %4517 }
 0xde9   :  { %v4638_v28 = vpop.permute.xlu1 %4637 }
 0xdea   :  { %v4643_v34 = vsel %vm4279_vm12, %v4638_v28, 0 }
 0xded   :  { %v4636_v60 = vpop.permute.xlu1 %4635 }
 0xdf1   :  { %v4887_v4 = vpop.permute.xlu1 %4886 }
 0xdf2   :  { %v4892_v11 = vsel %vm4279_vm12, %v4887_v4, 0 }
 0xdf5   :  { %v4885_v25 = vpop.permute.xlu1 %4884 }
 0xdf9   :  { %v5005_v8 = vpop.permute.xlu1 %5004 }
 0xdfa   :  { %v5010_v9 = vsel %vm4279_vm12, %v5005_v8, 0 }
 0xdfd   :  { %v5123_v16 = vpop.permute.xlu1 %5122 }
 0xdfe   :  { %v5128_v22 = vsel %vm4279_vm12, %v5123_v16, 0 }
 0xe46   :  { %v4320_v46 = vpop.f32.mrb[56].mxu1 }
 0xe47   :  { %v6225_v47 = vpop.f32.mrb[57].mxu1  ;;  %v4327_v48 = vsel %vm4326_vm13, %v4320_v46, -inf }
 0xe48   :  { %4328 = vmax.xlane.f32.xlu0 %v4327_v48  ;;  %v4323_v49 = vpop.f32.mrb[58].mxu1 }
 0xe49   :  { %v6226_v13 = vpop.f32.mrb[59].mxu1 }
 0xed5   :  { %v4329_v56 = vpop.xlane.xlu0 %4328 }
 0xed6   :  { %v4330_v50 = vsub.f32 %v4320_v46, %v4329_v56 }
 0xed8   :  { %v4331_v37 = vmul.f32 1.442695, %v4330_v50 }
 0xeda   :  { %6967 = vpow2.f32 %v4331_v37 }
 0xee4   :  { %v6968_v58 = vpop.eup %6967 }
 0xee5   :  { %v4333_v27 = vsel %vm4326_vm13, %v6968_v58, 0.0 }
 0xee6   :  { %4334 = vadd.xlane.f32.xlu0 %v4333_v27 }
 0xefc   :  { %4519 = vrot.lane.b32.xlu0 %v4278_v24, %s7359_s9 }
 0xf00   :  { %5002 = vrot.lane.b32.xlu0 %v8536_v45, %s7359_s9 }
 0xf04   :  { %5120 = vrot.lane.b32.xlu0 %v8536_v45, %s7371_s25 }
 0xf73   :  { %v4335_v6 = vpop.xlane.xlu0 %4334 }
 0xf74   :  { %6969 = vrcp.f32 %v4335_v6 }
 0xf77   :  { %v4520_v54 = vpop.permute.xlu0 %4519 }
 0xf78   :  { %v4525_v51 = vsel %vm4279_vm12, %v4520_v54, 0 }
 0xf7b   :  { %v5003_v62 = vpop.permute.xlu0 %5002 }
 0xf7e   :  { %v6970_v57 = vpop.eup %6969 }
 0xf7f   :  { %v4337_v61 = vmul.f32 %v6970_v57, %v6968_v58  ;;  %v5121_v0 = vpop.permute.xlu0 %5120 }
 0xf81   :  { %v4338_v18 = vsel %vm4326_vm13, %v4337_v61, 0.0 }
 0xf82   :  { %v4339_v20 = vrot.slane %v4338_v18, 4 }
 0xf84   :  { %v4340_v2 = vadd.f32 %v4339_v20, %v4338_v18 }
 0xf86   :  { %v4341_v21 = vrot.slane %v4340_v2, 2 }
 0xf88   :  { %v4342_v36 = vadd.f32 %v4341_v21, %v4340_v2 }
 0xf8a   :  { %v4343_v63 = vrot.slane %v4342_v36, 1 }
 0xf8c   :  { %v4344_v3 = vadd.f32 %v4343_v63, %v4342_v36 }
 0xf8e   :  { %v4346_v59 = vmul.f32 0.25, %v4344_v3 }
 0xf90   :  { %v4347_v53 = vpack.c.bf16 %v4346_v59, %v4346_v59 }
 0xf92   :  { %6230 = vmatmul.mubr.msk.bf16.vlgmr.msra.gmra.mrb[60].mxu1 %vm4349_vm14, %v4347_v53 }
 0xf93   :  { %6234 = vmatpush3.bf16.xpose.msra.mxu1 %v4406_v12  ;;  %6235 = vmatprep.mubr.msk.bf16.mxu1 %vm7368_vm0, %v8853_v15 }
 0xf94   :  { %6245 = vmatprep.subr.bf16.mxu1 %v8853_v15 }
 0xf9a   :  { %6236 = vmatmul.mubr.msk.bf16.vlgmr.msra.gmra.mrb[64].mxu1 %vm4279_vm12, %v4398_v10 }
 0xf9b   :  { %6246 = vmatpush3.bf16.xpose.msra.mxu1 %v4525_v51  ;;  %6247 = vmatprep.mubr.msk.bf16.mxu1 %vm7368_vm0, %v8853_v15 }
 0xf9c   :  { %6257 = vmatprep.subr.bf16.mxu1 %v8853_v15 }
 0xfa2   :  { %6248 = vmatmul.mubr.msk.bf16.vlgmr.msra.gmra.mrb[68].mxu1 %vm4279_vm12, %v4518_v55 }
 0xfa3   :  { %6258 = vmatpush3.bf16.xpose.msra.mxu1 %v4643_v34  ;;  %6259 = vmatprep.mubr.msk.bf16.mxu1 %vm7368_vm0, %v8853_v15 }
 0xfa4   :  { %6269 = vmatprep.subr.bf16.mxu1 %v8853_v15 }
 0xfaa   :  { %6260 = vmatmul.mubr.msk.bf16.vlgmr.msra.gmra.mrb[72].mxu1 %vm4279_vm12, %v4636_v60 }
 0xfab   :  { %6270 = vmatpush3.bf16.xpose.msra.mxu1 %v4775_v5  ;;  %6271 = vmatprep.mubr.msk.bf16.mxu1 %vm7368_vm0, %v8853_v15 }
 0xfac   :  { %6281 = vmatprep.subr.bf16.mxu1 %v8853_v15 }
 0xfb2   :  { %6272 = vmatmul.mubr.msk.bf16.vlgmr.msra.gmra.mrb[76].mxu1 %vm4279_vm12, %v8536_v45 }
 0xfb3   :  { %6282 = vmatpush3.bf16.xpose.msra.mxu1 %v4892_v11  ;;  %6283 = vmatprep.mubr.msk.bf16.mxu1 %vm7368_vm0, %v8853_v15 }
 0xfb4   :  { %6293 = vmatprep.subr.bf16.mxu1 %v8853_v15 }
 0xfba   :  { %6284 = vmatmul.mubr.msk.bf16.vlgmr.msra.gmra.mrb[80].mxu1 %vm4279_vm12, %v4885_v25 }
 0xfbb   :  { %6294 = vmatpush3.bf16.xpose.msra.mxu1 %v5010_v9  ;;  %6295 = vmatprep.mubr.msk.bf16.mxu1 %vm7368_vm0, %v8853_v15 }
 0xfbc   :  { %6305 = vmatprep.subr.bf16.mxu1 %v8853_v15 }
 0xfc2   :  { %6296 = vmatmul.mubr.msk.bf16.vlgmr.msra.gmra.mrb[84].mxu1 %vm4279_vm12, %v5003_v62 }
 0xfc3   :  { %6306 = vmatpush3.bf16.xpose.msra.mxu1 %v5128_v22  ;;  %6307 = vmatprep.mubr.msk.bf16.mxu1 %vm7368_vm0, %v8853_v15 }
 0xfc4   :  { %6317 = vmatprep.subr.bf16.mxu1 %v8853_v15 }
 0xfca   :  { %6308 = vmatmul.mubr.msk.bf16.vlgmr.msra.gmra.mrb[88].mxu1 %vm4279_vm12, %v5121_v0 }
 0xfcb   :  { %6333 = vmatprep.mubr.msk.bf16.mxu1 %vm7368_vm0, %v8853_v15 }
0x1065   :  { %v8589_v14 = vpop.f32.mrb[60].mxu1 }
0x1066   :  { %v6231_v30 = vpop.f32.mrb[61].mxu1 }
0x1067   :  { %v4393_v31 = vpop.f32.mrb[62].mxu1 }
0x1068   :  { %v6232_v35 = vpop.f32.mrb[63].mxu1 }
0x106d   :  { %v4442_v23 = vpop.f32.mrb[64].mxu1 }
0x106e   :  { %v6237_v29 = vpop.f32.mrb[65].mxu1  ;;  %v4448_v26 = vsel %vm4326_vm13, %v4442_v23, -inf }
0x106f   :  { %4449 = vmax.xlane.f32.xlu1 %v4448_v26  ;;  %v4445_v7 = vpop.f32.mrb[66].mxu1 }
0x1070   :  { %v6238_v32 = vpop.f32.mrb[67].mxu1 }
0x1075   :  { %v4561_v1 = vpop.f32.mrb[68].mxu1 }
0x1076   :  { %v6249_v38 = vpop.f32.mrb[69].mxu1  ;;  %v4567_v33 = vsel %vm4326_vm13, %v4561_v1, -inf }
0x1077   :  { %4568 = vmax.xlane.f32.xlu0 %v4567_v33  ;;  %v4564_v39 = vpop.f32.mrb[70].mxu1 }
0x1078   :  { %v6250_v40 = vpop.f32.mrb[71].mxu1 }
0x1079   :  { %v8627_v40 = vrot.slane %v8523_v42, 2 }
0x107d   :  { %v4679_v24 = vpop.f32.mrb[72].mxu1 }
0x107e   :  { %v6261_v41 = vpop.f32.mrb[73].mxu1  ;;  %v4685_v17 = vsel %vm4326_vm13, %v4679_v24, -inf }
0x107f   :  { %4686 = vmax.xlane.f32.xlu0 %v4685_v17  ;;  %v4682_v19 = vpop.f32.mrb[74].mxu1 }
0x1080   :  { %v6262_v43 = vpop.f32.mrb[75].mxu1 }
0x1085   :  { %v4811_v44 = vpop.f32.mrb[76].mxu1 }
0x1086   :  { %v6273_v45 = vpop.f32.mrb[77].mxu1  ;;  %v4817_v46 = vsel %vm4326_vm13, %v4811_v44, -inf }
0x1087   :  { %4818 = vmax.xlane.f32.xlu1 %v4817_v46  ;;  %v4814_v47 = vpop.f32.mrb[78].mxu1 }
0x1088   :  { %v6274_v48 = vpop.f32.mrb[79].mxu1 }
0x108d   :  { %v4928_v49 = vpop.f32.mrb[80].mxu1 }
0x108e   :  { %v6285_v13 = vpop.f32.mrb[81].mxu1  ;;  %v4934_v56 = vsel %vm4326_vm13, %v4928_v49, -inf }
0x108f   :  { %4935 = vmax.xlane.f32.xlu0 %v4934_v56  ;;  %v4931_v50 = vpop.f32.mrb[82].mxu1 }
0x1090   :  { %v6286_v37 = vpop.f32.mrb[83].mxu1 }
0x1095   :  { %v5046_v58 = vpop.f32.mrb[84].mxu1 }
0x1096   :  { %v6297_v27 = vpop.f32.mrb[85].mxu1  ;;  %v5052_v6 = vsel %vm4326_vm13, %v5046_v58, -inf }
0x1097   :  { %5053 = vmax.xlane.f32.xlu1 %v5052_v6  ;;  %v5049_v57 = vpop.f32.mrb[86].mxu1 }
0x1098   :  { %v6298_v61 = vpop.f32.mrb[87].mxu1 }
0x109d   :  { %v5164_v18 = vpop.f32.mrb[88].mxu1 }
0x109e   :  { %v6309_v20 = vpop.f32.mrb[89].mxu1  ;;  %v5170_v2 = vsel %vm4326_vm13, %v5164_v18, -inf }
0x109f   :  { %5171 = vmax.xlane.f32.xlu0 %v5170_v2  ;;  %v5167_v21 = vpop.f32.mrb[90].mxu1 }
0x10a0   :  { %v6310_v36 = vpop.f32.mrb[91].mxu1 }
0x10fc   :  { %v4450_v63 = vpop.xlane.xlu1 %4449 }
0x10fd   :  { %v4451_v3 = vsub.f32 %v4442_v23, %v4450_v63 }
0x10ff   :  { %v4452_v52 = vmul.f32 1.442695, %v4451_v3 }
0x1101   :  { %6971 = vpow2.f32 %v4452_v52 }
0x1104   :  { %v4569_v59 = vpop.xlane.xlu0 %4568 }
0x1105   :  { %v4570_v53 = vsub.f32 %v4561_v1, %v4569_v59 }
0x1107   :  { %v4571_v12 = vmul.f32 1.442695, %v4570_v53 }
0x1109   :  { %6973 = vpow2.f32 %v4571_v12 }
0x110b   :  { %v6972_v10 = vpop.eup %6971 }
0x110c   :  { %v4687_v54 = vpop.xlane.xlu0 %4686  ;;  %v4454_v55 = vsel %vm4326_vm13, %v6972_v10, 0.0 }
0x110d   :  { %v4688_v51 = vsub.f32 %v4679_v24, %v4687_v54  ;;  %4455 = vadd.xlane.f32.xlu1 %v4454_v55 }
0x110f   :  { %v4689_v28 = vmul.f32 1.442695, %v4688_v51 }
0x1111   :  { %6975 = vpow2.f32 %v4689_v28 }
0x1113   :  { %v6974_v34 = vpop.eup %6973 }
0x1114   :  { %v4819_v60 = vpop.xlane.xlu1 %4818  ;;  %v4573_v5 = vsel %vm4326_vm13, %v6974_v34, 0.0 }
0x1115   :  { %v4820_v4 = vsub.f32 %v4811_v44, %v4819_v60  ;;  %4574 = vadd.xlane.f32.xlu0 %v4573_v5 }
0x1117   :  { %v4821_v25 = vmul.f32 1.442695, %v4820_v4 }
0x1119   :  { %6977 = vpow2.f32 %v4821_v25 }
0x111b   :  { %v8600_v11 = vpop.eup %6975 }
0x111c   :  { %v4691_v8 = vsel %vm4326_vm13, %v8600_v11, 0.0  ;;  %v4936_v62 = vpop.xlane.xlu0 %4935 }
0x111d   :  { %4692 = vadd.xlane.f32.xlu1 %v4691_v8  ;;  %v4937_v22 = vsub.f32 %v4928_v49, %v4936_v62 }
0x111f   :  { %v4938_v30 = vmul.f32 1.442695, %v4937_v22 }
0x1121   :  { %6979 = vpow2.f32 %v4938_v30 }
0x1123   :  { %v8604_v9 = vpop.eup %6977 }
0x1124   :  { %v4823_v16 = vsel %vm4326_vm13, %v8604_v9, 0.0  ;;  %v5054_v0 = vpop.xlane.xlu1 %5053 }
0x1125   :  { %4824 = vadd.xlane.f32.xlu0 %v4823_v16  ;;  %v5055_v31 = vsub.f32 %v5046_v58, %v5054_v0 }
0x1127   :  { %v5056_v23 = vmul.f32 1.442695, %v5055_v31 }
0x1129   :  { %6981 = vpow2.f32 %v5056_v23 }
0x112b   :  { %v8612_v7 = vpop.eup %6979 }
0x112c   :  { %v5172_v35 = vpop.xlane.xlu0 %5171  ;;  %v4940_v32 = vsel %vm4326_vm13, %v8612_v7, 0.0 }
0x112d   :  { %v5173_v29 = vsub.f32 %v5164_v18, %v5172_v35 }
0x112e   :  { %4587 = vrot.lane.b32.xlu1 %v8523_v42, %s7359_s9 }
0x112f   :  { %v5174_v26 = vmul.f32 1.442695, %v5173_v29 }
0x1131   :  { %6983 = vpow2.f32 %v5174_v26 }
0x1133   :  { %v8616_v1 = vpop.eup %6981 }
0x1134   :  { %v5058_v38 = vsel %vm4326_vm13, %v8616_v1, 0.0 }
0x113b   :  { %4469 = vrot.lane.b32.xlu0 %v8523_v42, %s7370_s16  ;;  %v8620_v33 = vpop.eup %6983 }
0x113c   :  { %v5176_v39 = vsel %vm4326_vm13, %v8620_v33, 0.0 }
0x1152   :  { %4941 = vadd.xlane.f32.xlu1 %v4940_v32 }
0x1156   :  { %5059 = vadd.xlane.f32.xlu1 %v5058_v38 }
0x115a   :  { %5177 = vadd.xlane.f32.xlu0 %v5176_v39  ;;  %v4842_v39 = vsel %vm261_vm2, %v8627_v40, 0 }
0x1167   :  { %4705 = vrot.lane.b32.xlu1 %v8523_v42, %s7371_s25 }
0x116b   :  { %4954 = vrot.lane.b32.xlu1 %v8627_v40, %s7370_s16 }
0x116f   :  { %5072 = vrot.lane.b32.xlu1 %v8627_v40, %s7359_s9 }
0x1173   :  { %5190 = vrot.lane.b32.xlu1 %v8627_v40, %s7371_s25 }
0x119a   :  { %v4456_v24 = vpop.xlane.xlu1 %4455 }
0x119b   :  { %6985 = vrcp.f32 %v4456_v24 }
0x11a2   :  { %v4575_v41 = vpop.xlane.xlu0 %4574 }
0x11a3   :  { %6987 = vrcp.f32 %v4575_v41 }
0x11a5   :  { %v6986_v17 = vpop.eup %6985 }
0x11a6   :  { %v4458_v19 = vmul.f32 %v6986_v17, %v6972_v10 }
0x11a8   :  { %v4459_v43 = vsel %vm4326_vm13, %v4458_v19, 0.0 }
0x11a9   :  { %v4460_v44 = vrot.slane %v4459_v43, 4 }
0x11aa   :  { %v4693_v50 = vpop.xlane.xlu1 %4692 }
0x11ab   :  { %v4461_v42 = vadd.f32 %v4460_v44, %v4459_v43  ;;  %6989 = vrcp.f32 %v4693_v50 }
0x11ad   :  { %v6988_v45 = vpop.eup %6987  ;;  %v4462_v46 = vrot.slane %v4461_v42, 2 }
0x11ae   :  { %v4577_v47 = vmul.f32 %v6988_v45, %v6974_v34  ;;  %v4588_v2 = vpop.permute.xlu1 %4587 }
0x11af   :  { %v4463_v48 = vadd.f32 %v4462_v46, %v4461_v42  ;;  %v4593_v63 = vsel %vm261_vm2, %v4588_v2, 0 }
0x11b0   :  { %v4578_v49 = vsel %vm4326_vm13, %v4577_v47, 0.0 }
0x11b1   :  { %v4579_v13 = vrot.slane %v4578_v49, 4  ;;  %v4464_v56 = vrot.slane %v4463_v48, 1 }
0x11b2   :  { %v4825_v37 = vpop.xlane.xlu0 %4824 }
0x11b3   :  { %v4580_v58 = vadd.f32 %v4579_v13, %v4578_v49  ;;  %v4465_v27 = vadd.f32 %v4464_v56, %v4463_v48  ;;  %6991 = vrcp.f32 %v4825_v37 }
0x11b5   :  { %v4581_v6 = vrot.slane %v4580_v58, 2  ;;  %v4466_v57 = vmul.f32 0.25, %v4465_v27  ;;  %v6990_v53 = vpop.eup %6989 }
0x11b6   :  { %v4470_v61 = vpop.permute.xlu0 %4469  ;;  %v4695_v12 = vmul.f32 %v6990_v53, %v8600_v11 }
0x11b7   :  { %v4475_v18 = vsel %vm261_vm2, %v4470_v61, 0  ;;  %v4582_v20 = vadd.f32 %v4581_v6, %v4580_v58  ;;  %v4467_v21 = vpack.c.bf16 %v4466_v57, %v4466_v57 }
0x11b8   :  { %6240 = vmatpush3.bf16.msra.mxu0 %v4475_v18  ;;  %v4696_v10 = vsel %vm4326_vm13, %v4695_v12, 0.0 }
0x11b9   :  { %6251 = vmatprep.subr.bf16.mxu0 %v8853_v15  ;;  %v4583_v36 = vrot.slane %v4582_v20, 1  ;;  %v4697_v55 = vrot.slane %v4696_v10, 4 }
0x11bb   :  { %6242 = vmatmul.mubr.msk.bf16.vlgmr.msra.gmra.mrb[64].mxu0 %vm4349_vm14, %v4467_v21  ;;  %v4584_v3 = vadd.f32 %v4583_v36, %v4582_v20  ;;  %v4698_v28 = vadd.f32 %v4697_v55, %v4696_v10 }
0x11bc   :  { %6252 = vmatpush3.bf16.msra.mxu0 %v4593_v63  ;;  %6253 = vmatprep.mubr.msk.bf16.mxu0 %vm7368_vm0, %v8853_v15 }
0x11bd   :  { %v4585_v52 = vmul.f32 0.25, %v4584_v3  ;;  %6263 = vmatprep.subr.bf16.mxu0 %v8853_v15  ;;  %v6992_v54 = vpop.eup %6991  ;;  %v4699_v60 = vrot.slane %v4698_v28, 2 }
0x11be   :  { %v4827_v51 = vmul.f32 %v6992_v54, %v8604_v9 }
0x11bf   :  { %v4586_v59 = vpack.c.bf16 %v4585_v52, %v4585_v52  ;;  %v4700_v25 = vadd.f32 %v4699_v60, %v4698_v28  ;;  %v6820_v28 = vld [vmem:[%s8809_s17 + $0x8] sm:$0xff]  }
0x11c0   :  { %v4828_v34 = vsel %vm4326_vm13, %v4827_v51, 0.0  ;;  %v6819_v51 = vld [vmem:[%s8809_s17] sm:$0xff]  }
0x11c1   :  { %v4829_v5 = vrot.slane %v4828_v34, 4  ;;  %v4701_v16 = vrot.slane %v4700_v25, 1  ;;  %6318 = vmatpush3.bf16.msra.mxu1 %v6819_v51  ;;  %v6834_v51 = vld [vmem:[%s8811_s19 + $0x38] sm:$0xff]  }
0x11c2   :  { %6319 = vmatprep.subr.bf16.mxu1 %v8853_v15 }
0x11c3   :  { %6254 = vmatmul.mubr.msk.bf16.vlgmr.msra.gmra.mrb[68].mxu0 %vm4349_vm14, %v4586_v59  ;;  %v4830_v4 = vadd.f32 %v4829_v5, %v4828_v34  ;;  %v4702_v22 = vadd.f32 %v4701_v16, %v4700_v25  ;;  %v6821_v34 = vld [vmem:[%s8809_s17 + $0x10] sm:$0xff]  }
0x11c4   :  { %6265 = vmatprep.mubr.msk.bf16.mxu0 %vm7368_vm0, %v8853_v15 }
0x11c5   :  { %v4831_v8 = vrot.slane %v4830_v4, 2  ;;  %v4703_v30 = vmul.f32 0.25, %v4702_v22  ;;  %6320 = vmatpush3.bf16.msra.mxu1 %v6820_v28  ;;  %v6836_v28 = vld [vmem:[%s8813_s21 + $0x8] sm:$0xff]  }
0x11c6   :  { %6321 = vmatprep.subr.bf16.mxu1 %v8853_v15 }
0x11c7   :  { %v4832_v0 = vadd.f32 %v4831_v8, %v4830_v4  ;;  %v4704_v26 = vpack.c.bf16 %v4703_v30, %v4703_v30 }
0x11c9   :  { %v4833_v31 = vrot.slane %v4832_v0, 1  ;;  %6322 = vmatpush3.bf16.msra.mxu1 %v6821_v34  ;;  %v5918_v34 = vld [vmem:[%s8855_s5] ss:$0 sm:$0xff] }
0x11ca   :  { %6323 = vmatprep.subr.bf16.mxu1 %v8853_v15 }
0x11cb   :  { %v4834_v32 = vadd.f32 %v4833_v31, %v4832_v0 }
0x11cd   :  { %v4835_v19 = vmul.f32 0.25, %v4834_v32 }
0x11cf   :  { %v4836_v47 = vpack.c.bf16 %v4835_v19, %v4835_v19 }
0x11df   :  { %v4942_v62 = vpop.xlane.xlu1 %4941 }
0x11e0   :  { %6993 = vrcp.f32 %v4942_v62 }
0x11e3   :  { %v5060_v11 = vpop.xlane.xlu1 %5059 }
0x11e4   :  { %6995 = vrcp.f32 %v5060_v11 }
0x11e7   :  { %v4706_v35 = vpop.permute.xlu1 %4705  ;;  %v5178_v23 = vpop.xlane.xlu0 %5177 }
0x11e8   :  { %v4711_v9 = vsel %vm261_vm2, %v4706_v35, 0  ;;  %6997 = vrcp.f32 %v5178_v23  ;;  %v6822_v23 = vld [vmem:[%s8809_s17 + $0x18] sm:$0xff]  }
0x11e9   :  { %6264 = vmatpush3.bf16.msra.mxu0 %v4711_v9  ;;  %6324 = vmatpush3.bf16.msra.mxu1 %v6822_v23 }
0x11ea   :  { %v6994_v29 = vpop.eup %6993  ;;  %6275 = vmatprep.subr.bf16.mxu0 %v8853_v15  ;;  %6325 = vmatprep.subr.bf16.mxu1 %v8853_v15 }
0x11eb   :  { %v4944_v38 = vmul.f32 %v6994_v29, %v8612_v7  ;;  %v4955_v42 = vpop.permute.xlu1 %4954 }
0x11ec   :  { %6266 = vmatmul.mubr.msk.bf16.vlgmr.msra.gmra.mrb[72].mxu0 %vm4349_vm14, %v4704_v26  ;;  %v4960_v13 = vsel %vm261_vm2, %v4955_v42, 0  ;;  %v6823_v26 = vld [vmem:[%s8809_s17 + $0x20] sm:$0xff]  }
0x11ed   :  { %v4945_v24 = vsel %vm4326_vm13, %v4944_v38, 0.0  ;;  %6276 = vmatpush3.bf16.msra.mxu0 %v4842_v39  ;;  %6277 = vmatprep.mubr.msk.bf16.mxu0 %vm7368_vm0, %v8853_v15  ;;  %v6824_v38 = vld [vmem:[%s8809_s17 + $0x28] sm:$0xff]  }
0x11ee   :  { %v6996_v41 = vpop.eup %6995  ;;  %v4946_v17 = vrot.slane %v4945_v24, 4  ;;  %6287 = vmatprep.subr.bf16.mxu0 %v8853_v15  ;;  %6326 = vmatpush3.bf16.msra.mxu1 %v6823_v26  ;;  %v5936_v26 = vld [vmem:[#allocation23] ss:$0 sm:$0xff] }
0x11ef   :  { %v5062_v43 = vmul.f32 %v6996_v41, %v8616_v1  ;;  %v5073_v20 = vpop.permute.xlu1 %5072  ;;  %6327 = vmatprep.subr.bf16.mxu1 %v8853_v15 }
0x11f0   :  { %v4947_v44 = vadd.f32 %v4946_v17, %v4945_v24  ;;  %v5078_v63 = vsel %vm261_vm2, %v5073_v20, 0 }
0x11f1   :  { %v5063_v7 = vsel %vm4326_vm13, %v5062_v43, 0.0  ;;  %v6825_v43 = vld [vmem:[%s8809_s17 + $0x30] sm:$0xff]  }
0x11f2   :  { %v6998_v45 = vpop.eup %6997  ;;  %v4948_v46 = vrot.slane %v4947_v44, 2  ;;  %v5064_v40 = vrot.slane %v5063_v7, 4  ;;  %6328 = vmatpush3.bf16.msra.mxu1 %v6824_v38 }
0x11f3   :  { %v5180_v48 = vmul.f32 %v6998_v45, %v8620_v33  ;;  %v5191_v59 = vpop.permute.xlu1 %5190  ;;  %6329 = vmatprep.subr.bf16.mxu1 %v8853_v15 }
0x11f4   :  { %v5065_v49 = vadd.f32 %v5064_v40, %v5063_v7  ;;  %6278 = vmatmul.mubr.msk.bf16.vlgmr.msra.gmra.mrb[76].mxu0 %vm4349_vm14, %v4836_v47  ;;  %v4949_v56 = vadd.f32 %v4948_v46, %v4947_v44  ;;  %v5196_v10 = vsel %vm261_vm2, %v5191_v59, 0  ;;  %v6826_v7 = vld [vmem:[%s8809_s17 + $0x38] sm:$0xff]   ;;  %v6827_v47 = vld [vmem:[%s8811_s19] sm:$0xff]  }
0x11f5   :  { %v5181_v50 = vsel %vm4326_vm13, %v5180_v48, 0.0  ;;  %6288 = vmatpush3.bf16.msra.mxu0 %v4960_v13  ;;  %6289 = vmatprep.mubr.msk.bf16.mxu0 %vm7368_vm0, %v8853_v15  ;;  %v6828_v48 = vld [vmem:[%s8811_s19 + $0x8] sm:$0xff]  }
0x11f6   :  { %v5066_v1 = vrot.slane %v5065_v49, 2  ;;  %v5182_v37 = vrot.slane %v5181_v50, 4  ;;  %6299 = vmatprep.subr.bf16.mxu0 %v8853_v15  ;;  %v4950_v58 = vrot.slane %v4949_v56, 1  ;;  %6330 = vmatpush3.bf16.msra.mxu1 %v6825_v43 }
0x11f7   :  { %6331 = vmatprep.subr.bf16.mxu1 %v8853_v15 }
0x11f8   :  { %v5183_v27 = vadd.f32 %v5182_v37, %v5181_v50  ;;  %v4951_v6 = vadd.f32 %v4950_v58, %v4949_v56  ;;  %v5067_v33 = vadd.f32 %v5066_v1, %v5065_v49  ;;  %v6829_v50 = vld [vmem:[%s8811_s19 + $0x10] sm:$0xff]   ;;  %v6830_v37 = vld [vmem:[%s8811_s19 + $0x18] sm:$0xff]   ;;  %v6831_v58 = vld [vmem:[%s8811_s19 + $0x20] sm:$0xff]  }
0x11fa   :  { %v5184_v57 = vrot.slane %v5183_v27, 2  ;;  %v4952_v61 = vmul.f32 0.25, %v4951_v6  ;;  %v5068_v18 = vrot.slane %v5067_v33, 1  ;;  %6332 = vmatpush3.bf16.msra.mxu1 %v6826_v7  ;;  %v6833_v6 = vld [vmem:[%s8811_s19 + $0x30] sm:$0xff]  }
0x11fb   :  { %6357 = vmatprep.subr.bf16.mxu1 %v8853_v15 }
0x11fc   :  { %v4953_v2 = vpack.c.bf16 %v4952_v61, %v4952_v61  ;;  %v5069_v21 = vadd.f32 %v5068_v18, %v5067_v33  ;;  %v5185_v36 = vadd.f32 %v5184_v57, %v5183_v27  ;;  %v6832_v27 = vld [vmem:[%s8811_s19 + $0x28] sm:$0xff]  }
0x11fe   :  { %6290 = vmatmul.mubr.msk.bf16.vlgmr.msra.gmra.mrb[80].mxu0 %vm4349_vm14, %v4953_v2  ;;  %v5070_v3 = vmul.f32 0.25, %v5069_v21  ;;  %v5186_v52 = vrot.slane %v5185_v36, 1 }
0x11ff   :  { %6300 = vmatpush3.bf16.msra.mxu0 %v5078_v63  ;;  %6301 = vmatprep.mubr.msk.bf16.mxu0 %vm7368_vm0, %v8853_v15 }
0x1200   :  { %6311 = vmatprep.subr.bf16.mxu0 %v8853_v15  ;;  %v5071_v53 = vpack.c.bf16 %v5070_v3, %v5070_v3  ;;  %v5187_v12 = vadd.f32 %v5186_v52, %v5185_v36 }
0x1202   :  { %v5188_v54 = vmul.f32 0.25, %v5187_v12 }
0x1204   :  { %v5189_v55 = vpack.c.bf16 %v5188_v54, %v5188_v54 }
0x1206   :  { %6302 = vmatmul.mubr.msk.bf16.vlgmr.msra.gmra.mrb[84].mxu0 %vm4349_vm14, %v5071_v53 }
0x1207   :  { %6312 = vmatpush3.bf16.msra.mxu0 %v5196_v10  ;;  %6313 = vmatprep.mubr.msk.bf16.mxu0 %vm7368_vm0, %v8853_v15 }
0x1208   :  { %6337 = vmatprep.subr.bf16.mxu0 %v8853_v15 }
0x120e   :  { %6314 = vmatmul.mubr.msk.bf16.vlgmr.msra.gmra.mrb[88].mxu0 %vm4349_vm14, %v5189_v55 }
0x120f   :  { %6353 = vmatprep.mubr.msk.bf16.mxu0 %vm7368_vm0, %v8853_v15  ;;  %6338 = vmatpush3.bf16.msra.mxu0 %v6827_v47 }
0x1210   :  { %6339 = vmatprep.subr.bf16.mxu0 %v8853_v15 }
0x1213   :  { %6340 = vmatpush3.bf16.msra.mxu0 %v6828_v48 }
0x1214   :  { %6341 = vmatprep.subr.bf16.mxu0 %v8853_v15 }
0x1217   :  { %6342 = vmatpush3.bf16.msra.mxu0 %v6829_v50 }
0x1218   :  { %6343 = vmatprep.subr.bf16.mxu0 %v8853_v15 }
0x121b   :  { %6344 = vmatpush3.bf16.msra.mxu0 %v6830_v37 }
0x121c   :  { %6345 = vmatprep.subr.bf16.mxu0 %v8853_v15 }
0x121f   :  { %6346 = vmatpush3.bf16.msra.mxu0 %v6831_v58 }
0x1220   :  { %6347 = vmatprep.subr.bf16.mxu0 %v8853_v15 }
0x1223   :  { %6348 = vmatpush3.bf16.msra.mxu0 %v6832_v27 }
0x1224   :  { %6349 = vmatprep.subr.bf16.mxu0 %v8853_v15 }
0x1227   :  { %6350 = vmatpush3.bf16.msra.mxu0 %v6833_v6 }
0x1228   :  { %6351 = vmatprep.subr.bf16.mxu0 %v8853_v15 }
0x122b   :  { %6352 = vmatpush3.bf16.msra.mxu0 %v6834_v51 }
0x128e   :  { %v4511_v60 = vpop.f32.mrb[64].mxu0 }
0x128f   :  { %v6243_v5 = vpop.f32.mrb[65].mxu0 }
0x1290   :  { %v4514_v4 = vpop.f32.mrb[66].mxu0 }
0x1291   :  { %v6244_v25 = vpop.f32.mrb[67].mxu0 }
0x1296   :  { %v4629_v8 = vpop.f32.mrb[68].mxu0 }
0x1297   :  { %v6255_v16 = vpop.f32.mrb[69].mxu0 }
0x1298   :  { %v4632_v62 = vpop.f32.mrb[70].mxu0 }
0x1299   :  { %v6256_v22 = vpop.f32.mrb[71].mxu0  ;;  %v6837_v62 = vld [vmem:[%s8813_s21 + $0x10] sm:$0xff]  }
0x129a   :  { %v6838_v22 = vld [vmem:[%s8813_s21 + $0x18] sm:$0xff]  }
0x12bf   :  { %v4747_v0 = vpop.f32.mrb[72].mxu0 }
0x12c0   :  { %v6267_v11 = vpop.f32.mrb[73].mxu0 }
0x12c1   :  { %v4750_v30 = vpop.f32.mrb[74].mxu0 }
0x12c2   :  { %v6268_v31 = vpop.f32.mrb[75].mxu0 }
0x12c7   :  { %v8695_v35 = vpop.f32.mrb[76].mxu0 }
0x12c8   :  { %v6279_v9 = vpop.f32.mrb[77].mxu0 }
0x12c9   :  { %v4881_v29 = vpop.f32.mrb[78].mxu0 }
0x12ca   :  { %v6280_v32 = vpop.f32.mrb[79].mxu0 }
0x12d1   :  { %v4996_v39 = vpop.f32.mrb[80].mxu0 }
0x12d2   :  { %v6459_v24 = vpack.i.bf16 %v4511_v60, %v4996_v39  ;;  %v6291_v41 = vpop.f32.mrb[81].mxu0 }
0x12d3   :  { %v4999_v17 = vpop.f32.mrb[82].mxu0 }
0x12d4   :  { %6460 = vrot.lane.b32.xlu1 %v6459_v24, %s7371_s25  ;;  %v6292_v19 = vpop.f32.mrb[83].mxu0 }
0x12d9   :  { %v5114_v44 = vpop.f32.mrb[84].mxu0 }
0x12da   :  { %v6464_v42 = vpack.i.bf16 %v4629_v8, %v5114_v44  ;;  %v6303_v45 = vpop.f32.mrb[85].mxu0 }
0x12db   :  { %v5117_v46 = vpop.f32.mrb[86].mxu0 }
0x12dc   :  { %6465 = vrot.lane.b32.xlu1 %v6464_v42, %s7359_s9  ;;  %v6304_v40 = vpop.f32.mrb[87].mxu0 }
0x12e1   :  { %v5232_v49 = vpop.f32.mrb[88].mxu0 }
0x12e2   :  { %5247 = vrot.lane.b32.xlu1 %v5232_v49, %s7370_s16  ;;  %v6315_v13 = vpop.f32.mrb[89].mxu0 }
0x12e3   :  { %v5235_v56 = vpop.f32.mrb[90].mxu0 }
0x12e4   :  { %v6316_v1 = vpop.f32.mrb[91].mxu0 }
0x12e6   :  { %4762 = vrot.lane.b32.xlu1 %v4747_v0, %s7370_s16  ;;  %v5927_v0 = vld [vmem:[#allocation22] ss:$0 sm:$0xff] }
0x1346   :  { %v6461_v33 = vpop.permute.xlu1 %6460 }
0x1347   :  { %v6462_v61 = vunpack.i.l.bf16 %v6461_v33  ;;  %v6463_v20 = vunpack.i.h.bf16 %v6461_v33 }
0x1349   :  { %v5250_v2 = vsel %vm4279_vm12, %v8695_v35, %v6462_v61  ;;  %v4765_v52 = vsel %vm4279_vm12, %v8589_v14, %v6463_v20  ;;  %v6835_v14 = vld [vmem:[%s8813_s21] sm:$0xff]   ;;  %s7307_s21 = scalar_lea.vmem %s5574_s2, 32 }
0x134a   :  { %p7308_p0 = scmp.ne.s32.totalorder %s5574_s2, %s7307_s21  ;;  %p7313_p2 = scmp.lt.s32.totalorder %s7307_s21, %s7307_s21 }
0x134c   :  { %p7314_p3 = por %p7313_p2, %p7312_p1 }
0x134e   :  { %v6466_v57 = vpop.permute.xlu1 %6465  ;;  %p7315_p4 = pnand %p7314_p3, %p7308_p0 }
0x134f   :  { %v6467_v18 = vunpack.i.l.bf16 %v6466_v57  ;;  %v6468_v21 = vunpack.i.h.bf16 %v6466_v57 }
0x1351   :  { %v5251_v36 = vsel %vm925_vm11, %v5250_v2, %v6467_v18  ;;  %v4766_v53 = vsel %vm925_vm11, %v4765_v52, %v6468_v21 }
0x1354   :  { %v5248_v63 = vpop.permute.xlu1 %5247 }
0x1355   :  { %v5252_v3 = vsel %vm4767_vm15, %v5251_v36, %v5248_v63 }
0x1356   :  { %v5254_v59 = vrot.slane %v5252_v3, 7 }
0x1358   :  { %v4763_v12 = vpop.permute.xlu1 %4762 }
0x1359   :  { %v4768_v10 = vsel %vm4767_vm15, %v4766_v53, %v4763_v12 }
0x135a   :  { %v5256_v54 = vsel %vm336_vm1, %v4768_v10, %v5254_v59 }
0x135b   :  { %v5273_v55 = vpack.c.bf16 %v5256_v54, %v5256_v54 }
0x135d   :  { %6334 = vmatmul.mubr.bf16.vlgmr.msra.gmra.mrb[92].mxu1 %v5273_v55 }
0x135e   :  { %6365 = vmatprep.mubr.msk.bf16.mxu1 %vm7368_vm0, %v8853_v15  ;;  %6358 = vmatpush3.bf16.msra.mxu1 %v6835_v14  ;;  %vm5565_vm0 = vcmask 25600  }
0x135f   :  { %6359 = vmatprep.subr.bf16.mxu1 %v8853_v15 }
0x1362   :  { %6360 = vmatpush3.bf16.msra.mxu1 %v6836_v28 }
0x1363   :  { %6361 = vmatprep.subr.bf16.mxu1 %v8853_v15 }
0x1366   :  { %6362 = vmatpush3.bf16.msra.mxu1 %v6837_v62 }
0x1367   :  { %6363 = vmatprep.subr.bf16.mxu1 %v8853_v15 }
0x136a   :  { %6364 = vmatpush3.bf16.msra.mxu1 %v6838_v22 }
0x1430   :  { %v5363_v60 = vpop.f32.mrb[92].mxu1 }
0x1431   :  { %v5364_v5 = vadd.f32 %v5918_v34, %v5363_v60  ;;  %v6335_v4 = vpop.f32.mrb[93].mxu1 }
0x1432   :  { %v5366_v25 = vpop.f32.mrb[94].mxu1 }
0x1433   :  { %v5385_v8 = vpack.c.bf16 %v5364_v5, %v5364_v5  ;;  %v6336_v16 = vpop.f32.mrb[95].mxu1 }
0x1435   :  { %6354 = vmatmul.mubr.bf16.vlgmr.msra.gmra.mrb[92].mxu0 %v5385_v8 }
0x1508   :  { %v5475_v11 = vpop.f32.mrb[92].mxu0 }
0x1509   :  { %v5476_v30 = vadd.f32 %v5927_v0, %v5475_v11  ;;  %v6355_v31 = vpop.f32.mrb[93].mxu0 }
0x150a   :  { %v5478_v35 = vpop.f32.mrb[94].mxu0 }
0x150b   :  { %v5481_v23 = vmax.f32 %v5476_v30, 0.0  ;;  %v6356_v9 = vpop.f32.mrb[95].mxu0 }
0x150d   :  { %v5490_v29 = vpack.c.bf16 %v5481_v23, %v5481_v23 }
0x150f   :  { %6366 = vmatmul.mubr.msk.bf16.vlgmr.msra.gmra.mrb[96].mxu1 %vm925_vm11, %v5490_v29 }
0x15e2   :  { %v5559_v32 = vpop.f32.mrb[96].mxu1 }
0x15e3   :  { %v5560_v15 = vadd.f32 %v5936_v26, %v5559_v32  ;;  %v6367_v38 = vpop.f32.mrb[97].mxu1 }
0x15e4   :  { %v5562_v39 = vpop.f32.mrb[98].mxu1 }
0x15e5   :  { %v6368_v24 = vpop.f32.mrb[99].mxu1  ;;  %5566 = vst.msk [vmem:[#allocation25] sm:$0x3] %vm5565_vm0, %v5560_v15 }
0x15e6   :  { %7318 = shalt.err (!%p7315_p4)
}
0x15e7   :  { %s8856_s4 = sld [smem:[#allocation46_spill]] }
0x15ed   :  { %s7319_s6 = scalar_lea.hbm %s8856_s4, 32 }
0x15ee   :  { %p7320_p5 = scmp.ne.s32.totalorder %s8856_s4, %s7319_s6  ;;  %p7323_p6 = scmp.lt.u32.totalorder %s7319_s6, %s8856_s4 }
0x15f0   :  { %p7325_p7 = pnand %p7323_p6, %p7320_p5 }
0x15f2   :  { %7328 = shalt.err (!%p7325_p7)
}
0x15f3   :  { %5576 = dma.vmem_to_hbm [thread:$0]  %s5574_s2, 32, %s8856_s4, [#allocation4]  }
0x15f4   :  { %7345 = dma.done.wait [#allocation4], 32  }
0x15f5   :  { %7346 = vsyncadd [#allocation4], 4294967264 }
0x15f6   :  { %5580 = vsyncpa [#allocation3], 1 }
0x15f7   :  { %5581 = vsyncpa [#allocation6], 1 }
0x15f8   :  { %5582 = vsyncpa [#allocation9], 1 }
0x15f9   :  { %5583 = vsyncpa [#allocation12], 1 }
0x15fa   :  { %5584 = vsyncpa [#allocation15], 1 }
0x15fb   :  { %5585 = vsyncpa [#allocation18], 1 }
0x15fc   :  { %5586 = vsyncpa [#allocation21], 1 }
0x15fd   :  { %5587 = vsyncpa [#allocation24], 1 }
0x15fe   :  { %5588 = vsyncpa [#allocation4], 1 }

</bundles_post_ra>
